<compile_context>
chip_gen: v6e
topology: v6e:2x2x1
jax: 0.10.0
libtpu: 0.0.40
codegen_flags: <defaults>
</compile_context>

<pallas_src>
import functools

import jax
import jax.numpy as jnp
from jax.experimental import pallas as pl
from jax.experimental.pallas import tpu as pltpu

LANE = 128


def _round_up(x, m):
    return (x + m - 1) // m * m


def _densify_grouped_weight(w, c_in, groups):
    """(c_out, c_in//g, kh, kw) grouped conv weight -> dense (c_out, c_in, kh, kw)."""
    if groups == 1:
        return w
    c_out, c_in_g, kh, kw = w.shape
    c_out_g = c_out // groups
    dense = jnp.zeros((c_out, c_in, kh, kw), w.dtype)
    for gi in range(groups):
        dense = dense.at[gi * c_out_g:(gi + 1) * c_out_g,
                         gi * c_in_g:(gi + 1) * c_in_g].set(
            w[gi * c_out_g:(gi + 1) * c_out_g])
    return dense


# ---------------------------------------------------------------------------
# Kernel 1: 1x1 conv (matmul, BN scale pre-folded into weight) + bias + SiLU
# ---------------------------------------------------------------------------
def _mm_bias_silu_kernel(x_ref, w_ref, b_ref, o_ref):
    # x_ref: (tm, C1p) bf16   w_ref: (C1p, Cmp) bf16   b_ref: (1, Cmp) f32
    acc = jnp.dot(x_ref[...], w_ref[...], preferred_element_type=jnp.float32)
    y = acc + b_ref[...]
    o_ref[...] = (y * jax.nn.sigmoid(y)).astype(o_ref.dtype)


def _pointwise_conv_bn_silu(x2d, w2d, bias, *, tm=256):
    """x2d: (M, C1p) bf16; w2d: (C1p, Cmp) bf16; bias: (1, Cmp) f32 -> (M, Cmp) bf16."""
    M, C1p = x2d.shape
    Cmp = w2d.shape[1]
    M_pad = _round_up(M, tm)
    if M_pad != M:
        # Only the flattened activation (1x traffic) is padded, not an im2col blow-up.
        x2d = jnp.pad(x2d, ((0, M_pad - M), (0, 0)))

    out = pl.pallas_call(
        _mm_bias_silu_kernel,
        out_shape=jax.ShapeDtypeStruct((M_pad, Cmp), jnp.bfloat16),
        grid_spec=pltpu.PrefetchScalarGridSpec(
            num_scalar_prefetch=0,
            grid=(M_pad // tm,),
            in_specs=[
                pl.BlockSpec((tm, C1p), lambda i: (i, 0)),
                pl.BlockSpec((C1p, Cmp), lambda i: (0, 0)),
                pl.BlockSpec((1, Cmp), lambda i: (0, 0)),
            ],
            out_specs=pl.BlockSpec((tm, Cmp), lambda i: (i, 0)),
        ),
        compiler_params=pltpu.CompilerParams(
            dimension_semantics=("parallel",)),
    )(x2d, w2d, bias)
    return out[:M] if M_pad != M else out


# ---------------------------------------------------------------------------
# Kernel 2: 3x3 conv (stride 1, pad 1) + bias + SiLU + fused residual add.
# The 3x3 is computed as 9 shifted pointwise matmuls accumulated in f32.
# ---------------------------------------------------------------------------
def _conv3x3_bias_silu_kernel(*refs, H, W, add):
    if add:
        y_ref, w_ref, b_ref, res_ref, o_ref = refs
    else:
        y_ref, w_ref, b_ref, o_ref = refs
        res_ref = None
    Cmp = y_ref.shape[-1]
    C2p = w_ref.shape[-1]

    acc = jnp.zeros((H * W, C2p), jnp.float32)
    for kh in range(3):
        for kw in range(3):
            # (H, W, Cmp) window of the spatially padded activation.
            win = y_ref[0, kh:kh + H, kw:kw + W, :]
            win = win.reshape(H * W, Cmp)           # W is a multiple of 8 -> layout no-op
            acc = acc + jnp.dot(win, w_ref[kh * 3 + kw],
                                preferred_element_type=jnp.float32)

    y = acc + b_ref[...]
    y = y * jax.nn.sigmoid(y)                       # SiLU (sigmoid -> EUP slot)
    y = y.reshape(1, H, W, C2p)
    if add:
        y = y + res_ref[...]                        # residual add in f32
    o_ref[...] = y.astype(o_ref.dtype)


def _conv3x3_bn_silu(y1p, w9, bias, residual, *, H, W):
    """y1p: (N, H+2, W+2, Cmp) bf16; w9: (9, Cmp, C2p) bf16; bias: (1, C2p) f32;
    residual: (N, H, W, C2p) f32 or None  ->  (N, H, W, C2p) f32."""
    N = y1p.shape[0]
    Cmp = y1p.shape[-1]
    C2p = w9.shape[-1]
    add = residual is not None

    in_specs = [
        pl.BlockSpec((1, H + 2, W + 2, Cmp), lambda n: (n, 0, 0, 0)),
        pl.BlockSpec((9, Cmp, C2p), lambda n: (0, 0, 0)),
        pl.BlockSpec((1, C2p), lambda n: (0, 0)),
    ]
    args = [y1p, w9, bias]
    if add:
        in_specs.append(pl.BlockSpec((1, H, W, C2p), lambda n: (n, 0, 0, 0)))
        args.append(residual)

    kernel = functools.partial(_conv3x3_bias_silu_kernel, H=H, W=W, add=add)
    return pl.pallas_call(
        kernel,
        out_shape=jax.ShapeDtypeStruct((N, H, W, C2p), jnp.float32),
        grid_spec=pltpu.PrefetchScalarGridSpec(
            num_scalar_prefetch=0,
            grid=(N,),
            in_specs=in_specs,
            out_specs=pl.BlockSpec((1, H, W, C2p), lambda n: (n, 0, 0, 0)),
        ),
        compiler_params=pltpu.CompilerParams(
            dimension_semantics=("parallel",)),
    )(*args)


# ---------------------------------------------------------------------------
# Bottleneck forward (inference BN semantics, matching the PyTorch module)
# ---------------------------------------------------------------------------
def bottleneck_forward(x, params, *, c1, c2, shortcut=True, g=1, e=0.5,
                       eps=1e-5, tm=256):
    (w1, g1, b1, m1, v1, w2, g2, b2, m2, v2) = params
    c_ = int(c2 * e)
    add = shortcut and c1 == c2
    N, _, H, W = x.shape

    C1p = _round_up(c1, LANE)
    Cmp = _round_up(c_, LANE)
    C2p = _round_up(c2, LANE)

    # --- fold BN (running stats) into weights / biases ---
    s1 = g1 / jnp.sqrt(v1 + eps)
    w1f = w1 * s1[:, None, None, None]                      # (c_, c1, 1, 1)
    bias1 = (b1 - m1 * s1).reshape(1, c_)

    s2 = g2 / jnp.sqrt(v2 + eps)
    w2d = _densify_grouped_weight(w2, c_, g)                # (c2, c_, 3, 3)
    w2f = w2d * s2[:, None, None, None]
    bias2 = (b2 - m2 * s2).reshape(1, c2)

    # 1x1 weight -> (c1, c_) -> lane-padded bf16
    w1_2d = jnp.pad(w1f.reshape(c_, c1).T,
                    ((0, C1p - c1), (0, Cmp - c_))).astype(jnp.bfloat16)
    bias1_p = jnp.pad(bias1, ((0, 0), (0, Cmp - c_))).astype(jnp.float32)

    # 3x3 weight -> (9, c_, c2) -> lane-padded bf16
    w2_9 = jnp.transpose(w2f, (2, 3, 1, 0)).reshape(9, c_, c2)
    w2_9 = jnp.pad(w2_9, ((0, 0), (0, Cmp - c_),
                          (0, C2p - c2))).astype(jnp.bfloat16)
    bias2_p = jnp.pad(bias2, ((0, 0), (0, C2p - c2))).astype(jnp.float32)

    # --- NCHW -> NHWC once, channel-pad to lane width ---
    x_nhwc = jnp.transpose(x, (0, 2, 3, 1))
    x_p = jnp.pad(x_nhwc, ((0, 0), (0, 0), (0, 0), (0, C1p - c1)))

    # cv1: 1x1 conv as a lane-dense bf16 matmul, output kept in bf16
    x2d = x_p.astype(jnp.bfloat16).reshape(N * H * W, C1p)
    y1 = _pointwise_conv_bn_silu(x2d, w1_2d, bias1_p, tm=tm)
    y1 = y1.reshape(N, H, W, Cmp)

    # cv2: 3x3 conv (pad=1), 9 taps accumulated inside the kernel (no im2col)
    y1p = jnp.pad(y1, ((0, 0), (1, 1), (1, 1), (0, 0)))
    residual = x_p.astype(jnp.float32) if add else None     # c1 == c2 -> C1p == C2p
    out = _conv3x3_bn_silu(y1p, w2_9, bias2_p, residual, H=H, W=W)

    # back to NCHW, drop channel padding
    return jnp.transpose(out[..., :c2], (0, 3, 1, 2))


# ---------------------------------------------------------------------------
# Pure-JAX reference (PyTorch semantics: eval-mode BN, SiLU, residual)
# ---------------------------------------------------------------------------
def _reference(x, params, *, c1, c2, shortcut, g, e, eps=1e-5):
    (w1, g1, b1, m1, v1, w2, g2, b2, m2, v2) = params

    def conv_bn_silu(z, w, gamma, beta, mean, var, pad, groups):
        y = jax.lax.conv_general_dilated(
            z, w, window_strides=(1, 1), padding=[(pad, pad), (pad, pad)],
            dimension_numbers=("NCHW", "OIHW", "NCHW"),
            feature_group_count=groups)
        scale = gamma / jnp.sqrt(var + eps)
        y = y * scale.reshape(1, -1, 1, 1) + (beta - mean * scale).reshape(1, -1, 1, 1)
        return y * jax.nn.sigmoid(y)

    y = conv_bn_silu(x, w1, g1, b1, m1, v1, 0, 1)
    y = conv_bn_silu(y, w2, g2, b2, m2, v2, 1, g)
    return x + y if (shortcut and c1 == c2) else y


if __name__ == "__main__":
    key = jax.random.PRNGKey(0)
    keys = jax.random.split(key, 11)

    # Bottleneck(c1=8, c2=8, shortcut=True, g=1, e=0.5) on a (2, 8, 16, 16) input.
    N, C1, H, W = 2, 8, 16, 16
    C2, shortcut, g, e = 8, True, 1, 0.5
    C_ = int(C2 * e)

    x = jax.random.normal(keys[0], (N, C1, H, W), dtype=jnp.float32)

    w1 = jax.random.normal(keys[1], (C_, C1, 1, 1), dtype=jnp.float32) * 0.3
    g1 = jax.random.normal(keys[2], (C_,), dtype=jnp.float32) * 0.1 + 1.0
    b1 = jax.random.normal(keys[3], (C_,), dtype=jnp.float32) * 0.1
    m1 = jax.random.normal(keys[4], (C_,), dtype=jnp.float32) * 0.1
    v1 = jax.random.uniform(keys[5], (C_,), dtype=jnp.float32, minval=0.5, maxval=1.5)

    w2 = jax.random.normal(keys[6], (C2, C_ // g, 3, 3), dtype=jnp.float32) * 0.2
    g2 = jax.random.normal(keys[7], (C2,), dtype=jnp.float32) * 0.1 + 1.0
    b2 = jax.random.normal(keys[8], (C2,), dtype=jnp.float32) * 0.1
    m2 = jax.random.normal(keys[9], (C2,), dtype=jnp.float32) * 0.1
    v2 = jax.random.uniform(keys[10], (C2,), dtype=jnp.float32, minval=0.5, maxval=1.5)

    params = (w1, g1, b1, m1, v1, w2, g2, b2, m2, v2)

    fwd = jax.jit(functools.partial(bottleneck_forward, c1=C1, c2=C2,
                                    shortcut=shortcut, g=g, e=e))
    out = fwd(x, params)
    jax.block_until_ready(out)

    ref = _reference(x, params, c1=C1, c2=C2, shortcut=shortcut, g=g, e=e)
    assert out.shape == (N, C2, H, W), out.shape
    # bf16 matmul inputs + bf16 intermediate -> loose tolerance.
    assert jnp.allclose(out, ref, atol=5e-2, rtol=5e-2), \
        float(jnp.max(jnp.abs(out - ref)))

    # TODO(synk): training-mode BatchNorm (batch statistics) is not implemented;
    # this matches PyTorch eval() semantics with running stats.
    print("KERNEL_OK")
</pallas_src>

<mosaic_0001>
module attributes {stable_mosaic.version = 11 : i64} {
  func.func @_mm_bias_silu_kernel(%arg0: i32, %arg1: memref<256x128xbf16, #tpu.memory_space<vmem>>, %arg2: memref<128x128xbf16, #tpu.memory_space<vmem>>, %arg3: memref<1x128xf32, #tpu.memory_space<vmem>>, %arg4: memref<256x128xbf16, #tpu.memory_space<vmem>>) attributes {dimension_semantics = [#tpu.dimension_semantics<parallel>], iteration_bounds = array<i64: 2>, scalar_prefetch = 0 : i64, scratch_operands = 0 : i64, tpu.core_type = #tpu.core_type<tc>, window_params = [{transform_indices = @transform_0, window_bounds = array<i64: 256, 128>}, {pipeline_mode = #tpu.pipeline_mode<synchronous>, transform_indices = @transform_1, window_bounds = array<i64: 128, 128>}, {pipeline_mode = #tpu.pipeline_mode<synchronous>, transform_indices = @transform_2, window_bounds = array<i64: 1, 128>}, {transform_indices = @transform_3, window_bounds = array<i64: 256, 128>}]} {
    %c0 = arith.constant 0 : index
    %c0_0 = arith.constant 0 : index
    %0 = vector.load %arg1[%c0, %c0_0] : memref<256x128xbf16, #tpu.memory_space<vmem>>, vector<256x128xbf16>
    %c0_1 = arith.constant 0 : index
    %c0_2 = arith.constant 0 : index
    %1 = vector.load %arg2[%c0_1, %c0_2] : memref<128x128xbf16, #tpu.memory_space<vmem>>, vector<128x128xbf16>
    %cst = arith.constant dense<0.000000e+00> : vector<256x128xf32>
    %2 = tpu.matmul %0, %1, %cst {dimension_numbers = #tpu.dot_dimension_numbers<[1], [0], [0], [1], [0, 0, 1, 1], [], []>} : vector<256x128xbf16>, vector<128x128xbf16>, vector<256x128xf32> -> vector<256x128xf32>
    %c0_3 = arith.constant 0 : index
    %c0_4 = arith.constant 0 : index
    %3 = vector.load %arg3[%c0_3, %c0_4] : memref<1x128xf32, #tpu.memory_space<vmem>>, vector<1x128xf32>
    %4 = vector.broadcast %3 : vector<1x128xf32> to vector<256x128xf32>
    %5 = arith.addf %2, %4 : vector<256x128xf32>
    %6 = arith.negf %5 : vector<256x128xf32>
    %7 = math.exp %6 : vector<256x128xf32>
    %cst_5 = arith.constant 1.000000e+00 : f32
    %8 = vector.broadcast %cst_5 : f32 to vector<256x128xf32>
    %9 = arith.addf %8, %7 : vector<256x128xf32>
    %10 = arith.divf %8, %9 : vector<256x128xf32>
    %11 = arith.mulf %5, %10 : vector<256x128xf32>
    %12 = arith.truncf %11 : vector<256x128xf32> to vector<256x128xbf16>
    %c0_6 = arith.constant 0 : index
    %c0_7 = arith.constant 0 : index
    %13 = vector.load %arg4[%c0_6, %c0_7] : memref<256x128xbf16, #tpu.memory_space<vmem>>, vector<256x128xbf16>
    tpu.vector_store %arg4[%c0_6, %c0_7], %12 {strides = array<i32>} : memref<256x128xbf16, #tpu.memory_space<vmem>>, vector<256x128xbf16>,
    return
  }
  func.func @transform_0(%arg0: i32) -> (i32, i32) {
    %c0_i32 = arith.constant 0 : i32
    %c0_i32_0 = arith.constant 0 : i32
    return %arg0, %c0_i32 : i32, i32
  }
  func.func @transform_1(%arg0: i32) -> (i32, i32) {
    %c0_i32 = arith.constant 0 : i32
    %c0_i32_0 = arith.constant 0 : i32
    %c0_i32_1 = arith.constant 0 : i32
    return %c0_i32, %c0_i32_0 : i32, i32
  }
  func.func @transform_2(%arg0: i32) -> (i32, i32) {
    %c0_i32 = arith.constant 0 : i32
    %c0_i32_0 = arith.constant 0 : i32
    %c0_i32_1 = arith.constant 0 : i32
    return %c0_i32, %c0_i32_0 : i32, i32
  }
  func.func @transform_3(%arg0: i32) -> (i32, i32) {
    %c0_i32 = arith.constant 0 : i32
    %c0_i32_0 = arith.constant 0 : i32
    return %arg0, %c0_i32 : i32, i32
  }
}

module attributes {stable_mosaic.version = 11 : i64} {
  func.func @_conv3x3_bias_silu_kernel(%arg0: i32, %arg1: memref<1x18x18x128xbf16, #tpu.memory_space<vmem>>, %arg2: memref<9x128x128xbf16, #tpu.memory_space<vmem>>, %arg3: memref<1x128xf32, #tpu.memory_space<vmem>>, %arg4: memref<1x16x16x128xf32, #tpu.memory_space<vmem>>, %arg5: memref<1x16x16x128xf32, #tpu.memory_space<vmem>>) attributes {dimension_semantics = [#tpu.dimension_semantics<parallel>], iteration_bounds = array<i64: 2>, scalar_prefetch = 0 : i64, scratch_operands = 0 : i64, tpu.core_type = #tpu.core_type<tc>, window_params = [{transform_indices = @transform_0, window_bounds = array<i64: 1, 18, 18, 128>}, {pipeline_mode = #tpu.pipeline_mode<synchronous>, transform_indices = @transform_1, window_bounds = array<i64: 9, 128, 128>}, {pipeline_mode = #tpu.pipeline_mode<synchronous>, transform_indices = @transform_2, window_bounds = array<i64: 1, 128>}, {transform_indices = @transform_3, window_bounds = array<i64: 1, 16, 16, 128>}, {transform_indices = @transform_4, window_bounds = array<i64: 1, 16, 16, 128>}]} {
    %cst = arith.constant 0.000000e+00 : f32
    %0 = vector.broadcast %cst : f32 to vector<256x128xf32>
    %c0 = arith.constant 0 : index
    %c0_0 = arith.constant 0 : index
    %c0_1 = arith.constant 0 : index
    %c0_2 = arith.constant 0 : index
    %1 = vector.load %arg1[%c0, %c0_0, %c0_1, %c0_2] : memref<1x18x18x128xbf16, #tpu.memory_space<vmem>>, vector<1x16x16x128xbf16>
    %2 = vector.shape_cast %1 : vector<1x16x16x128xbf16> to vector<16x16x128xbf16>
    %3 = vector.shape_cast %2 : vector<16x16x128xbf16> to vector<256x128xbf16>
    %c0_3 = arith.constant 0 : index
    %c0_4 = arith.constant 0 : index
    %c0_5 = arith.constant 0 : index
    %4 = vector.load %arg2[%c0_3, %c0_4, %c0_5] : memref<9x128x128xbf16, #tpu.memory_space<vmem>>, vector<1x128x128xbf16>
    %5 = vector.shape_cast %4 : vector<1x128x128xbf16> to vector<128x128xbf16>
    %cst_6 = arith.constant dense<0.000000e+00> : vector<256x128xf32>
    %6 = tpu.matmul %3, %5, %cst_6 {dimension_numbers = #tpu.dot_dimension_numbers<[1], [0], [0], [1], [0, 0, 1, 1], [], []>} : vector<256x128xbf16>, vector<128x128xbf16>, vector<256x128xf32> -> vector<256x128xf32>
    %7 = arith.addf %0, %6 : vector<256x128xf32>
    %c0_7 = arith.constant 0 : index
    %c0_8 = arith.constant 0 : index
    %c1 = arith.constant 1 : index
    %c0_9 = arith.constant 0 : index
    %8 = vector.load %arg1[%c0_7, %c0_8, %c1, %c0_9] : memref<1x18x18x128xbf16, #tpu.memory_space<vmem>>, vector<1x16x16x128xbf16>
    %9 = vector.shape_cast %8 : vector<1x16x16x128xbf16> to vector<16x16x128xbf16>
    %10 = vector.shape_cast %9 : vector<16x16x128xbf16> to vector<256x128xbf16>
    %c1_10 = arith.constant 1 : index
    %c0_11 = arith.constant 0 : index
    %c0_12 = arith.constant 0 : index
    %11 = vector.load %arg2[%c1_10, %c0_11, %c0_12] : memref<9x128x128xbf16, #tpu.memory_space<vmem>>, vector<1x128x128xbf16>
    %12 = vector.shape_cast %11 : vector<1x128x128xbf16> to vector<128x128xbf16>
    %cst_13 = arith.constant dense<0.000000e+00> : vector<256x128xf32>
    %13 = tpu.matmul %10, %12, %cst_13 {dimension_numbers = #tpu.dot_dimension_numbers<[1], [0], [0], [1], [0, 0, 1, 1], [], []>} : vector<256x128xbf16>, vector<128x128xbf16>, vector<256x128xf32> -> vector<256x128xf32>
    %14 = arith.addf %7, %13 : vector<256x128xf32>
    %c0_14 = arith.constant 0 : index
    %c0_15 = arith.constant 0 : index
    %c2 = arith.constant 2 : index
    %c0_16 = arith.constant 0 : index
    %15 = vector.load %arg1[%c0_14, %c0_15, %c2, %c0_16] : memref<1x18x18x128xbf16, #tpu.memory_space<vmem>>, vector<1x16x16x128xbf16>
    %16 = vector.shape_cast %15 : vector<1x16x16x128xbf16> to vector<16x16x128xbf16>
    %17 = vector.shape_cast %16 : vector<16x16x128xbf16> to vector<256x128xbf16>
    %c2_17 = arith.constant 2 : index
    %c0_18 = arith.constant 0 : index
    %c0_19 = arith.constant 0 : index
    %18 = vector.load %arg2[%c2_17, %c0_18, %c0_19] : memref<9x128x128xbf16, #tpu.memory_space<vmem>>, vector<1x128x128xbf16>
    %19 = vector.shape_cast %18 : vector<1x128x128xbf16> to vector<128x128xbf16>
    %cst_20 = arith.constant dense<0.000000e+00> : vector<256x128xf32>
    %20 = tpu.matmul %17, %19, %cst_20 {dimension_numbers = #tpu.dot_dimension_numbers<[1], [0], [0], [1], [0, 0, 1, 1], [], []>} : vector<256x128xbf16>, vector<128x128xbf16>, vector<256x128xf32> -> vector<256x128xf32>
    %21 = arith.addf %14, %20 : vector<256x128xf32>
    %c0_21 = arith.constant 0 : index
    %c1_22 = arith.constant 1 : index
    %c0_23 = arith.constant 0 : index
    %c0_24 = arith.constant 0 : index
    %22 = vector.load %arg1[%c0_21, %c1_22, %c0_23, %c0_24] : memref<1x18x18x128xbf16, #tpu.memory_space<vmem>>, vector<1x16x16x128xbf16>
    %23 = vector.shape_cast %22 : vector<1x16x16x128xbf16> to vector<16x16x128xbf16>
    %24 = vector.shape_cast %23 : vector<16x16x128xbf16> to vector<256x128xbf16>
    %c3 = arith.constant 3 : index
    %c0_25 = arith.constant 0 : index
    %c0_26 = arith.constant 0 : index
    %25 = vector.load %arg2[%c3, %c0_25, %c0_26] : memref<9x128x128xbf16, #tpu.memory_space<vmem>>, vector<1x128x128xbf16>
    %26 = vector.shape_cast %25 : vector<1x128x128xbf16> to vector<128x128xbf16>
    %cst_27 = arith.constant dense<0.000000e+00> : vector<256x128xf32>
    %27 = tpu.matmul %24, %26, %cst_27 {dimension_numbers = #tpu.dot_dimension_numbers<[1], [0], [0], [1], [0, 0, 1, 1], [], []>} : vector<256x128xbf16>, vector<128x128xbf16>, vector<256x128xf32> -> vector<256x128xf32>
    %28 = arith.addf %21, %27 : vector<256x128xf32>
    %c0_28 = arith.constant 0 : index
    %c1_29 = arith.constant 1 : index
    %c1_30 = arith.constant 1 : index
    %c0_31 = arith.constant 0 : index
    %29 = vector.load %arg1[%c0_28, %c1_29, %c1_30, %c0_31] : memref<1x18x18x128xbf16, #tpu.memory_space<vmem>>, vector<1x16x16x128xbf16>
    %30 = vector.shape_cast %29 : vector<1x16x16x128xbf16> to vector<16x16x128xbf16>
    %31 = vector.shape_cast %30 : vector<16x16x128xbf16> to vector<256x128xbf16>
    %c4 = arith.constant 4 : index
    %c0_32 = arith.constant 0 : index
    %c0_33 = arith.constant 0 : index
    %32 = vector.load %arg2[%c4, %c0_32, %c0_33] : memref<9x128x128xbf16, #tpu.memory_space<vmem>>, vector<1x128x128xbf16>
    %33 = vector.shape_cast %32 : vector<1x128x128xbf16> to vector<128x128xbf16>
    %cst_34 = arith.constant dense<0.000000e+00> : vector<256x128xf32>
    %34 = tpu.matmul %31, %33, %cst_34 {dimension_numbers = #tpu.dot_dimension_numbers<[1], [0], [0], [1], [0, 0, 1, 1], [], []>} : vector<256x128xbf16>, vector<128x128xbf16>, vector<256x128xf32> -> vector<256x128xf32>
    %35 = arith.addf %28, %34 : vector<256x128xf32>
    %c0_35 = arith.constant 0 : index
    %c1_36 = arith.constant 1 : index
    %c2_37 = arith.constant 2 : index
    %c0_38 = arith.constant 0 : index
    %36 = vector.load %arg1[%c0_35, %c1_36, %c2_37, %c0_38] : memref<1x18x18x128xbf16, #tpu.memory_space<vmem>>, vector<1x16x16x128xbf16>
    %37 = vector.shape_cast %36 : vector<1x16x16x128xbf16> to vector<16x16x128xbf16>
    %38 = vector.shape_cast %37 : vector<16x16x128xbf16> to vector<256x128xbf16>
    %c5 = arith.constant 5 : index
    %c0_39 = arith.constant 0 : index
    %c0_40 = arith.constant 0 : index
    %39 = vector.load %arg2[%c5, %c0_39, %c0_40] : memref<9x128x128xbf16, #tpu.memory_space<vmem>>, vector<1x128x128xbf16>
    %40 = vector.shape_cast %39 : vector<1x128x128xbf16> to vector<128x128xbf16>
    %cst_41 = arith.constant dense<0.000000e+00> : vector<256x128xf32>
    %41 = tpu.matmul %38, %40, %cst_41 {dimension_numbers = #tpu.dot_dimension_numbers<[1], [0], [0], [1], [0, 0, 1, 1], [], []>} : vector<256x128xbf16>, vector<128x128xbf16>, vector<256x128xf32> -> vector<256x128xf32>
    %42 = arith.addf %35, %41 : vector<256x128xf32>
    %c0_42 = arith.constant 0 : index
    %c2_43 = arith.constant 2 : index
    %c0_44 = arith.constant 0 : index
    %c0_45 = arith.constant 0 : index
    %43 = vector.load %arg1[%c0_42, %c2_43, %c0_44, %c0_45] : memref<1x18x18x128xbf16, #tpu.memory_space<vmem>>, vector<1x16x16x128xbf16>
    %44 = vector.shape_cast %43 : vector<1x16x16x128xbf16> to vector<16x16x128xbf16>
    %45 = vector.shape_cast %44 : vector<16x16x128xbf16> to vector<256x128xbf16>
    %c6 = arith.constant 6 : index
    %c0_46 = arith.constant 0 : index
    %c0_47 = arith.constant 0 : index
    %46 = vector.load %arg2[%c6, %c0_46, %c0_47] : memref<9x128x128xbf16, #tpu.memory_space<vmem>>, vector<1x128x128xbf16>
    %47 = vector.shape_cast %46 : vector<1x128x128xbf16> to vector<128x128xbf16>
    %cst_48 = arith.constant dense<0.000000e+00> : vector<256x128xf32>
    %48 = tpu.matmul %45, %47, %cst_48 {dimension_numbers = #tpu.dot_dimension_numbers<[1], [0], [0], [1], [0, 0, 1, 1], [], []>} : vector<256x128xbf16>, vector<128x128xbf16>, vector<256x128xf32> -> vector<256x128xf32>
    %49 = arith.addf %42, %48 : vector<256x128xf32>
    %c0_49 = arith.constant 0 : index
    %c2_50 = arith.constant 2 : index
    %c1_51 = arith.constant 1 : index
    %c0_52 = arith.constant 0 : index
    %50 = vector.load %arg1[%c0_49, %c2_50, %c1_51, %c0_52] : memref<1x18x18x128xbf16, #tpu.memory_space<vmem>>, vector<1x16x16x128xbf16>
    %51 = vector.shape_cast %50 : vector<1x16x16x128xbf16> to vector<16x16x128xbf16>
    %52 = vector.shape_cast %51 : vector<16x16x128xbf16> to vector<256x128xbf16>
    %c7 = arith.constant 7 : index
    %c0_53 = arith.constant 0 : index
    %c0_54 = arith.constant 0 : index
    %53 = vector.load %arg2[%c7, %c0_53, %c0_54] : memref<9x128x128xbf16, #tpu.memory_space<vmem>>, vector<1x128x128xbf16>
    %54 = vector.shape_cast %53 : vector<1x128x128xbf16> to vector<128x128xbf16>
    %cst_55 = arith.constant dense<0.000000e+00> : vector<256x128xf32>
    %55 = tpu.matmul %52, %54, %cst_55 {dimension_numbers = #tpu.dot_dimension_numbers<[1], [0], [0], [1], [0, 0, 1, 1], [], []>} : vector<256x128xbf16>, vector<128x128xbf16>, vector<256x128xf32> -> vector<256x128xf32>
    %56 = arith.addf %49, %55 : vector<256x128xf32>
    %c0_56 = arith.constant 0 : index
    %c2_57 = arith.constant 2 : index
    %c2_58 = arith.constant 2 : index
    %c0_59 = arith.constant 0 : index
    %57 = vector.load %arg1[%c0_56, %c2_57, %c2_58, %c0_59] : memref<1x18x18x128xbf16, #tpu.memory_space<vmem>>, vector<1x16x16x128xbf16>
    %58 = vector.shape_cast %57 : vector<1x16x16x128xbf16> to vector<16x16x128xbf16>
    %59 = vector.shape_cast %58 : vector<16x16x128xbf16> to vector<256x128xbf16>
    %c8 = arith.constant 8 : index
    %c0_60 = arith.constant 0 : index
    %c0_61 = arith.constant 0 : index
    %60 = vector.load %arg2[%c8, %c0_60, %c0_61] : memref<9x128x128xbf16, #tpu.memory_space<vmem>>, vector<1x128x128xbf16>
    %61 = vector.shape_cast %60 : vector<1x128x128xbf16> to vector<128x128xbf16>
    %cst_62 = arith.constant dense<0.000000e+00> : vector<256x128xf32>
    %62 = tpu.matmul %59, %61, %cst_62 {dimension_numbers = #tpu.dot_dimension_numbers<[1], [0], [0], [1], [0, 0, 1, 1], [], []>} : vector<256x128xbf16>, vector<128x128xbf16>, vector<256x128xf32> -> vector<256x128xf32>
    %63 = arith.addf %56, %62 : vector<256x128xf32>
    %c0_63 = arith.constant 0 : index
    %c0_64 = arith.constant 0 : index
    %64 = vector.load %arg3[%c0_63, %c0_64] : memref<1x128xf32, #tpu.memory_space<vmem>>, vector<1x128xf32>
    %65 = vector.broadcast %64 : vector<1x128xf32> to vector<256x128xf32>
    %66 = arith.addf %63, %65 : vector<256x128xf32>
    %67 = arith.negf %66 : vector<256x128xf32>
    %68 = math.exp %67 : vector<256x128xf32>
    %cst_65 = arith.constant 1.000000e+00 : f32
    %69 = vector.broadcast %cst_65 : f32 to vector<256x128xf32>
    %70 = arith.addf %69, %68 : vector<256x128xf32>
    %71 = arith.divf %69, %70 : vector<256x128xf32>
    %72 = arith.mulf %66, %71 : vector<256x128xf32>
    %73 = vector.shape_cast %72 : vector<256x128xf32> to vector<1x16x16x128xf32>
    %c0_66 = arith.constant 0 : index
    %c0_67 = arith.constant 0 : index
    %c0_68 = arith.constant 0 : index
    %c0_69 = arith.constant 0 : index
    %74 = vector.load %arg4[%c0_66, %c0_67, %c0_68, %c0_69] : memref<1x16x16x128xf32, #tpu.memory_space<vmem>>, vector<1x16x16x128xf32>
    %75 = arith.addf %73, %74 : vector<1x16x16x128xf32>
    %c0_70 = arith.constant 0 : index
    %c0_71 = arith.constant 0 : index
    %c0_72 = arith.constant 0 : index
    %c0_73 = arith.constant 0 : index
    %76 = vector.load %arg5[%c0_70, %c0_71, %c0_72, %c0_73] : memref<1x16x16x128xf32, #tpu.memory_space<vmem>>, vector<1x16x16x128xf32>
    tpu.vector_store %arg5[%c0_70, %c0_71, %c0_72, %c0_73], %75 {strides = array<i32>} : memref<1x16x16x128xf32, #tpu.memory_space<vmem>>, vector<1x16x16x128xf32>,
    return
  }
  func.func @transform_0(%arg0: i32) -> (i32, i32, i32, i32) {
    %c0_i32 = arith.constant 0 : i32
    %c0_i32_0 = arith.constant 0 : i32
    %c0_i32_1 = arith.constant 0 : i32
    %c0_i32_2 = arith.constant 0 : i32
    return %arg0, %c0_i32, %c0_i32_0, %c0_i32_1 : i32, i32, i32, i32
  }
  func.func @transform_1(%arg0: i32) -> (i32, i32, i32) {
    %c0_i32 = arith.constant 0 : i32
    %c0_i32_0 = arith.constant 0 : i32
    %c0_i32_1 = arith.constant 0 : i32
    %c0_i32_2 = arith.constant 0 : i32
    return %c0_i32, %c0_i32_0, %c0_i32_1 : i32, i32, i32
  }
  func.func @transform_2(%arg0: i32) -> (i32, i32) {
    %c0_i32 = arith.constant 0 : i32
    %c0_i32_0 = arith.constant 0 : i32
    %c0_i32_1 = arith.constant 0 : i32
    return %c0_i32, %c0_i32_0 : i32, i32
  }
  func.func @transform_3(%arg0: i32) -> (i32, i32, i32, i32) {
    %c0_i32 = arith.constant 0 : i32
    %c0_i32_0 = arith.constant 0 : i32
    %c0_i32_1 = arith.constant 0 : i32
    %c0_i32_2 = arith.constant 0 : i32
    return %arg0, %c0_i32, %c0_i32_0, %c0_i32_1 : i32, i32, i32, i32
  }
  func.func @transform_4(%arg0: i32) -> (i32, i32, i32, i32) {
    %c0_i32 = arith.constant 0 : i32
    %c0_i32_0 = arith.constant 0 : i32
    %c0_i32_1 = arith.constant 0 : i32
    %c0_i32_2 = arith.constant 0 : i32
    return %arg0, %c0_i32, %c0_i32_0, %c0_i32_1 : i32, i32, i32, i32
  }
}

</mosaic_0001>

<bundles_post_ra>
// kernel: bottleneck_forward.2
= control target key start
LH: loop header
LB: loop body
LE: loop exit
PB: predicated region body
PF: predicated region fallthrough
CT: control target
= control target key end

     0   :  { %s1478_s12 = smov 0   ;;  %s1727_s0 = inlined_call_operand.vmem [shape: bf16[512,128], index: 0, kind: input, shape index: {}]   ;;  %s1728_s1 = inlined_call_operand.vmem [shape: bf16[128,128], index: 1, kind: input, shape index: {}]   ;;  %s1729_s2 = inlined_call_operand.vmem [shape: f32[1,128], index: 2, kind: input, shape index: {}]   ;;  %s1730_s3 = inlined_call_operand.vmem [shape: bf16[512,128], index: 3, kind: output, shape index: {}]  }
   0x1 LB: > { %s975_s13 = sadd.s32 4294967295, %s1456_s12   ;;  %p979_p0 = scmp.ge.s32.totalorder %s1456_s12, 1  ;;  %s1456_s12 = sphi %s1478_s12, %s13_s12  }
   0x2   : > { %p138_p1 = scmp.lt.s32.totalorder %s1456_s12, 3 }
   0x4   : > { %p139_p2 = pnand %p979_p0, %p138_p1 }
   0x5   : > { %s980_s16 = sshll.u32 (!%p139_p2), %s975_s13, 5 }
   0x6   : > { %142 = sbr.rel (%p139_p2) target bundleno = 323 (0x143), region = 32  ;;  %p163_p3 = scmp.lt.s32.totalorder (!%p139_p2), %s980_s16, 63 }
   0xb   : > { %v1298_v0 = vld [vmem:[%s1728_s1 + $0x38] sm:$0xff]   ;;  %v1299_v1 = vld [vmem:[%s1728_s1 + $0x30] sm:$0xff]   ;;  %s1732_s16 = smov (!%p163_p3, %s980_s16), 63  ;;  %v1300_v2 = vld [vmem:[%s1728_s1 + $0x28] sm:$0xff]  }
   0xc   : > { %1226 = vmatprep.subr.bf16.mxu0 %v1298_v0  ;;  %1274 = vmatprep.subr.bf16.mxu1 %v1298_v0  ;;  %s981_s21 = sshll.u32 %s1732_s16, 2  ;;  %v1301_v3 = vld [vmem:[%s1728_s1 + $0x20] sm:$0xff]   ;;  %v1302_v6 = vld [vmem:[%s1728_s1 + $0x18] sm:$0xff]   ;;  %v1303_v7 = vld [vmem:[%s1728_s1 + $0x10] sm:$0xff]  }
   0xd   : > { %1227 = vmatpush3.bf16.msra.mxu0 %v1298_v0  ;;  %1282 = vmatpush3.bf16.msra.mxu1 %v1298_v0  ;;  %s1503_s24 = scalar_lea.vmem %s1727_s0, %s981_s21  ;;  %v1304_v8 = vld [vmem:[%s1728_s1 + $0x8] sm:$0xff]   ;;  %v1305_v9 = vld [vmem:[%s1728_s1] sm:$0xff]   ;;  %s1662_s13 = scalar_lea.vmem %s1730_s3, %s981_s21 }
   0xe   : > { %1228 = vmatprep.subr.bf16.mxu0 %v1299_v1  ;;  %1275 = vmatprep.subr.bf16.mxu1 %v1299_v1  ;;  %v1306_v4 = vld [vmem:[%s1503_s24] sm:$0xff]   ;;  %v1308_v10 = vld [vmem:[%s1503_s24 + $0x8] sm:$0xff]   ;;  %v1310_v12 = vld [vmem:[%s1503_s24 + $0x10] sm:$0xff]  }
   0xf   : > { %v1307_v5 = vld [vmem:[%s1503_s24 + $0x40] sm:$0xff]   ;;  %1242 = vmatprep.mubr.bf16.mxu0 %v1306_v4  ;;  %v1309_v11 = vld [vmem:[%s1503_s24 + $0x48] sm:$0xff]   ;;  %v1311_v13 = vld [vmem:[%s1503_s24 + $0x50] sm:$0xff]  }
  0x10   : > { %1258 = vmatprep.mubr.bf16.mxu1 %v1307_v5  ;;  %v1312_v14 = vld [vmem:[%s1503_s24 + $0x18] sm:$0xff]   ;;  %v1314_v16 = vld [vmem:[%s1503_s24 + $0x20] sm:$0xff]   ;;  %v1316_v18 = vld [vmem:[%s1503_s24 + $0x28] sm:$0xff]  }
  0x11   : > { %1229 = vmatpush3.bf16.msra.mxu0 %v1299_v1  ;;  %1283 = vmatpush3.bf16.msra.mxu1 %v1299_v1  ;;  %v1313_v15 = vld [vmem:[%s1503_s24 + $0x58] sm:$0xff]   ;;  %v1315_v17 = vld [vmem:[%s1503_s24 + $0x60] sm:$0xff]   ;;  %v1317_v19 = vld [vmem:[%s1503_s24 + $0x68] sm:$0xff]  }
  0x12   : > { %1230 = vmatprep.subr.bf16.mxu0 %v1300_v2  ;;  %1276 = vmatprep.subr.bf16.mxu1 %v1300_v2  ;;  %v1318_v20 = vld [vmem:[%s1503_s24 + $0x30] sm:$0xff]   ;;  %v1320_v22 = vld [vmem:[%s1503_s24 + $0x38] sm:$0xff]   ;;  %v1539_v24 = vld [vmem:[%s1729_s2] ss:$0 sm:$0xff] }
  0x13   : > { %v1319_v21 = vld [vmem:[%s1503_s24 + $0x70] sm:$0xff]   ;;  %v1321_v23 = vld [vmem:[%s1503_s24 + $0x78] sm:$0xff]  }
  0x15   : > { %1231 = vmatpush3.bf16.msra.mxu0 %v1300_v2  ;;  %1284 = vmatpush3.bf16.msra.mxu1 %v1300_v2 }
  0x16   : > { %1232 = vmatprep.subr.bf16.mxu0 %v1301_v3  ;;  %1277 = vmatprep.subr.bf16.mxu1 %v1301_v3 }
  0x19   : > { %1233 = vmatpush3.bf16.msra.mxu0 %v1301_v3  ;;  %1285 = vmatpush3.bf16.msra.mxu1 %v1301_v3 }
  0x1a   : > { %1234 = vmatprep.subr.bf16.mxu0 %v1302_v6  ;;  %1278 = vmatprep.subr.bf16.mxu1 %v1302_v6 }
  0x1d   : > { %1235 = vmatpush3.bf16.msra.mxu0 %v1302_v6  ;;  %1286 = vmatpush3.bf16.msra.mxu1 %v1302_v6 }
  0x1e   : > { %1236 = vmatprep.subr.bf16.mxu0 %v1303_v7  ;;  %1279 = vmatprep.subr.bf16.mxu1 %v1303_v7 }
  0x21   : > { %1237 = vmatpush3.bf16.msra.mxu0 %v1303_v7  ;;  %1287 = vmatpush3.bf16.msra.mxu1 %v1303_v7 }
  0x22   : > { %1238 = vmatprep.subr.bf16.mxu0 %v1304_v8  ;;  %1280 = vmatprep.subr.bf16.mxu1 %v1304_v8 }
  0x25   : > { %1239 = vmatpush3.bf16.msra.mxu0 %v1304_v8  ;;  %1288 = vmatpush3.bf16.msra.mxu1 %v1304_v8 }
  0x26   : > { %1240 = vmatprep.subr.bf16.mxu0 %v1305_v9  ;;  %1281 = vmatprep.subr.bf16.mxu1 %v1305_v9 }
  0x29   : > { %1241 = vmatpush3.bf16.msra.mxu0 %v1305_v9  ;;  %1289 = vmatpush3.bf16.msra.mxu1 %v1305_v9 }
  0x2c   : > { %1243 = vmatmul.mubr.bf16.vlgmr.msra.gmra.mxu0 %v1308_v10  ;;  %1259 = vmatmul.mubr.bf16.vlgmr.msra.gmra.mxu1 %v1309_v11 }
  0x2d   : > { %1246 = vmatprep.mubr.bf16.mxu0 %v1310_v12  ;;  %1262 = vmatprep.mubr.bf16.mxu1 %v1311_v13 }
  0x34   : > { %1247 = vmatmul.mubr.bf16.gmra.mxu0 %v1312_v14  ;;  %1263 = vmatmul.mubr.bf16.gmra.mxu1 %v1313_v15 }
  0x35   : > { %1250 = vmatprep.mubr.bf16.mxu0 %v1314_v16  ;;  %1266 = vmatprep.mubr.bf16.mxu1 %v1315_v17 }
  0x3c   : > { %1251 = vmatmul.mubr.bf16.gmra.mxu0 %v1316_v18  ;;  %1267 = vmatmul.mubr.bf16.gmra.mxu1 %v1317_v19 }
  0x3d   : > { %1254 = vmatprep.mubr.bf16.mxu0 %v1318_v20  ;;  %1270 = vmatprep.mubr.bf16.mxu1 %v1319_v21 }
  0x44   : > { %1255 = vmatmul.mubr.bf16.gmra.mxu0 %v1320_v22  ;;  %1271 = vmatmul.mubr.bf16.gmra.mxu1 %v1321_v23 }
  0xec   : > { %v1244_v25 = vpop.f32.mrf.mxu0  ;;  %v1260_v26 = vpop.f32.mrf.mxu1 }
  0xed   : > { %v1542_v27 = vadd.f32 %v1244_v25, %v1539_v24  ;;  %v1545_v28 = vadd.f32 %v1260_v26, %v1539_v24 }
  0xee   : > { %v408_v29 = vpop.f32.mrf.mxu0  ;;  %v472_v30 = vpop.f32.mrf.mxu1 }
  0xef   : > { %v1011_v31 = vmul.f32 -1.442695, %v1542_v27  ;;  %v1027_v32 = vmul.f32 -1.442695, %v1545_v28  ;;  %v1550_v33 = vadd.f32 %v1539_v24, %v408_v29  ;;  %v1553_v34 = vadd.f32 %v1539_v24, %v472_v30 }
  0xf0   : > { %v1245_v35 = vpop.f32.mrf.mxu0  ;;  %v1261_v36 = vpop.f32.mrf.mxu1 }
  0xf1   : > { %1322 = vpow2.f32 %v1011_v31  ;;  %v1009_v37 = vmul.f32 -1.442695, %v1550_v33  ;;  %v1025_v38 = vmul.f32 -1.442695, %v1553_v34  ;;  %v1558_v39 = vadd.f32 %v1245_v35, %v1539_v24 }
  0xf2   : > { %1324 = vpow2.f32 %v1027_v32  ;;  %v1561_v40 = vadd.f32 %v1261_v36, %v1539_v24  ;;  %v411_v41 = vpop.f32.mrf.mxu0  ;;  %v475_v42 = vpop.f32.mrf.mxu1 }
  0xf3   : > { %1326 = vpow2.f32 %v1009_v37  ;;  %v1012_v43 = vmul.f32 -1.442695, %v1558_v39  ;;  %v1565_v44 = vadd.f32 %v1539_v24, %v411_v41  ;;  %v1568_v45 = vadd.f32 %v1539_v24, %v475_v42 }
  0xf4   : > { %1328 = vpow2.f32 %v1025_v38  ;;  %v1028_v46 = vmul.f32 -1.442695, %v1561_v40  ;;  %v1248_v47 = vpop.f32.mrf.mxu0  ;;  %v1264_v48 = vpop.f32.mrf.mxu1 }
  0xf5   : > { %1330 = vpow2.f32 %v1012_v43  ;;  %v1010_v49 = vmul.f32 -1.442695, %v1565_v44  ;;  %v1026_v50 = vmul.f32 -1.442695, %v1568_v45  ;;  %v1574_v51 = vadd.f32 %v1248_v47, %v1539_v24 }
  0xf6   : > { %1332 = vpow2.f32 %v1028_v46  ;;  %v1577_v52 = vadd.f32 %v1264_v48, %v1539_v24  ;;  %v424_v53 = vpop.f32.mrf.mxu0  ;;  %v488_v54 = vpop.f32.mrf.mxu1 }
  0xf7   : > { %1334 = vpow2.f32 %v1010_v49  ;;  %v1015_v55 = vmul.f32 -1.442695, %v1574_v51  ;;  %v1581_v56 = vadd.f32 %v1539_v24, %v424_v53  ;;  %v1584_v57 = vadd.f32 %v1539_v24, %v488_v54 }
  0xf8   : > { %1336 = vpow2.f32 %v1026_v50  ;;  %v1031_v58 = vmul.f32 -1.442695, %v1577_v52  ;;  %v1249_v59 = vpop.f32.mrf.mxu0  ;;  %v1265_v60 = vpop.f32.mrf.mxu1 }
  0xf9   : > { %1338 = vpow2.f32 %v1015_v55  ;;  %v1013_v61 = vmul.f32 -1.442695, %v1581_v56  ;;  %v1029_v62 = vmul.f32 -1.442695, %v1584_v57  ;;  %v1590_v63 = vadd.f32 %v1249_v59, %v1539_v24 }
  0xfa   : > { %1340 = vpow2.f32 %v1031_v58  ;;  %v1593_v0 = vadd.f32 %v1265_v60, %v1539_v24  ;;  %v427_v1 = vpop.f32.mrf.mxu0  ;;  %v491_v2 = vpop.f32.mrf.mxu1 }
  0xfb   : > { %1342 = vpow2.f32 %v1013_v61  ;;  %v1016_v3 = vmul.f32 -1.442695, %v1590_v63  ;;  %v1597_v4 = vadd.f32 %v1539_v24, %v427_v1  ;;  %v1600_v5 = vadd.f32 %v1539_v24, %v491_v2 }
  0xfc   : > { %1344 = vpow2.f32 %v1029_v62  ;;  %v1032_v6 = vmul.f32 -1.442695, %v1593_v0  ;;  %v1252_v7 = vpop.f32.mrf.mxu0  ;;  %v1268_v8 = vpop.f32.mrf.mxu1 }
  0xfd   : > { %1346 = vpow2.f32 %v1016_v3  ;;  %v1014_v9 = vmul.f32 -1.442695, %v1597_v4  ;;  %v1030_v10 = vmul.f32 -1.442695, %v1600_v5  ;;  %v1606_v41 = vadd.f32 %v1252_v7, %v1539_v24 }
  0xfe   : > { %v1323_v11 = vpop.eup %1322  ;;  %1348 = vpow2.f32 %v1032_v6  ;;  %v440_v12 = vpop.f32.mrf.mxu0  ;;  %v1609_v53 = vadd.f32 %v1268_v8, %v1539_v24 }
  0xff   : > { %v504_v13 = vpop.f32.mrf.mxu1  ;;  %v1325_v14 = vpop.eup %1324  ;;  %v633_v15 = vadd.f32 1.0, %v1323_v11  ;;  %1350 = vpow2.f32 %v1014_v9  ;;  %v1019_v59 = vmul.f32 -1.442695, %v1606_v41  ;;  %v1613_v60 = vadd.f32 %v1539_v24, %v440_v12 }
 0x100   : > { %v1327_v16 = vpop.eup %1326  ;;  %v649_v17 = vadd.f32 1.0, %v1325_v14  ;;  %1352 = vpow2.f32 %v1030_v10  ;;  %v1253_v18 = vpop.f32.mrf.mxu0  ;;  %v1616_v1 = vadd.f32 %v1539_v24, %v504_v13 }
 0x101   : > { %v1329_v19 = vpop.eup %1328  ;;  %1354 = vrcp.f32 %v633_v15  ;;  %v631_v20 = vadd.f32 1.0, %v1327_v16  ;;  %v1269_v21 = vpop.f32.mrf.mxu1  ;;  %v1619_v2 = vadd.f32 %v1253_v18, %v1539_v24 }
 0x102   : > { %v1331_v22 = vpop.eup %1330  ;;  %1356 = vrcp.f32 %v649_v17  ;;  %v647_v23 = vadd.f32 1.0, %v1329_v19  ;;  %v443_v31 = vpop.f32.mrf.mxu0  ;;  %v1622_v7 = vadd.f32 %v1269_v21, %v1539_v24  ;;  %v1035_v17 = vmul.f32 -1.442695, %v1609_v53 }
 0x103   : > { %v1333_v25 = vpop.eup %1332  ;;  %1358 = vrcp.f32 %v631_v20  ;;  %v634_v26 = vadd.f32 1.0, %v1331_v22  ;;  %v507_v36 = vpop.f32.mrf.mxu1  ;;  %v1625_v8 = vadd.f32 %v1539_v24, %v443_v31  ;;  %v1017_v20 = vmul.f32 -1.442695, %v1613_v60 }
 0x104   : > { %v1335_v29 = vpop.eup %1334  ;;  %1360 = vrcp.f32 %v647_v23  ;;  %v650_v30 = vadd.f32 1.0, %v1333_v25  ;;  %v1256_v48 = vpop.f32.mrf.mxu0  ;;  %v1628_v12 = vadd.f32 %v1539_v24, %v507_v36  ;;  %v1033_v22 = vmul.f32 -1.442695, %v1616_v1 }
 0x105   : > { %v1337_v32 = vpop.eup %1336  ;;  %1362 = vrcp.f32 %v634_v26  ;;  %v632_v35 = vadd.f32 1.0, %v1335_v29  ;;  %v1272_v54 = vpop.f32.mrf.mxu1  ;;  %v1631_v13 = vadd.f32 %v1256_v48, %v1539_v24  ;;  %v1020_v23 = vmul.f32 -1.442695, %v1619_v2 }
 0x106   : > { %v1339_v37 = vpop.eup %1338  ;;  %1364 = vrcp.f32 %v650_v30  ;;  %v648_v38 = vadd.f32 1.0, %v1337_v32  ;;  %v456_v9 = vpop.f32.mrf.mxu0  ;;  %v1635_v18 = vadd.f32 %v1272_v54, %v1539_v24  ;;  %v1036_v25 = vmul.f32 -1.442695, %v1622_v7 }
 0x107   : > { %v1341_v42 = vpop.eup %1340  ;;  %1366 = vrcp.f32 %v632_v35  ;;  %v637_v43 = vadd.f32 1.0, %v1339_v37  ;;  %v520_v14 = vpop.f32.mrf.mxu1  ;;  %v1018_v30 = vmul.f32 -1.442695, %v1625_v8  ;;  %v1034_v31 = vmul.f32 -1.442695, %v1628_v12 }
 0x108   : > { %v1343_v46 = vpop.eup %1342  ;;  %1368 = vrcp.f32 %v648_v38  ;;  %v653_v47 = vadd.f32 1.0, %v1341_v42  ;;  %v1257_v26 = vpop.f32.mrf.mxu0  ;;  %v1023_v32 = vmul.f32 -1.442695, %v1631_v13  ;;  %v1039_v37 = vmul.f32 -1.442695, %v1635_v18 }
 0x109   : > { %v1345_v49 = vpop.eup %1344  ;;  %1370 = vrcp.f32 %v637_v43  ;;  %v635_v50 = vadd.f32 1.0, %v1343_v46  ;;  %v1273_v35 = vpop.f32.mrf.mxu1  ;;  %v1646_v38 = vadd.f32 %v1539_v24, %v456_v9  ;;  %v1649_v42 = vadd.f32 %v1539_v24, %v520_v14 }
 0x10a   : > { %v1347_v55 = vpop.eup %1346  ;;  %1372 = vrcp.f32 %v653_v47  ;;  %v651_v58 = vadd.f32 1.0, %v1345_v49  ;;  %v1654_v48 = vadd.f32 %v1257_v26, %v1539_v24 }
 0x10b   : > { %v1349_v61 = vpop.eup %1348  ;;  %1374 = vrcp.f32 %v635_v50  ;;  %v638_v62 = vadd.f32 1.0, %v1347_v55 }
 0x10c   : > { %v1351_v3 = vpop.eup %1350  ;;  %1376 = vrcp.f32 %v651_v58  ;;  %v654_v6 = vadd.f32 1.0, %v1349_v61  ;;  %v523_v61 = vpop.f32.mrf.mxu1 }
 0x10d   : > { %v1353_v10 = vpop.eup %1352  ;;  %1378 = vrcp.f32 %v638_v62  ;;  %v636_v11 = vadd.f32 1.0, %v1351_v3 }
 0x10e   : > { %v1355_v15 = vpop.eup %1354  ;;  %1380 = vrcp.f32 %v654_v6  ;;  %v652_v16 = vadd.f32 1.0, %v1353_v10 }
 0x10f   : > { %v1357_v19 = vpop.eup %1356  ;;  %1382 = vrcp.f32 %v636_v11  ;;  %v729_v46 = vmul.f32 %v1355_v15, %v1542_v27  ;;  %v1666_v27 = vadd.f32 %v1273_v35, %v1539_v24  ;;  %v1680_v15 = vadd.f32 %v1539_v24, %v523_v61 }
 0x110   : > { %v1359_v21 = vpop.eup %1358  ;;  %1384 = vrcp.f32 %v652_v16  ;;  %v745_v50 = vmul.f32 %v1357_v19, %v1545_v28  ;;  %v1024_v16 = vmul.f32 -1.442695, %v1654_v48 }
 0x111   : > { %v1361_v29 = vpop.eup %1360  ;;  %1386 = vpow2.f32 %v1019_v59  ;;  %v727_v58 = vmul.f32 %v1359_v21, %v1550_v33  ;;  %v1021_v33 = vmul.f32 -1.442695, %v1646_v38  ;;  %v1040_v19 = vmul.f32 -1.442695, %v1666_v27 }
 0x112   : > { %v1363_v36 = vpop.eup %1362  ;;  %1388 = vpow2.f32 %v1035_v17  ;;  %v743_v3 = vmul.f32 %v1361_v29, %v1553_v34  ;;  %v1037_v34 = vmul.f32 -1.442695, %v1649_v42  ;;  %v1038_v29 = vmul.f32 -1.442695, %v1680_v15 }
 0x113   : > { %v1365_v43 = vpop.eup %1364  ;;  %v730_v47 = vmul.f32 %v1363_v36, %v1558_v39  ;;  %1390 = vpow2.f32 %v1017_v20  ;;  %v459_v39 = vpop.f32.mrf.mxu0 }
 0x114   : > { %v1367_v49 = vpop.eup %1366  ;;  %v746_v54 = vmul.f32 %v1365_v43, %v1561_v40  ;;  %1392 = vpow2.f32 %v1033_v22  ;;  %v1675_v11 = vadd.f32 %v1539_v24, %v459_v39 }
 0x115   : > { %v1369_v55 = vpop.eup %1368  ;;  %v1115_v59 = vpack.c.bf16 %v730_v47, %v729_v46  ;;  %v728_v28 = vmul.f32 %v1367_v49, %v1565_v44  ;;  %1394 = vpow2.f32 %v1020_v23 }
 0x116   : > { %v1371_v62 = vpop.eup %1370  ;;  %v1155_v6 = vpack.c.bf16 %v746_v54, %v745_v50  ;;  %v744_v40 = vmul.f32 %v1369_v55, %v1568_v45  ;;  %1396 = vpow2.f32 %v1036_v25  ;;  %v1022_v23 = vmul.f32 -1.442695, %v1675_v11 }
 0x117   : > { %v1373_v9 = vpop.eup %1372  ;;  %1187 = vst [vmem:[%s1662_s13 + $0x8] sm:$0xff] %v1115_v59   ;;  %v1110_v10 = vpack.c.bf16 %v728_v28, %v727_v58  ;;  %1398 = vpow2.f32 %v1018_v30  ;;  %v733_v21 = vmul.f32 %v1371_v62, %v1574_v51 }
 0x118   : > { %v1375_v44 = vpop.eup %1374  ;;  %1195 = vst [vmem:[%s1662_s13 + $0x48] sm:$0xff] %v1155_v6   ;;  %v1150_v14 = vpack.c.bf16 %v744_v40, %v743_v3  ;;  %1400 = vpow2.f32 %v1034_v31  ;;  %v749_v25 = vmul.f32 %v1373_v9, %v1577_v52 }
 0x119   : > { %v1377_v45 = vpop.eup %1376  ;;  %1111 = vst [vmem:[%s1662_s13] sm:$0xff] %v1110_v10   ;;  %1402 = vpow2.f32 %v1023_v32  ;;  %v731_v31 = vmul.f32 %v1375_v44, %v1581_v56 }
 0x11a   : > { %v1379_v17 = vpop.eup %1378  ;;  %1194 = vst [vmem:[%s1662_s13 + $0x40] sm:$0xff] %v1150_v14   ;;  %1404 = vpow2.f32 %v1039_v37  ;;  %v747_v35 = vmul.f32 %v1377_v45, %v1584_v57 }
 0x11b   : > { %v1381_v20 = vpop.eup %1380  ;;  %v734_v22 = vmul.f32 %v1379_v17, %v1590_v63  ;;  %1406 = vpow2.f32 %v1021_v33 }
 0x11c   : > { %v1383_v24 = vpop.eup %1382  ;;  %v750_v26 = vmul.f32 %v1381_v20, %v1593_v0  ;;  %1408 = vpow2.f32 %v1037_v34 }
 0x11d   : > { %v1385_v30 = vpop.eup %1384  ;;  %v1125_v32 = vpack.c.bf16 %v734_v22, %v733_v21  ;;  %v732_v51 = vmul.f32 %v1383_v24, %v1597_v4  ;;  %1410 = vpow2.f32 %v1024_v16 }
 0x11e   : > { %v1387_v63 = vpop.eup %1386  ;;  %v1165_v36 = vpack.c.bf16 %v750_v26, %v749_v25  ;;  %v748_v52 = vmul.f32 %v1385_v30, %v1600_v5  ;;  %1412 = vpow2.f32 %v1040_v19 }
 0x11f   : > { %v1389_v0 = vpop.eup %1388  ;;  %1189 = vst [vmem:[%s1662_s13 + $0x18] sm:$0xff] %v1125_v32   ;;  %v1120_v37 = vpack.c.bf16 %v732_v51, %v731_v31  ;;  %v641_v43 = vadd.f32 1.0, %v1387_v63  ;;  %1414 = vpow2.f32 %v1022_v23 }
 0x120   : > { %v1391_v46 = vpop.eup %1390  ;;  %1197 = vst [vmem:[%s1662_s13 + $0x58] sm:$0xff] %v1165_v36   ;;  %v1160_v56 = vpack.c.bf16 %v748_v52, %v747_v35  ;;  %v657_v47 = vadd.f32 1.0, %v1389_v0  ;;  %1416 = vpow2.f32 %v1038_v29 }
 0x121   : > { %v1393_v4 = vpop.eup %1392  ;;  %1188 = vst [vmem:[%s1662_s13 + $0x10] sm:$0xff] %v1120_v37   ;;  %1418 = vrcp.f32 %v641_v43  ;;  %v639_v49 = vadd.f32 1.0, %v1391_v46 }
 0x122   : > { %v1395_v57 = vpop.eup %1394  ;;  %1196 = vst [vmem:[%s1662_s13 + $0x50] sm:$0xff] %v1160_v56   ;;  %1420 = vrcp.f32 %v657_v47  ;;  %v655_v5 = vadd.f32 1.0, %v1393_v4 }
 0x123   : > { %v1397_v50 = vpop.eup %1396  ;;  %1422 = vrcp.f32 %v639_v49  ;;  %v642_v54 = vadd.f32 1.0, %v1395_v57 }
 0x124   : > { %v1399_v39 = vpop.eup %1398  ;;  %1424 = vrcp.f32 %v655_v5  ;;  %v658_v55 = vadd.f32 1.0, %v1397_v50 }
 0x125   : > { %v1401_v58 = vpop.eup %1400  ;;  %1426 = vrcp.f32 %v642_v54  ;;  %v640_v59 = vadd.f32 1.0, %v1399_v39 }
 0x126   : > { %v1403_v28 = vpop.eup %1402  ;;  %1428 = vrcp.f32 %v658_v55  ;;  %v656_v61 = vadd.f32 1.0, %v1401_v58 }
 0x127   : > { %v1405_v62 = vpop.eup %1404  ;;  %1430 = vrcp.f32 %v640_v59  ;;  %v645_v3 = vadd.f32 1.0, %v1403_v28 }
 0x128   : > { %v1407_v6 = vpop.eup %1406  ;;  %1432 = vrcp.f32 %v656_v61  ;;  %v661_v40 = vadd.f32 1.0, %v1405_v62 }
 0x129   : > { %v1409_v9 = vpop.eup %1408  ;;  %1434 = vrcp.f32 %v645_v3  ;;  %v643_v10 = vadd.f32 1.0, %v1407_v6 }
 0x12a   : > { %v1411_v33 = vpop.eup %1410  ;;  %1436 = vrcp.f32 %v661_v40  ;;  %v659_v44 = vadd.f32 1.0, %v1409_v9 }
 0x12b   : > { %v1413_v14 = vpop.eup %1412  ;;  %1438 = vrcp.f32 %v643_v10  ;;  %v646_v34 = vadd.f32 1.0, %v1411_v33 }
 0x12c   : > { %v1415_v45 = vpop.eup %1414  ;;  %1440 = vrcp.f32 %v659_v44  ;;  %v662_v16 = vadd.f32 1.0, %v1413_v14 }
 0x12d   : > { %v1417_v17 = vpop.eup %1416  ;;  %1442 = vrcp.f32 %v646_v34  ;;  %v644_v19 = vadd.f32 1.0, %v1415_v45 }
 0x12e   : > { %v1419_v20 = vpop.eup %1418  ;;  %1444 = vrcp.f32 %v662_v16  ;;  %v660_v21 = vadd.f32 1.0, %v1417_v17 }
 0x12f   : > { %v1421_v22 = vpop.eup %1420  ;;  %1446 = vrcp.f32 %v644_v19  ;;  %v737_v29 = vmul.f32 %v1419_v20, %v1606_v41 }
 0x130   : > { %v1423_v23 = vpop.eup %1422  ;;  %1448 = vrcp.f32 %v660_v21  ;;  %v753_v32 = vmul.f32 %v1421_v22, %v1609_v53 }
 0x131   : > { %v1425_v24 = vpop.eup %1424  ;;  %v735_v35 = vmul.f32 %v1423_v23, %v1613_v60 }
 0x132   : > { %v1427_v25 = vpop.eup %1426  ;;  %v751_v37 = vmul.f32 %v1425_v24, %v1616_v1 }
 0x133   : > { %v1429_v26 = vpop.eup %1428  ;;  %v738_v30 = vmul.f32 %v1427_v25, %v1619_v2 }
 0x134   : > { %v1431_v31 = vpop.eup %1430  ;;  %v754_v51 = vmul.f32 %v1429_v26, %v1622_v7 }
 0x135   : > { %v1433_v63 = vpop.eup %1432  ;;  %v1135_v36 = vpack.c.bf16 %v738_v30, %v737_v29  ;;  %v736_v52 = vmul.f32 %v1431_v31, %v1625_v8 }
 0x136   : > { %v1435_v0 = vpop.eup %1434  ;;  %v1175_v41 = vpack.c.bf16 %v754_v51, %v753_v32  ;;  %v752_v2 = vmul.f32 %v1433_v63, %v1628_v12 }
 0x137   : > { %v1437_v43 = vpop.eup %1436  ;;  %1191 = vst [vmem:[%s1662_s13 + $0x28] sm:$0xff] %v1135_v36   ;;  %v1130_v46 = vpack.c.bf16 %v736_v52, %v735_v35  ;;  %v741_v8 = vmul.f32 %v1435_v0, %v1631_v13 }
 0x138   : > { %v1439_v53 = vpop.eup %1438  ;;  %1199 = vst [vmem:[%s1662_s13 + $0x68] sm:$0xff] %v1175_v41   ;;  %v1170_v7 = vpack.c.bf16 %v752_v2, %v751_v37  ;;  %v757_v4 = vmul.f32 %v1437_v43, %v1635_v18 }
 0x139   : > { %v1441_v56 = vpop.eup %1440  ;;  %1190 = vst [vmem:[%s1662_s13 + $0x20] sm:$0xff] %v1130_v46   ;;  %v739_v5 = vmul.f32 %v1439_v53, %v1646_v38 }
 0x13a   : > { %v1443_v60 = vpop.eup %1442  ;;  %1198 = vst [vmem:[%s1662_s13 + $0x60] sm:$0xff] %v1170_v7   ;;  %v755_v39 = vmul.f32 %v1441_v56, %v1649_v42 }
 0x13b   : > { %v1445_v47 = vpop.eup %1444  ;;  %v742_v1 = vmul.f32 %v1443_v60, %v1654_v48 }
 0x13c   : > { %v1447_v12 = vpop.eup %1446  ;;  %v758_v49 = vmul.f32 %v1445_v47, %v1666_v27 }
 0x13d   : > { %v1449_v57 = vpop.eup %1448  ;;  %v1145_v50 = vpack.c.bf16 %v742_v1, %v741_v8  ;;  %v740_v54 = vmul.f32 %v1447_v12, %v1675_v11 }
 0x13e   : > { %v1185_v55 = vpack.c.bf16 %v758_v49, %v757_v4  ;;  %v756_v13 = vmul.f32 %v1449_v57, %v1680_v15 }
 0x13f   : > { %1193 = vst [vmem:[%s1662_s13 + $0x38] sm:$0xff] %v1145_v50   ;;  %v1140_v58 = vpack.c.bf16 %v740_v54, %v739_v5 }
 0x140   : > { %1201 = vst [vmem:[%s1662_s13 + $0x78] sm:$0xff] %v1185_v55   ;;  %v1180_v48 = vpack.c.bf16 %v756_v13, %v755_v39 }
 0x141   : > { %1192 = vst [vmem:[%s1662_s13 + $0x30] sm:$0xff] %v1140_v58  }
 0x142   : > { %1200 = vst [vmem:[%s1662_s13 + $0x70] sm:$0xff] %v1180_v48  }
 0x143 PF: > { %s13_s12 = sadd.s32 1, %s1456_s12  }
 0x144   : > { %p10_p4 = scmp.ge.s32.totalorder %s13_s12, 4  }
 0x146   :  { %12 = sbr.rel (!%p10_p4) target bundleno = 1 (0x1), region = 62 }

// kernel: bottleneck_forward.3
= control target key start
LH: loop header
LB: loop body
LE: loop exit
PB: predicated region body
PF: predicated region fallthrough
CT: control target
= control target key end

     0   :  { %s7048_s15 = smov 0   ;;  %s9948_s0 = inlined_call_operand.vmem [shape: bf16[2,18,18,128], index: 0, kind: input, shape index: {}]   ;;  %s9949_s1 = inlined_call_operand.vmem [shape: bf16[9,128,128], index: 1, kind: input, shape index: {}]   ;;  %s9950_s2 = inlined_call_operand.vmem [shape: f32[1,128], index: 2, kind: input, shape index: {}]   ;;  %s9951_s3 = inlined_call_operand.vmem [shape: f32[2,16,16,128], index: 3, kind: input, shape index: {}]   ;;  %s9952_s4 = inlined_call_operand.vmem [shape: f32[2,16,16,128], index: 4, kind: output, shape index: {}]  }
   0x1 LB: > { %s5454_s16 = sadd.s32 4294967295, %s7021_s15   ;;  %p5458_p0 = scmp.ge.s32.totalorder %s7021_s15, 1  ;;  %s7021_s15 = sphi %s7048_s15, %s14_s15  }
   0x2   : > { %p172_p1 = scmp.lt.s32.totalorder %s7021_s15, 3 }
   0x4   : > { %p173_p2 = pnand %p5458_p0, %p172_p1 }
   0x6   : > { %176 = sbr.rel (%p173_p2) target bundleno = 597 (0x255), region = 36 }
   0xb   : > { %v6758_v0 = vld [vmem:[%s9949_s1 + $0x78] sm:$0xff]   ;;  %p203_p3 = scmp.lt.s32.totalorder %s5454_s16, 1  ;;  %v6759_v1 = vld [vmem:[%s9949_s1 + $0x70] sm:$0xff]   ;;  %v6760_v2 = vld [vmem:[%s9949_s1 + $0x68] sm:$0xff]   ;;  %vm283_vm0 = vsmask.f32 3328 }
   0xc   : > { %6301 = vmatprep.subr.bf16.mxu0 %v6758_v0  ;;  %6733 = vmatprep.subr.bf16.mxu1 %v6758_v0  ;;  %v6761_v3 = vld [vmem:[%s9949_s1 + $0x60] sm:$0xff]   ;;  %vm284_vm1 = vsmask.f32 7440  ;;  %v6762_v17 = vld [vmem:[%s9949_s1 + $0x58] sm:$0xff]   ;;  %v6763_v33 = vld [vmem:[%s9949_s1 + $0x50] sm:$0xff]   ;;  %vm1313_vm3 = vcmask 1042432  }
   0xd   : > { %s10177_s16 = smov (!%p203_p3, %s5454_s16), 1  ;;  %6302 = vmatpush3.bf16.msra.mxu0 %v6758_v0  ;;  %6741 = vmatpush3.bf16.msra.mxu1 %v6758_v0  ;;  %vm7102_vm2 = vmor %vm283_vm0, %vm284_vm1  ;;  %v6764_v58 = vld [vmem:[%s9949_s1 + $0x48] sm:$0xff]   ;;  %vm1314_vm4 = vcmask 1046532  }
   0xe   : > { %6303 = vmatprep.subr.bf16.mxu0 %v6759_v1  ;;  %6734 = vmatprep.subr.bf16.mxu1 %v6759_v1  ;;  %s6749_s23 = smul.u32 216, %s10177_s16  ;;  %vm7413_vm5 = vmor %vm1313_vm3, %vm1314_vm4  ;;  %s6083_s28 = sshll.u32 %s10177_s16, 8 }
   0xf   : > { %s9744_s5 = scalar_lea.vmem %s9951_s3, %s6083_s28  ;;  %s9770_s8 = scalar_lea.vmem %s9952_s4, %s6083_s28 }
  0x10   : > { %s7071_s26 = scalar_lea.vmem %s9948_s0, %s6749_s23 }
  0x11   : > { %6304 = vmatpush3.bf16.msra.mxu0 %v6759_v1  ;;  %6742 = vmatpush3.bf16.msra.mxu1 %v6759_v1  ;;  %v7077_v4 = vld [vmem:[%s7071_s26] sm:$0xf]  ;;  %v7080_v5 = vld [vmem:[%s7071_s26 + $0x4] sm:$0xf]  ;;  %v7083_v6 = vld [vmem:[%s7071_s26 + $0x8] sm:$0x1] }
  0x12   : > { %6305 = vmatprep.subr.bf16.mxu0 %v6760_v2  ;;  %6735 = vmatprep.subr.bf16.mxu1 %v6760_v2  ;;  %v287_v7 = vshrl.u32 %v7077_v4, 16  ;;  %v290_v8 = vshll.u32 %v7077_v4, 16  ;;  %v296_v9 = vshll.u32 %v7080_v5, 16  ;;  %v300_v10 = vshrl.u32 %v7080_v5, 16  ;;  %v235_v12 = vld [vmem:[%s7071_s26 + $0x60] sm:$0xf] }
  0x13   : > { %v306_v11 = vshll.u32 %v7083_v6, 16  ;;  %v236_v15 = vld [vmem:[%s7071_s26 + $0x64] sm:$0xf]  ;;  %v275_v16 = vld [vmem:[%s7071_s26 + $0x68] sm:$0x1]  ;;  %v479_v21 = vshrl.u32 %v235_v12, 16 }
  0x14   : > { %v289_v13 = vrot.slane %v287_v7, 4  ;;  %v292_v14 = vrot.slane %v290_v8, 5  ;;  %v298_v18 = vrot.slane %v296_v9, 5  ;;  %v302_v19 = vrot.slane %v300_v10, 4  ;;  %v7098_v26 = vld [vmem:[%s7071_s26 + $0xc] sm:$0xf] }
  0x15   : > { %6306 = vmatpush3.bf16.msra.mxu0 %v6760_v2  ;;  %6743 = vmatpush3.bf16.msra.mxu1 %v6760_v2  ;;  %v482_v23 = vshll.u32 %v235_v12, 16  ;;  %v488_v24 = vshll.u32 %v236_v15, 16  ;;  %v492_v25 = vshrl.u32 %v236_v15, 16  ;;  %v308_v29 = vrot.slane %v306_v11, 5  ;;  %v7107_v32 = vld [vmem:[%s7071_s26 + $0x10] sm:$0xf] }
  0x16   : > { %6307 = vmatprep.subr.bf16.mxu0 %v6761_v3  ;;  %6736 = vmatprep.subr.bf16.mxu1 %v6761_v3  ;;  %v293_v22 = vor.u32 %v292_v14, %v289_v13  ;;  %v303_v28 = vor.u32 %v302_v19, %v298_v18  ;;  %v481_v30 = vrot.slane %v479_v21, 4  ;;  %v498_v31 = vshll.u32 %v275_v16, 16  ;;  %v7113_v40 = vld [vmem:[%s7071_s26 + $0x14] sm:$0x1]  ;;  %v237_v47 = vld [vmem:[%s7071_s26 + $0x6c] sm:$0xf] }
  0x17   : > { %v484_v35 = vrot.slane %v482_v23, 5  ;;  %v490_v36 = vrot.slane %v488_v24, 5  ;;  %v494_v37 = vrot.slane %v492_v25, 4  ;;  %v311_v41 = vshrl.u32 %v7098_v26, 16  ;;  %v238_v52 = vld [vmem:[%s7071_s26 + $0x70] sm:$0xf] }
  0x18   : > { %v294_v34 = vrot.slane %v293_v22, 4  ;;  %v304_v38 = vrot.slane %v303_v28, 4  ;;  %v500_v39 = vrot.slane %v498_v31, 5  ;;  %v314_v42 = vshll.u32 %v7098_v26, 16  ;;  %v276_v57 = vld [vmem:[%s7071_s26 + $0x74] sm:$0x1] }
  0x19   : > { %6308 = vmatpush3.bf16.msra.mxu0 %v6761_v3  ;;  %6744 = vmatpush3.bf16.msra.mxu1 %v6761_v3  ;;  %v485_v44 = vor.u32 %v484_v35, %v481_v30  ;;  %v495_v45 = vor.u32 %v494_v37, %v490_v36  ;;  %v320_v46 = vshll.u32 %v7107_v32, 16  ;;  %v313_v49 = vrot.slane %v311_v41, 4  ;;  %v7136_v14 = vld [vmem:[%s7071_s26 + $0x18] sm:$0xf]  ;;  %v6765_v15 = vld [vmem:[%s9949_s1 + $0x40] sm:$0xff]  }
  0x1a   : > { %6309 = vmatprep.subr.bf16.mxu0 %v6762_v17  ;;  %6737 = vmatprep.subr.bf16.mxu1 %v6762_v17  ;;  %v299_v43 = vsel %vm7102_vm2, %v294_v34, %v298_v18  ;;  %v309_v48 = vsel %vm7102_vm2, %v304_v38, %v308_v29  ;;  %v316_v50 = vrot.slane %v314_v42, 5  ;;  %v324_v51 = vshrl.u32 %v7107_v32, 16  ;;  %v7144_v19 = vld [vmem:[%s7071_s26 + $0x1c] sm:$0xf]  ;;  %v7149_v25 = vld [vmem:[%s7071_s26 + $0x20] sm:$0x1] }
  0x1b   : > { %v5480_v53 = vcombine.low %v299_v43, %v309_v48  ;;  %v486_v54 = vrot.slane %v485_v44, 4  ;;  %v496_v55 = vrot.slane %v495_v45, 4  ;;  %v322_v56 = vrot.slane %v320_v46, 5  ;;  %v239_v34 = vld [vmem:[%s7071_s26 + $0x78] sm:$0xf] }
  0x1c   : > { %v317_v59 = vor.u32 %v316_v50, %v313_v49  ;;  %v326_v60 = vrot.slane %v324_v51, 4  ;;  %v330_v61 = vshll.u32 %v7113_v40, 16  ;;  %v503_v1 = vshrl.u32 %v237_v47, 16  ;;  %v6766_v41 = vld [vmem:[%s9949_s1 + $0x38] sm:$0xff]   ;;  %v277_v49 = vld [vmem:[%s7071_s26 + $0x80] sm:$0x1] }
  0x1d   : > { %6310 = vmatpush3.bf16.msra.mxu0 %v6762_v17  ;;  %6745 = vmatpush3.bf16.msra.mxu1 %v6762_v17  ;;  %v491_v63 = vsel %vm7102_vm2, %v486_v54, %v490_v36  ;;  %v501_v0 = vsel %vm7102_vm2, %v496_v55, %v500_v39  ;;  %v506_v2 = vshll.u32 %v237_v47, 16  ;;  %v512_v12 = vshll.u32 %v238_v52, 16  ;;  %v7158_v39 = vld [vmem:[%s7071_s26 + $0x7c] sm:$0xf] }
  0x1e   : > { %6311 = vmatprep.subr.bf16.mxu0 %v6763_v33  ;;  %6738 = vmatprep.subr.bf16.mxu1 %v6763_v33  ;;  %v5488_v3 = vcombine.low %v491_v63, %v501_v0  ;;  %v318_v7 = vrot.slane %v317_v59, 4  ;;  %v327_v8 = vor.u32 %v326_v60, %v322_v56  ;;  %v332_v9 = vrot.slane %v330_v61, 5  ;;  %v6767_v42 = vld [vmem:[%s9949_s1 + $0xb8] sm:$0xff]   ;;  %v6769_v59 = vld [vmem:[%s9949_s1 + $0xb0] sm:$0xff]   ;;  %v7185_v0 = vld [vmem:[%s7071_s26 + $0x28] sm:$0xf] }
  0x1f   : > { %6317 = vmatprep.mubr.bf16.mxu0 %v5480_v53  ;;  %v505_v10 = vrot.slane %v503_v1, 4  ;;  %v508_v11 = vrot.slane %v506_v2, 5  ;;  %v516_v13 = vshrl.u32 %v238_v52, 16  ;;  %v522_v18 = vshll.u32 %v276_v57, 16  ;;  %v6768_v52 = vld [vmem:[%s9949_s1 + $0x30] sm:$0xff]  }
  0x20   : > { %v323_v16 = vsel %vm7102_vm2, %v318_v7, %v322_v56  ;;  %v328_v17 = vrot.slane %v327_v8, 4  ;;  %6333 = vmatprep.mubr.bf16.mxu1 %v5488_v3  ;;  %v514_v23 = vrot.slane %v512_v12, 5  ;;  %v335_v28 = vshrl.u32 %v7136_v14, 16  ;;  %v7176_v57 = vld [vmem:[%s7071_s26 + $0x24] sm:$0xf] }
  0x21   : > { %6312 = vmatpush3.bf16.msra.mxu0 %v6763_v33  ;;  %6746 = vmatpush3.bf16.msra.mxu1 %v6763_v33  ;;  %v509_v22 = vor.u32 %v508_v11, %v505_v10  ;;  %v518_v24 = vrot.slane %v516_v13, 4  ;;  %v524_v30 = vrot.slane %v522_v18, 5  ;;  %v338_v31 = vshll.u32 %v7136_v14, 16  ;;  %v7188_v8 = vld [vmem:[%s7071_s26 + $0x2c] sm:$0x1] }
  0x22   : > { %6313 = vmatprep.subr.bf16.mxu0 %v6764_v58  ;;  %6739 = vmatprep.subr.bf16.mxu1 %v6764_v58  ;;  %v333_v29 = vsel %vm7102_vm2, %v328_v17, %v332_v9  ;;  %v344_v33 = vshll.u32 %v7144_v19, 16  ;;  %v337_v38 = vrot.slane %v335_v28, 4  ;;  %v348_v45 = vshrl.u32 %v7144_v19, 16  ;;  %v7192_v13 = vld [vmem:[%s7071_s26 + $0x84] sm:$0xf] }
  0x23   : > { %v5481_v35 = vcombine.low %v323_v16, %v333_v29  ;;  %v510_v36 = vrot.slane %v509_v22, 4  ;;  %v519_v37 = vor.u32 %v518_v24, %v514_v23  ;;  %v340_v43 = vrot.slane %v338_v31, 5  ;;  %v7199_v22 = vld [vmem:[%s7071_s26 + $0x88] sm:$0xf] }
  0x24   : > { %v346_v44 = vrot.slane %v344_v33, 5  ;;  %v354_v46 = vshll.u32 %v7149_v25, 16  ;;  %v527_v50 = vshrl.u32 %v239_v34, 16  ;;  %v530_v51 = vshll.u32 %v239_v34, 16 }
  0x25   : > { %6314 = vmatpush3.bf16.msra.mxu0 %v6764_v58  ;;  %6747 = vmatpush3.bf16.msra.mxu1 %v6764_v58  ;;  %v515_v47 = vsel %vm7102_vm2, %v510_v36, %v514_v23  ;;  %v520_v48 = vrot.slane %v519_v37, 4  ;;  %v341_v53 = vor.u32 %v340_v43, %v337_v38  ;;  %v350_v54 = vrot.slane %v348_v45, 4  ;;  %v7208_v36 = vld [vmem:[%s7071_s26 + $0x8c] sm:$0x1] }
  0x26   : > { %6315 = vmatprep.subr.bf16.mxu0 %v6765_v15  ;;  %6740 = vmatprep.subr.bf16.mxu1 %v6765_v15  ;;  %v356_v55 = vrot.slane %v354_v46, 5  ;;  %v536_v56 = vshll.u32 %v7158_v39, 16  ;;  %v529_v60 = vrot.slane %v527_v50, 4  ;;  %v532_v61 = vrot.slane %v530_v51, 5  ;;  %v6771_v37 = vld [vmem:[%s9949_s1 + $0xa8] sm:$0xff]  }
  0x27   : > { %v525_v58 = vsel %vm7102_vm2, %v520_v48, %v524_v30  ;;  %v540_v63 = vshrl.u32 %v7158_v39, 16  ;;  %v342_v2 = vrot.slane %v341_v53, 4  ;;  %v351_v3 = vor.u32 %v350_v54, %v346_v44  ;;  %v6770_v30 = vld [vmem:[%s9949_s1 + $0x28] sm:$0xff]   ;;  %v7223_v53 = vld [vmem:[%s7071_s26 + $0x30] sm:$0xf] }
  0x28   : > { %v5489_v1 = vcombine.low %v515_v47, %v525_v58  ;;  %v538_v7 = vrot.slane %v536_v56, 5  ;;  %v533_v9 = vor.u32 %v532_v61, %v529_v60  ;;  %v546_v11 = vshll.u32 %v277_v49, 16  ;;  %v7232_v60 = vld [vmem:[%s7071_s26 + $0x34] sm:$0xf] }
  0x29   : > { %6316 = vmatpush3.bf16.msra.mxu0 %v6765_v15  ;;  %6748 = vmatpush3.bf16.msra.mxu1 %v6765_v15  ;;  %v542_v10 = vrot.slane %v540_v63, 4  ;;  %v359_v12 = vshrl.u32 %v7176_v57, 16  ;;  %v347_v15 = vsel %vm7102_vm2, %v342_v2, %v346_v44  ;;  %v352_v16 = vrot.slane %v351_v3, 4 }
  0x2a   : > { %6349 = vmatprep.subr.bf16.mxu1 %v6766_v41  ;;  %6397 = vmatprep.subr.bf16.mxu0 %v6767_v42  ;;  %v362_v17 = vshll.u32 %v7176_v57, 16  ;;  %v368_v18 = vshll.u32 %v7185_v0, 16  ;;  %v534_v23 = vrot.slane %v533_v9, 4  ;;  %v548_v28 = vrot.slane %v546_v11, 5 }
  0x2b   : > { %v543_v24 = vor.u32 %v542_v10, %v538_v7  ;;  %v361_v29 = vrot.slane %v359_v12, 4  ;;  %v357_v31 = vsel %vm7102_vm2, %v352_v16, %v356_v55  ;;  %v378_v43 = vshll.u32 %v7188_v8, 16  ;;  %v7240_v16 = vld [vmem:[%s7071_s26 + $0x38] sm:$0x1] }
  0x2c   : > { %6318 = vmatmul.mubr.bf16.vlgmr.msra.gmra.mxu0 %v5481_v35  ;;  %6334 = vmatmul.mubr.bf16.vlgmr.msra.gmra.mxu1 %v5489_v1  ;;  %v364_v33 = vrot.slane %v362_v17, 5  ;;  %v370_v34 = vrot.slane %v368_v18, 5  ;;  %v372_v35 = vshrl.u32 %v7185_v0, 16  ;;  %v5482_v38 = vcombine.low %v347_v15, %v357_v31  ;;  %v7244_v18 = vld [vmem:[%s7071_s26 + $0x90] sm:$0xf] }
  0x2d   : > { %6350 = vmatpush3.bf16.msra.mxu1 %v6766_v41  ;;  %6398 = vmatpush3.bf16.msra.mxu0 %v6767_v42  ;;  %v539_v41 = vsel %vm7102_vm2, %v534_v23, %v538_v7  ;;  %v544_v42 = vrot.slane %v543_v24, 4  ;;  %v551_v46 = vshrl.u32 %v7192_v13, 16  ;;  %v554_v47 = vshll.u32 %v7192_v13, 16  ;;  %v7250_v31 = vld [vmem:[%s7071_s26 + $0x94] sm:$0xf] }
  0x2e   : > { %6351 = vmatprep.subr.bf16.mxu1 %v6768_v52  ;;  %6399 = vmatprep.subr.bf16.mxu0 %v6769_v59  ;;  %v365_v44 = vor.u32 %v364_v33, %v361_v29  ;;  %v374_v45 = vrot.slane %v372_v35, 4  ;;  %v380_v49 = vrot.slane %v378_v43, 5  ;;  %v560_v50 = vshll.u32 %v7199_v22, 16 }
  0x2f   : > { %v549_v48 = vsel %vm7102_vm2, %v544_v42, %v548_v28  ;;  %v564_v51 = vshrl.u32 %v7199_v22, 16  ;;  %6321 = vmatprep.mubr.bf16.mxu0 %v5482_v38  ;;  %v553_v58 = vrot.slane %v551_v46, 4  ;;  %v556_v61 = vrot.slane %v554_v47, 5  ;;  %v6775_v38 = vld [vmem:[%s9949_s1 + $0x98] sm:$0xff]   ;;  %v6776_v46 = vld [vmem:[%s9949_s1 + $0x10] sm:$0xff]  }
  0x30   : > { %v5490_v54 = vcombine.low %v539_v41, %v549_v48  ;;  %v366_v55 = vrot.slane %v365_v44, 4  ;;  %v375_v56 = vor.u32 %v374_v45, %v370_v34  ;;  %v562_v63 = vrot.slane %v560_v50, 5  ;;  %v7260_v44 = vld [vmem:[%s7071_s26 + $0x98] sm:$0x1] }
  0x31   : > { %6352 = vmatpush3.bf16.msra.mxu1 %v6768_v52  ;;  %6400 = vmatpush3.bf16.msra.mxu0 %v6769_v59  ;;  %v6772_v52 = vld [vmem:[%s9949_s1 + $0x20] sm:$0xff]   ;;  %v566_v1 = vrot.slane %v564_v51, 4  ;;  %v570_v2 = vshll.u32 %v7208_v36, 16  ;;  %v383_v9 = vshrl.u32 %v7223_v53, 16  ;;  %v386_v10 = vshll.u32 %v7223_v53, 16 }
  0x32   : > { %6353 = vmatprep.subr.bf16.mxu1 %v6770_v30  ;;  %v6773_v59 = vld [vmem:[%s9949_s1 + $0xa0] sm:$0xff]   ;;  %6401 = vmatprep.subr.bf16.mxu0 %v6771_v37  ;;  %v371_v3 = vsel %vm7102_vm2, %v366_v55, %v370_v34  ;;  %v376_v7 = vrot.slane %v375_v56, 4  ;;  %v557_v11 = vor.u32 %v556_v61, %v553_v58  ;;  %v392_v17 = vshll.u32 %v7232_v60, 16  ;;  %v7273_v51 = vld [vmem:[%s7071_s26 + $0x3c] sm:$0xf]  ;;  %v6777_v55 = vld [vmem:[%s9949_s1 + $0x90] sm:$0xff]  }
  0x33   : > { %6337 = vmatprep.mubr.bf16.mxu1 %v5490_v54  ;;  %v567_v12 = vor.u32 %v566_v1, %v562_v63  ;;  %v572_v15 = vrot.slane %v570_v2, 5  ;;  %v385_v24 = vrot.slane %v383_v9, 4  ;;  %v388_v28 = vrot.slane %v386_v10, 5  ;;  %v7276_v54 = vld [vmem:[%s7071_s26 + $0x40] sm:$0xf] }
  0x34   : > { %v381_v23 = vsel %vm7102_vm2, %v376_v7, %v380_v49  ;;  %v396_v29 = vshrl.u32 %v7232_v60, 16  ;;  %v558_v34 = vrot.slane %v557_v11, 4  ;;  %v402_v43 = vshll.u32 %v7240_v16, 16  ;;  %v7283_v7 = vld [vmem:[%s7071_s26 + $0x44] sm:$0x1] }
  0x35   : > { %6354 = vmatpush3.bf16.msra.mxu1 %v6770_v30  ;;  %6402 = vmatpush3.bf16.msra.mxu0 %v6771_v37  ;;  %v6774_v30 = vld [vmem:[%s9949_s1 + $0x18] sm:$0xff]   ;;  %v5483_v33 = vcombine.low %v371_v3, %v381_v23  ;;  %v568_v35 = vrot.slane %v567_v12, 4  ;;  %v394_v37 = vrot.slane %v392_v17, 5  ;;  %v389_v41 = vor.u32 %v388_v28, %v385_v24  ;;  %v7295_v28 = vld [vmem:[%s7071_s26 + $0xa0] sm:$0xf] }
  0x36   : > { %6355 = vmatprep.subr.bf16.mxu1 %v6772_v52  ;;  %6403 = vmatprep.subr.bf16.mxu0 %v6773_v59  ;;  %v398_v42 = vrot.slane %v396_v29, 4  ;;  %v575_v45 = vshrl.u32 %v7244_v18, 16  ;;  %v563_v47 = vsel %vm7102_vm2, %v558_v34, %v562_v63  ;;  %v578_v49 = vshll.u32 %v7244_v18, 16  ;;  %v7286_v9 = vld [vmem:[%s7071_s26 + $0x9c] sm:$0xf]  ;;  %v6778_v29 = vld [vmem:[%s9949_s1 + $0x8] sm:$0xff]  }
  0x37   : > { %6322 = vmatmul.mubr.bf16.gmra.mxu0 %v5483_v33  ;;  %v573_v48 = vsel %vm7102_vm2, %v568_v35, %v572_v15  ;;  %v584_v50 = vshll.u32 %v7250_v31, 16  ;;  %v390_v58 = vrot.slane %v389_v41, 4  ;;  %v404_v63 = vrot.slane %v402_v43, 5  ;;  %v6779_v41 = vld [vmem:[%s9949_s1 + $0x88] sm:$0xff]  }
  0x38   : > { %v5491_v56 = vcombine.low %v563_v47, %v573_v48  ;;  %v399_v61 = vor.u32 %v398_v42, %v394_v37  ;;  %v580_v1 = vrot.slane %v578_v49, 5  ;;  %v588_v3 = vshrl.u32 %v7250_v31, 16 }
  0x39   : > { %6356 = vmatpush3.bf16.msra.mxu1 %v6772_v52  ;;  %6404 = vmatpush3.bf16.msra.mxu0 %v6773_v59  ;;  %v577_v52 = vrot.slane %v575_v45, 4  ;;  %v586_v2 = vrot.slane %v584_v50, 5  ;;  %v395_v10 = vsel %vm7102_vm2, %v390_v58, %v394_v37  ;;  %v594_v11 = vshll.u32 %v7260_v44, 16 }
  0x3a   : > { %6357 = vmatprep.subr.bf16.mxu1 %v6774_v30  ;;  %6405 = vmatprep.subr.bf16.mxu0 %v6775_v38  ;;  %v400_v59 = vrot.slane %v399_v61, 4  ;;  %v407_v12 = vshrl.u32 %v7273_v51, 16  ;;  %v590_v17 = vrot.slane %v588_v3, 4  ;;  %v410_v23 = vshll.u32 %v7273_v51, 16  ;;  %v7311_v61 = vld [vmem:[%s7071_s26 + $0xa4] sm:$0x1] }
  0x3b   : > { %6338 = vmatmul.mubr.bf16.gmra.mxu1 %v5491_v56  ;;  %v581_v15 = vor.u32 %v580_v1, %v577_v52  ;;  %v416_v24 = vshll.u32 %v7276_v54, 16  ;;  %v596_v34 = vrot.slane %v594_v11, 5  ;;  %v420_v37 = vshrl.u32 %v7276_v54, 16 }
  0x3c   : > { %v405_v33 = vsel %vm7102_vm2, %v400_v59, %v404_v63  ;;  %v409_v35 = vrot.slane %v407_v12, 4  ;;  %v591_v43 = vor.u32 %v590_v17, %v586_v2  ;;  %v412_v45 = vrot.slane %v410_v23, 5  ;;  %v7316_v59 = vld [vmem:[%s7071_s26 + $0x48] sm:$0xf]  ;;  %v7325_v17 = vld [vmem:[%s7071_s26 + $0x4c] sm:$0xf] }
  0x3d   : > { %6358 = vmatpush3.bf16.msra.mxu1 %v6774_v30  ;;  %6406 = vmatpush3.bf16.msra.mxu0 %v6775_v38  ;;  %v5484_v42 = vcombine.low %v395_v10, %v405_v33  ;;  %v582_v30 = vrot.slane %v581_v15, 4  ;;  %v418_v47 = vrot.slane %v416_v24, 5  ;;  %v422_v48 = vrot.slane %v420_v37, 4 }
  0x3e   : > { %6359 = vmatprep.subr.bf16.mxu1 %v6776_v46  ;;  %6407 = vmatprep.subr.bf16.mxu0 %v6777_v55  ;;  %v426_v49 = vshll.u32 %v7283_v7, 16  ;;  %v599_v50 = vshrl.u32 %v7286_v9, 16  ;;  %v592_v56 = vrot.slane %v591_v43, 4  ;;  %v413_v58 = vor.u32 %v412_v45, %v409_v35 }
  0x3f   : > { %6325 = vmatprep.mubr.bf16.mxu0 %v5484_v42  ;;  %v587_v38 = vsel %vm7102_vm2, %v582_v30, %v586_v2  ;;  %v602_v63 = vshll.u32 %v7286_v9, 16  ;;  %v423_v52 = vor.u32 %v422_v48, %v418_v47  ;;  %v608_v10 = vshll.u32 %v7295_v28, 16  ;;  %v6780_v2 = vld [vmem:[%s9949_s1] sm:$0xff]   ;;  %v7334_v30 = vld [vmem:[%s7071_s26 + $0x50] sm:$0x1] }
  0x40   : > { %v428_v1 = vrot.slane %v426_v49, 5  ;;  %v601_v3 = vrot.slane %v599_v50, 4  ;;  %v597_v11 = vsel %vm7102_vm2, %v592_v56, %v596_v34  ;;  %v414_v12 = vrot.slane %v413_v58, 4 }
  0x41   : > { %6360 = vmatpush3.bf16.msra.mxu1 %v6776_v46  ;;  %6408 = vmatpush3.bf16.msra.mxu0 %v6777_v55  ;;  %v604_v15 = vrot.slane %v602_v63, 5  ;;  %v612_v46 = vshrl.u32 %v7295_v28, 16  ;;  %v6781_v55 = vld [vmem:[%s9949_s1 + $0x80] sm:$0xff]   ;;  %v5492_v23 = vcombine.low %v587_v38, %v597_v11  ;;  %v424_v24 = vrot.slane %v423_v52, 4  ;;  %v7342_v38 = vld [vmem:[%s7071_s26 + $0xa8] sm:$0xf] }
  0x42   : > { %6361 = vmatprep.subr.bf16.mxu1 %v6778_v29  ;;  %6409 = vmatprep.subr.bf16.mxu0 %v6779_v41  ;;  %v610_v33 = vrot.slane %v608_v10, 5  ;;  %v618_v35 = vshll.u32 %v7311_v61, 16  ;;  %v419_v34 = vsel %vm7102_vm2, %v414_v12, %v418_v47  ;;  %v431_v43 = vshrl.u32 %v7316_v59, 16  ;;  %9979 = vst [vmem:[#allocation2_spill] sm:$0xff] %v7342_v38  ;;  %v7347_v47 = vld [vmem:[%s9949_s1 + $0xf8] sm:$0xff]  }
  0x43   : > { %v605_v37 = vor.u32 %v604_v15, %v601_v3  ;;  %v614_v42 = vrot.slane %v612_v46, 4  ;;  %6341 = vmatprep.mubr.bf16.mxu1 %v5492_v23  ;;  %v429_v45 = vsel %vm7102_vm2, %v424_v24, %v428_v1  ;;  %v434_v49 = vshll.u32 %v7316_v59, 16  ;;  %v7350_v52 = vld [vmem:[%s7071_s26 + $0xac] sm:$0xf]  ;;  %v7355_v1 = vld [vmem:[%s9949_s1 + $0x138] sm:$0xff]  }
  0x44   : > { %v620_v48 = vrot.slane %v618_v35, 5  ;;  %v440_v50 = vshll.u32 %v7325_v17, 16  ;;  %v433_v63 = vrot.slane %v431_v43, 4  ;;  %v444_v10 = vshrl.u32 %v7325_v17, 16  ;;  %v7360_v12 = vld [vmem:[%s7071_s26 + $0xb0] sm:$0x1] }
  0x45   : > { %6362 = vmatpush3.bf16.msra.mxu1 %v6778_v29  ;;  %6410 = vmatpush3.bf16.msra.mxu0 %v6779_v41  ;;  %v5485_v29 = vcombine.low %v419_v34, %v429_v45  ;;  %v606_v56 = vrot.slane %v605_v37, 4  ;;  %v615_v58 = vor.u32 %v614_v42, %v610_v33  ;;  %v436_v41 = vrot.slane %v434_v49, 5  ;;  %9980 = vst [vmem:[#allocation3_spill] sm:$0xff] %v7360_v12  ;;  %v7363_v15 = vld [vmem:[%s7071_s26 + $0x54] sm:$0xf] }
  0x46   : > { %6363 = vmatprep.subr.bf16.mxu1 %v6780_v2  ;;  %6411 = vmatprep.subr.bf16.mxu0 %v6781_v55  ;;  %v442_v3 = vrot.slane %v440_v50, 5  ;;  %v450_v11 = vshll.u32 %v7334_v30, 16  ;;  %v623_v24 = vshrl.u32 %v7342_v38, 16  ;;  %v626_v35 = vshll.u32 %v7342_v38, 16  ;;  %v7370_v34 = vld [vmem:[%s7071_s26 + $0x58] sm:$0xf] }
  0x47   : > { %6326 = vmatmul.mubr.bf16.gmra.mxu0 %v5485_v29  ;;  %v611_v46 = vsel %vm7102_vm2, %v606_v56, %v610_v33  ;;  %v616_v23 = vrot.slane %v615_v58, 4  ;;  %v437_v37 = vor.u32 %v436_v41, %v433_v63  ;;  %v446_v42 = vrot.slane %v444_v10, 4 }
  0x48   : > { %v452_v43 = vrot.slane %v450_v11, 5  ;;  %v632_v45 = vshll.u32 %v7350_v52, 16  ;;  %v625_v49 = vrot.slane %v623_v24, 4  ;;  %v628_v50 = vrot.slane %v626_v35, 5 }
  0x49   : > { %6364 = vmatpush3.bf16.msra.mxu1 %v6780_v2  ;;  %6412 = vmatpush3.bf16.msra.mxu0 %v6781_v55  ;;  %v621_v33 = vsel %vm7102_vm2, %v616_v23, %v620_v48  ;;  %v636_v29 = vshrl.u32 %v7350_v52, 16  ;;  %v438_v56 = vrot.slane %v437_v37, 4  ;;  %v447_v58 = vor.u32 %v446_v42, %v442_v3  ;;  %v7379_v55 = vld [vmem:[%s7071_s26 + $0x5c] sm:$0x1]  ;;  %v7384_v48 = vld [vmem:[%s7071_s26 + $0xb4] sm:$0xf] }
  0x4a   : > { %6445 = vmatprep.subr.bf16.mxu1 %v7347_v47  ;;  %6493 = vmatprep.subr.bf16.mxu0 %v7355_v1  ;;  %v5493_v2 = vcombine.low %v611_v46, %v621_v33  ;;  %v634_v63 = vrot.slane %v632_v45, 5  ;;  %v629_v41 = vor.u32 %v628_v50, %v625_v49  ;;  %v642_v11 = vshll.u32 %v7360_v12, 16  ;;  %9981 = vst [vmem:[#allocation4_spill] sm:$0xff] %v7384_v48  ;;  %v7391_v37 = vld [vmem:[%s7071_s26 + $0xb8] sm:$0xf] }
  0x4b   : > { %v638_v10 = vrot.slane %v636_v29, 4  ;;  %v455_v21 = vshrl.u32 %v7363_v15, 16  ;;  %v443_v23 = vsel %vm7102_vm2, %v438_v56, %v442_v3  ;;  %v448_v24 = vrot.slane %v447_v58, 4  ;;  %9982 = vst [vmem:[#allocation5_spill] sm:$0xff] %v7391_v37  ;;  %v7397_v3 = vld [vmem:[%s7071_s26 + $0xbc] sm:$0x1] }
  0x4c   : > { %6342 = vmatmul.mubr.bf16.gmra.mxu1 %v5493_v2  ;;  %v458_v46 = vshll.u32 %v7363_v15, 16  ;;  %v464_v35 = vshll.u32 %v7370_v34, 16  ;;  %v630_v42 = vrot.slane %v629_v41, 4  ;;  %v644_v33 = vrot.slane %v642_v11, 5  ;;  %9983 = vst [vmem:[#allocation6_spill] sm:$0xff] %v7397_v3 }
  0x4d   : > { %v639_v45 = vor.u32 %v638_v10, %v634_v63  ;;  %v457_v49 = vrot.slane %v455_v21, 4  ;;  %v453_v50 = vsel %vm7102_vm2, %v448_v24, %v452_v43  ;;  %v468_v62 = vshrl.u32 %v7370_v34, 16  ;;  %v1265_v10 = vld [vmem:[%s7071_s26] sm:$0xe] }
  0x4e   : > { %v460_v29 = vrot.slane %v458_v46, 5  ;;  %v466_v2 = vrot.slane %v464_v35, 5  ;;  %v5486_v56 = vcombine.low %v443_v23, %v453_v50  ;;  %v635_v58 = vsel %vm7102_vm2, %v630_v42, %v634_v63 }
  0x4f   : > { %v640_v20 = vrot.slane %v639_v45, 4  ;;  %v474_v41 = vshll.u32 %v7379_v55, 16  ;;  %v470_v21 = vrot.slane %v468_v62, 4  ;;  %v647_v12 = vshrl.u32 %v7384_v48, 16 }
  0x50   : > { %v461_v11 = vor.u32 %v460_v29, %v457_v49  ;;  %v650_v43 = vshll.u32 %v7384_v48, 16  ;;  %6329 = vmatprep.mubr.bf16.mxu0 %v5486_v56  ;;  %v656_v46 = vshll.u32 %v7391_v37, 16  ;;  %v660_v63 = vshrl.u32 %v7391_v37, 16  ;;  %v1266_v49 = vld [vmem:[%s7071_s26 + $0xc] sm:$0xe] }
  0x51   : > { %v645_v24 = vsel %vm7102_vm2, %v640_v20, %v644_v33  ;;  %v476_v23 = vrot.slane %v474_v41, 5  ;;  %v471_v45 = vor.u32 %v470_v21, %v466_v2  ;;  %v649_v50 = vrot.slane %v647_v12, 4  ;;  %v1267_v20 = vld [vmem:[%s7071_s26 + $0x18] sm:$0xe] }
  0x52   : > { %v5494_v35 = vcombine.low %v635_v58, %v645_v24  ;;  %v462_v42 = vrot.slane %v461_v11, 4  ;;  %v652_v62 = vrot.slane %v650_v43, 5  ;;  %v658_v29 = vrot.slane %v656_v46, 5 }
  0x53   : > { %v662_v38 = vrot.slane %v660_v63, 4  ;;  %v666_v48 = vshll.u32 %v7397_v3, 16  ;;  %v472_v58 = vrot.slane %v471_v45, 4  ;;  %v5528_v41 = vrot.slane %v1265_v10, 9 }
  0x54   : > { %6345 = vmatprep.mubr.bf16.mxu1 %v5494_v35  ;;  %v467_v33 = vsel %vm7102_vm2, %v462_v42, %v466_v2  ;;  %v1318_v12 = vrot.slane %v7080_v5, 5  ;;  %v653_v11 = vor.u32 %v652_v62, %v649_v50  ;;  %v5529_v24 = vrot.slane %v1266_v49, 9 }
  0x55   : > { %v663_v21 = vor.u32 %v662_v38, %v658_v29  ;;  %v668_v43 = vrot.slane %v666_v48, 5  ;;  %v477_v46 = vsel %vm7102_vm2, %v472_v58, %v476_v23  ;;  %v1325_v35 = vrot.slane %v7107_v32, 5 }
  0x56   : > { %v1319_v63 = vsel %vm7413_vm5, %v5528_v41, %v1318_v12  ;;  %v1320_v3 = vrot.slane %v1318_v12, 4  ;;  %v5487_v37 = vcombine.low %v467_v33, %v477_v46  ;;  %v654_v2 = vrot.slane %v653_v11, 4  ;;  %v1269_v12 = vld [vmem:[%s7071_s26 + $0x30] sm:$0xe]  ;;  %v1271_v46 = vld [vmem:[%s7071_s26 + $0x48] sm:$0xe] }
  0x57   : > { %v664_v42 = vrot.slane %v663_v21, 4  ;;  %v5504_v10 = vcombine.low %v7077_v4, %v7080_v5  ;;  %v9986_v38 = vrot.slane %v7083_v6, 5  ;;  %v1327_v45 = vrot.slane %v1325_v35, 4 }
  0x58   : > { %v5530_v23 = vrot.slane %v1267_v20, 9  ;;  %6330 = vmatmul.mubr.bf16.gmra.mxu0 %v5487_v37  ;;  %v659_v50 = vsel %vm7102_vm2, %v654_v2, %v658_v29  ;;  %v1332_v33 = vrot.slane %v7144_v19, 5  ;;  %v1326_v4 = vsel %vm7413_vm5, %v5529_v24, %v1325_v35  ;;  %v1270_v24 = vld [vmem:[%s7071_s26 + $0x3c] sm:$0xe] }
  0x59   : > { %v1322_v48 = vsel %vm7413_vm5, %v1320_v3, %v9986_v38  ;;  %v669_v49 = vsel %vm7102_vm2, %v664_v42, %v668_v43  ;;  %v9987_v5 = vrot.slane %v7113_v40, 5  ;;  %v1335_v37 = vrot.slane %v7149_v25, 5  ;;  %v1268_v3 = vld [vmem:[%s7071_s26 + $0x24] sm:$0xe]  ;;  %v6789_v25 = vld [vmem:[%s9949_s1 + $0x130] sm:$0xff]  }
  0x5a   : > { %v5560_v62 = vcombine.low %v1319_v63, %v1322_v48  ;;  %v5495_v58 = vcombine.low %v659_v50, %v669_v49  ;;  %v1333_v29 = vsel %vm7413_vm5, %v5530_v23, %v1332_v33  ;;  %v1334_v20 = vrot.slane %v1332_v33, 4  ;;  %v6788_v23 = vld [vmem:[%s9949_s1 + $0xf0] sm:$0xff]  }
  0x5b   : > { %v1329_v6 = vsel %vm7413_vm5, %v1327_v45, %v9987_v5  ;;  %v1339_v41 = vrot.slane %v7185_v0, 5  ;;  %v5531_v21 = vrot.slane %v1268_v3, 9  ;;  %v1346_v43 = vrot.slane %v7232_v60, 5  ;;  %v7488_v3 = vld [vmem:[%s7071_s26 + $0x68] sm:$0x1] }
  0x5c   : > { %6413 = vmatprep.mubr.bf16.mxu0 %v5560_v62  ;;  %6346 = vmatmul.mubr.bf16.gmra.mxu1 %v5495_v58  ;;  %v5561_v11 = vcombine.low %v1326_v4, %v1329_v6  ;;  %v1336_v40 = vsel %vm7413_vm5, %v1334_v20, %v1335_v37  ;;  %v1342_v2 = vrot.slane %v7188_v8, 5  ;;  %v5532_v42 = vrot.slane %v1269_v12, 9  ;;  %v1272_v37 = vld [vmem:[%s7071_s26 + $0x54] sm:$0xe]  ;;  %v7512_v12 = vld [vmem:[%s7071_s26 + $0x60] sm:$0xe] }
  0x5d   : > { %6365 = vmatprep.mubr.bf16.mxu1 %v5504_v10  ;;  %v5562_v63 = vcombine.low %v1333_v29, %v1336_v40  ;;  %v1341_v35 = vrot.slane %v1339_v41, 4  ;;  %v1348_v38 = vrot.slane %v1346_v43, 4  ;;  %v1349_v10 = vrot.slane %v7240_v16, 5 }
  0x5e   : > { %v1353_v48 = vrot.slane %v7276_v54, 5  ;;  %v5506_v45 = vcombine.low %v7136_v14, %v7144_v19  ;;  %v1360_v50 = vrot.slane %v7325_v17, 5  ;;  %v5533_v49 = vrot.slane %v1270_v24, 9  ;;  %v6797_v24 = vld [vmem:[%s9949_s1 + $0x120] sm:$0xff]  }
  0x5f   : > { %v1356_v8 = vrot.slane %v7283_v7, 5  ;;  %v5534_v33 = vrot.slane %v1271_v46, 9  ;;  %v1340_v14 = vsel %vm7413_vm5, %v5531_v21, %v1339_v41  ;;  %v1343_v19 = vsel %vm7413_vm5, %v1341_v35, %v1342_v2  ;;  %v7524_v46 = vld [vmem:[%s7071_s26 + $0x78] sm:$0xe]  ;;  %v6796_v2 = vld [vmem:[%s9949_s1 + $0xe0] sm:$0xff]  }
  0x60   : > { %6414 = vmatmul.mubr.bf16.vlgmr.msra.gmra.mxu0 %v5561_v11  ;;  %v1355_v62 = vrot.slane %v1353_v48, 4  ;;  %v1362_v16 = vrot.slane %v1360_v50, 4  ;;  %v1363_v58 = vrot.slane %v7334_v30, 5  ;;  %v1347_v4 = vsel %vm7413_vm5, %v5532_v42, %v1346_v43  ;;  %v7515_v11 = vld [vmem:[%s7071_s26 + $0x6c] sm:$0xe] }
  0x61   : > { %6494 = vmatpush3.bf16.msra.mxu0 %v7355_v1  ;;  %6417 = vmatprep.mubr.bf16.mxu0 %v5562_v63  ;;  %v1350_v7 = vsel %vm7413_vm5, %v1348_v38, %v1349_v10  ;;  %v6793_v1 = vld [vmem:[%s9949_s1 + $0x128] sm:$0xff]   ;;  %v1367_v5 = vrot.slane %v7370_v34, 5  ;;  %v9988_v6 = vcombine.low %v7098_v26, %v7107_v32  ;;  %v5507_v30 = vcombine.low %v7176_v57, %v7185_v0  ;;  %v1276_v63 = vld [vmem:[%s7071_s26 + $0x84] sm:$0xe]  ;;  %v1277_v42 = vld [vmem:[%s7071_s26 + $0x90] sm:$0xe] }
  0x62   : > { %6495 = vmatprep.subr.bf16.mxu0 %v6789_v25  ;;  %v1377_v29 = vrot.slane %v7488_v3, 5  ;;  %v5563_v20 = vcombine.low %v1340_v14, %v1343_v19  ;;  %v7494_v41 = vsel %vm7413_vm5, %v5533_v49, %v1353_v48  ;;  %v7498_v26 = vsel %vm7413_vm5, %v1355_v62, %v1356_v8  ;;  %v6792_v32 = vld [vmem:[%s9949_s1 + $0xe8] sm:$0xff]   ;;  %v7543_v48 = vld [vmem:[%s7071_s26 + $0x64] sm:$0xf]  ;;  %v1278_v49 = vld [vmem:[%s7071_s26 + $0x9c] sm:$0xe] }
  0x63   : > { %v5564_v57 = vcombine.low %v1347_v4, %v1350_v7  ;;  %v7505_v0 = vsel %vm7413_vm5, %v5534_v33, %v1360_v50  ;;  %v5508_v40 = vcombine.low %v7223_v53, %v7232_v60  ;;  %v5535_v21 = vrot.slane %v1272_v37, 9  ;;  %v7565_v4 = vld [vmem:[%s7071_s26 + $0x74] sm:$0x1] }
  0x64   : > { %6366 = vmatmul.mubr.bf16.vlgmr.msra.gmra.mxu1 %v9988_v6  ;;  %v1370_v43 = vrot.slane %v7379_v55, 5  ;;  %v5509_v35 = vcombine.low %v7273_v51, %v7276_v54  ;;  %v5565_v53 = vcombine.low %v7494_v41, %v7498_v26  ;;  %v5510_v60 = vcombine.low %v7316_v59, %v7325_v17  ;;  %v7010_v54 = vld [vmem:[%s7071_s26 + $0x80] sm:$0x1] }
  0x65   : > { %6446 = vmatpush3.bf16.msra.mxu1 %v7347_v47  ;;  %6369 = vmatprep.mubr.bf16.mxu1 %v5506_v45  ;;  %v7509_v47 = vsel %vm7413_vm5, %v1362_v16, %v1363_v58  ;;  %v5511_v55 = vcombine.low %v7363_v15, %v7370_v34  ;;  %v5536_v10 = vrot.slane %v7512_v12, 9  ;;  %v1374_v45 = vrot.slane %v7543_v48, 5  ;;  %v7561_v16 = vld [vmem:[%s7071_s26 + $0x70] sm:$0xf]  ;;  %v7011_v17 = vld [vmem:[%s7071_s26 + $0x60] sm:$0xf] }
  0x66   : > { %6447 = vmatprep.subr.bf16.mxu1 %v6788_v23  ;;  %6496 = vmatpush3.bf16.msra.mxu0 %v6789_v25  ;;  %v1369_v25 = vrot.slane %v1367_v5, 4  ;;  %v5566_v38 = vcombine.low %v7505_v0, %v7509_v47  ;;  %v5537_v62 = vrot.slane %v7515_v11, 9  ;;  %v1395_v8 = vrot.slane %v7199_v22, 5  ;;  %v1279_v0 = vld [vmem:[%s7071_s26 + $0xa8] sm:$0xe]  ;;  %v7745_v15 = vld [vmem:[%s9949_s1 + $0x1b8] sm:$0xff]  }
  0x67   : > { %6497 = vmatprep.subr.bf16.mxu0 %v6793_v1  ;;  %v1398_v33 = vrot.slane %v7208_v36, 5  ;;  %v7554_v14 = vsel %vm7413_vm5, %v5535_v21, %v1367_v5  ;;  %v1381_v58 = vrot.slane %v7561_v16, 5  ;;  %v1384_v7 = vrot.slane %v7565_v4, 5  ;;  %v6800_v36 = vld [vmem:[%s9949_s1 + $0xd8] sm:$0xff]  }
  0x68   : > { %6418 = vmatmul.mubr.bf16.gmra.mxu0 %v5563_v20  ;;  %v7558_v19 = vsel %vm7413_vm5, %v1369_v25, %v1370_v43  ;;  %v5538_v5 = vrot.slane %v7524_v46, 9  ;;  %v1397_v37 = vrot.slane %v1395_v8, 4  ;;  %v5540_v41 = vrot.slane %v1277_v42, 9  ;;  %v5656_v42 = vld [vmem:[%s7071_s26 + $0xc] sm:$0xf] }
  0x69   : > { %6448 = vmatpush3.bf16.msra.mxu1 %v6788_v23  ;;  %6421 = vmatprep.mubr.bf16.mxu0 %v5564_v57  ;;  %v5539_v23 = vrot.slane %v1276_v63, 9  ;;  %v1402_v26 = vrot.slane %v7250_v31, 5  ;;  %v1405_v57 = vrot.slane %v7260_v44, 5  ;;  %v1388_v47 = vrot.slane %v7158_v39, 5 }
  0x6a   : > { %6449 = vmatprep.subr.bf16.mxu1 %v6792_v32  ;;  %6498 = vmatpush3.bf16.msra.mxu0 %v6793_v1  ;;  %v6801_v1 = vld [vmem:[%s9949_s1 + $0x118] sm:$0xff]   ;;  %v7589_v21 = vsel %vm7413_vm5, %v1397_v37, %v1398_v33  ;;  %v1409_v63 = vrot.slane %v7295_v28, 5  ;;  %v5542_v33 = vrot.slane %v1279_v0, 9  ;;  %v1416_v37 = vrot.slane %v7350_v52, 5  ;;  %v6804_v0 = vld [vmem:[%s9949_s1 + $0xd0] sm:$0xff]  }
  0x6b   : > { %6499 = vmatprep.subr.bf16.mxu0 %v6797_v24  ;;  %v7577_v6 = vsel %vm7413_vm5, %v5539_v23, %v1395_v8  ;;  %v7597_v44 = vsel %vm7413_vm5, %v5540_v41, %v1402_v26  ;;  %v1404_v43 = vrot.slane %v1402_v26, 4  ;;  %v6805_v23 = vld [vmem:[%s9949_s1 + $0x110] sm:$0xff]   ;;  %v1412_v8 = vrot.slane %v7311_v61, 5  ;;  %v9990_v61 = vld [vmem:[#allocation3_spill] sm:$0xff] }
  0x6c   : > { %6370 = vmatmul.mubr.bf16.gmra.mxu1 %v5507_v30  ;;  %v1376_v30 = vrot.slane %v1374_v45, 4  ;;  %v1411_v20 = vrot.slane %v1409_v63, 4  ;;  %v1419_v50 = vrot.slane %v9990_v61, 5  ;;  %v1375_v61 = vsel %vm7413_vm5, %v5536_v10, %v1374_v45  ;;  %v5659_v45 = vld [vmem:[%s7071_s26 + $0x18] sm:$0xf] }
  0x6d   : > { %6373 = vmatprep.mubr.bf16.mxu1 %v5508_v40  ;;  %6450 = vmatpush3.bf16.msra.mxu1 %v6792_v32  ;;  %v5541_v40 = vrot.slane %v1278_v49, 9  ;;  %v7609_v32 = vld [vmem:[%s7071_s26 + $0x10] sm:$0xf]  ;;  %v7613_v41 = vsel %vm7413_vm5, %v1404_v43, %v1405_v57  ;;  %v1418_v57 = vrot.slane %v1416_v37, 4  ;;  %v2186_v12 = vshrl.u32 %v5656_v42, 16 }
  0x6e   : > { %6451 = vmatprep.subr.bf16.mxu1 %v6796_v2  ;;  %6500 = vmatpush3.bf16.msra.mxu0 %v6797_v24  ;;  %v9989_v24 = vld [vmem:[#allocation2_spill] sm:$0xff]  ;;  %v9992_v43 = vld [vmem:[#allocation4_spill] sm:$0xff]  ;;  %v2189_v10 = vshll.u32 %v5656_v42, 16  ;;  %v1383_v51 = vrot.slane %v1381_v58, 4  ;;  %v2195_v59 = vshll.u32 %v7609_v32, 16  ;;  %v1389_v4 = vsel %vm7413_vm5, %v5538_v5, %v1388_v47 }
  0x6f   : > { %6501 = vmatprep.subr.bf16.mxu0 %v6801_v1  ;;  %v7617_v26 = vsel %vm7413_vm5, %v5541_v40, %v1409_v63  ;;  %v9991_v40 = vld [vmem:[#allocation5_spill] sm:$0xff]  ;;  %v7683_v42 = vld [vmem:[%s7071_s26 + $0x14] sm:$0x1]  ;;  %v2188_v63 = vrot.slane %v2186_v12, 4  ;;  %v9994_v5 = vld [vmem:[#allocation6_spill] sm:$0xff] }
  0x70   : > { %6422 = vmatmul.mubr.bf16.gmra.mxu0 %v5565_v53  ;;  %v2191_v49 = vrot.slane %v2189_v10, 5  ;;  %v5662_v53 = vld [vmem:[%s7071_s26 + $0x24] sm:$0xf]  ;;  %v1385_v11 = vsel %vm7413_vm5, %v1383_v51, %v1384_v7 }
  0x71   : > { %6452 = vmatpush3.bf16.msra.mxu1 %v6796_v2  ;;  %6425 = vmatprep.mubr.bf16.mxu0 %v5566_v38  ;;  %v7627_v2 = vsel %vm7413_vm5, %v5542_v33, %v1416_v37  ;;  %v5567_v38 = vcombine.low %v7554_v14, %v7558_v19  ;;  %v1378_v33 = vsel %vm7413_vm5, %v1376_v30, %v1377_v29  ;;  %v6809_v14 = vld [vmem:[%s9949_s1 + $0x108] sm:$0xff]   ;;  %v6813_v30 = vld [vmem:[%s9949_s1 + $0x100] sm:$0xff]   ;;  %v7702_v19 = vrot.slane %v2195_v59, 5 }
  0x72   : > { %6453 = vmatprep.subr.bf16.mxu1 %v6800_v36  ;;  %6502 = vmatpush3.bf16.msra.mxu0 %v6801_v1  ;;  %v7645_v37 = vsel %vm7413_vm5, %v1411_v20, %v1412_v8  ;;  %v7657_v29 = vsel %vm7413_vm5, %v1418_v57, %v1419_v50  ;;  %v6808_v50 = vld [vmem:[%s9949_s1 + $0xc8] sm:$0xff]   ;;  %v7672_v1 = vld [vmem:[%s7071_s26 + $0xb4] sm:$0xe]  ;;  %v5568_v20 = vcombine.low %v1375_v61, %v1378_v33  ;;  %v2199_v8 = vshrl.u32 %v7609_v32, 16  ;;  %v7700_v61 = vld [vmem:[%s7071_s26 + $0x1c] sm:$0xf] }
  0x73   : > { %6503 = vmatprep.subr.bf16.mxu0 %v6805_v23  ;;  %v7687_v57 = vld [vmem:[%s7071_s26 + $0x6c] sm:$0xf]  ;;  %v2210_v33 = vshrl.u32 %v5659_v45, 16  ;;  %v2219_v51 = vshll.u32 %v7700_v61, 16  ;;  %v2223_v39 = vshrl.u32 %v7700_v61, 16  ;;  %v2234_v59 = vshrl.u32 %v5662_v53, 16 }
  0x74   : > { %6374 = vmatmul.mubr.bf16.gmra.mxu1 %v5509_v35  ;;  %v1391_v35 = vrot.slane %v7010_v54, 5  ;;  %v5513_v54 = vcombine.low %v7687_v57, %v7561_v16  ;;  %v2201_v3 = vrot.slane %v2199_v8, 4  ;;  %v2237_v46 = vshll.u32 %v5662_v53, 16  ;;  %v7014_v8 = vld [vmem:[%s7071_s26 + $0x7c] sm:$0xf] }
  0x75   : > { %6377 = vmatprep.mubr.bf16.mxu1 %v5510_v60  ;;  %6454 = vmatpush3.bf16.msra.mxu1 %v6800_v36  ;;  %v5512_v60 = vcombine.low %v7011_v17, %v7543_v48  ;;  %v1390_v36 = vrot.slane %v1388_v47, 4  ;;  %v7697_v48 = vsel %vm7413_vm5, %v5537_v62, %v1381_v58  ;;  %v2213_v17 = vshll.u32 %v5659_v45, 16  ;;  %v6812_v58 = vld [vmem:[%s9949_s1 + $0xc0] sm:$0xff]   ;;  %v7727_v45 = vld [vmem:[%s7071_s26 + $0x28] sm:$0xf] }
  0x76   : > { %6455 = vmatprep.subr.bf16.mxu1 %v6804_v0  ;;  %6504 = vmatpush3.bf16.msra.mxu0 %v6805_v23  ;;  %v9962_v62 = vrot.slane %v9991_v40, 5  ;;  %v7714_v23 = vld [vmem:[%s7071_s26 + $0x20] sm:$0x1]  ;;  %v2212_v12 = vrot.slane %v2210_v33, 4  ;;  %9993 = vst [vmem:[#allocation2_spill] sm:$0xff] %v7727_v45  ;;  %v5569_v34 = vcombine.low %v7697_v48, %v1385_v11  ;;  %v2243_v53 = vshll.u32 %v7727_v45, 16 }
  0x77   : > { %6505 = vmatprep.subr.bf16.mxu0 %v6809_v14  ;;  %v2215_v10 = vrot.slane %v2213_v17, 5  ;;  %v1392_v7 = vsel %vm7413_vm5, %v1390_v36, %v1391_v35  ;;  %v2192_v35 = vor.u32 %v2191_v49, %v2188_v63  ;;  %v7740_v36 = vld [vmem:[%s9949_s1 + $0x178] sm:$0xff]   ;;  %v5665_v63 = vld [vmem:[%s7071_s26 + $0x30] sm:$0xf]  ;;  %v7761_v48 = vld [vmem:[%s7071_s26 + $0x34] sm:$0xf] }
  0x78   : > { %6426 = vmatmul.mubr.bf16.gmra.mxu0 %v5567_v38  ;;  %v2205_v38 = vshll.u32 %v7683_v42, 16  ;;  %v5570_v17 = vcombine.low %v1389_v4, %v1392_v7  ;;  %9996 = vst [vmem:[#allocation5_spill] sm:$0xff] %v7761_v48  ;;  %v7763_v11 = vrot.slane %v2219_v51, 5  ;;  %v2239_v47 = vrot.slane %v2237_v46, 5  ;;  %v7782_v46 = vld [vmem:[%s7071_s26 + $0x40] sm:$0xf] }
  0x79   : > { %6456 = vmatpush3.bf16.msra.mxu1 %v6804_v0  ;;  %6429 = vmatprep.mubr.bf16.mxu0 %v5568_v20  ;;  %v2202_v20 = vor.u32 %v2201_v3, %v7702_v19  ;;  %v2216_v49 = vor.u32 %v2215_v10, %v2212_v12  ;;  %v7013_v3 = vld [vmem:[%s7071_s26 + $0x78] sm:$0xf]  ;;  %v2225_v12 = vrot.slane %v2223_v39, 4  ;;  %v2236_v10 = vrot.slane %v2234_v59, 4  ;;  %9997 = vst [vmem:[#allocation4_spill] sm:$0xff] %v7782_v46 }
  0x7a   : > { %6457 = vmatprep.subr.bf16.mxu1 %v6808_v50  ;;  %6506 = vmatpush3.bf16.msra.mxu0 %v6809_v14  ;;  %v2229_v14 = vshll.u32 %v7714_v23, 16  ;;  %v5514_v33 = vcombine.low %v7013_v3, %v7014_v8  ;;  %v7754_v25 = vrot.slane %v2205_v38, 5  ;;  %v7766_v0 = vld [vmem:[%s7071_s26 + $0x38] sm:$0x1]  ;;  %v7768_v4 = vrot.slane %v2192_v35, 4 }
  0x7b   : > { %6507 = vmatprep.subr.bf16.mxu0 %v6813_v30  ;;  %v7770_v7 = vrot.slane %v2202_v20, 4  ;;  %v2258_v3 = vshrl.u32 %v5665_v63, 16  ;;  %v5668_v8 = vld [vmem:[%s7071_s26 + $0x3c] sm:$0xf]  ;;  %v7778_v51 = vrot.slane %v2243_v53, 5  ;;  %v2261_v39 = vshll.u32 %v5665_v63, 16 }
  0x7c   : > { %6378 = vmatmul.mubr.bf16.gmra.mxu1 %v5511_v55  ;;  %v1425_v55 = vrot.slane %v9962_v62, 4  ;;  %v7772_v38 = vrot.slane %v2229_v14, 5  ;;  %v2267_v59 = vshll.u32 %v7761_v48, 16  ;;  %v2271_v20 = vshrl.u32 %v7761_v48, 16 }
  0x7d   : > { %6381 = vmatprep.mubr.bf16.mxu1 %v5512_v60  ;;  %6458 = vmatpush3.bf16.msra.mxu1 %v6808_v50  ;;  %v7757_v60 = vld [vmem:[%s7071_s26 + $0x2c] sm:$0x1]  ;;  %v2247_v50 = vshrl.u32 %v7727_v45, 16  ;;  %v2226_v14 = vor.u32 %v2225_v12, %v7763_v11  ;;  %v2260_v53 = vrot.slane %v2258_v3, 4  ;;  %v2263_v63 = vrot.slane %v2261_v39, 5 }
  0x7e   : > { %6459 = vmatprep.subr.bf16.mxu1 %v6812_v58  ;;  %9995 = vst [vmem:[#allocation3_spill] sm:$0xff] %v7757_v60  ;;  %6508 = vmatpush3.bf16.msra.mxu0 %v6813_v30  ;;  %v7776_v30 = vrot.slane %v2216_v49, 4  ;;  %v2282_v49 = vshrl.u32 %v5668_v8, 16  ;;  %v2285_v62 = vshll.u32 %v5668_v8, 16  ;;  %v2273_v48 = vrot.slane %v2271_v20, 4 }
  0x7f   : > { %6589 = vmatprep.subr.bf16.mxu0 %v7745_v15  ;;  %v2249_v35 = vrot.slane %v2247_v50, 4  ;;  %v7792_v50 = vrot.slane %v2267_v59, 5  ;;  %v7795_v45 = vld [vmem:[%s7071_s26 + $0x44] sm:$0x1]  ;;  %v2295_v12 = vshrl.u32 %v7782_v46, 16  ;;  %v9998_v16 = vrot.slane %v9991_v40, 5 }
  0x80   : > { %6430 = vmatmul.mubr.bf16.gmra.mxu0 %v5569_v34  ;;  %v2253_v34 = vshll.u32 %v7757_v60, 16  ;;  %v9999_v57 = vrot.slane %v7672_v1, 9  ;;  %v7816_v39 = vld [vmem:[%s7071_s26 + $0x4c] sm:$0xf]  ;;  %v2284_v59 = vrot.slane %v2282_v49, 4  ;;  %v2287_v20 = vrot.slane %v2285_v62, 5 }
  0x81   : > { %6460 = vmatpush3.bf16.msra.mxu1 %v6812_v58  ;;  %6433 = vmatprep.mubr.bf16.mxu0 %v5570_v17  ;;  %v2240_v58 = vor.u32 %v2239_v47, %v2236_v10  ;;  %v2277_v17 = vshll.u32 %v7766_v0, 16  ;;  %v2291_v47 = vshll.u32 %v7782_v46, 16  ;;  %v5671_v10 = vld [vmem:[%s7071_s26 + $0x48] sm:$0xf]  ;;  %v2250_v8 = vor.u32 %v2249_v35, %v7778_v51 }
  0x82   : > { %6541 = vmatprep.subr.bf16.mxu1 %v7740_v36  ;;  %v2297_v1 = vrot.slane %v2295_v12, 4  ;;  %v7820_v46 = vrot.slane %v2226_v14, 4  ;;  %v2198_v62 = vsel %vm7102_vm2, %v7768_v4, %v7702_v19  ;;  %v2208_v35 = vsel %vm7102_vm2, %v7770_v7, %v7754_v25  ;;  %v5674_v4 = vld [vmem:[%s7071_s26 + $0x54] sm:$0xf] }
  0x83   : > { %v7818_v60 = vrot.slane %v2291_v47, 5  ;;  %v2309_v14 = vshll.u32 %v5671_v10, 16  ;;  %v2301_v49 = vshll.u32 %v7795_v45, 16  ;;  %v2319_v19 = vshrl.u32 %v7816_v39, 16 }
  0x84   : > { %6382 = vmatmul.mubr.bf16.gmra.mxu1 %v5513_v54  ;;  %v7806_v54 = vsel %vm7413_vm5, %v9999_v57, %v9998_v16  ;;  %v7822_v16 = vrot.slane %v2240_v58, 4  ;;  %v7824_v57 = vrot.slane %v2253_v34, 5  ;;  %v2315_v58 = vshll.u32 %v7816_v39, 16 }
  0x85   : > { %6385 = vmatprep.mubr.bf16.mxu1 %v5514_v33  ;;  %v10000_v33 = vrot.slane %v9994_v5, 5  ;;  %v2306_v5 = vshrl.u32 %v5671_v10, 16  ;;  %v10002_v34 = vcombine.low %v7597_v44, %v7613_v41  ;;  %v7845_v47 = vrot.slane %v2250_v8, 4  ;;  %v7851_v10 = vld [vmem:[%s7071_s26 + $0x58] sm:$0xf] }
  0x86   : > { %v7847_v12 = vrot.slane %v2277_v17, 5  ;;  %v2288_v25 = vor.u32 %v2287_v20, %v2284_v59  ;;  %v2298_v7 = vor.u32 %v2297_v1, %v7818_v60  ;;  %v10003_v44 = vcombine.low %v7192_v13, %v7199_v22  ;;  %v7857_v41 = vld [vmem:[%s7071_s26 + $0x50] sm:$0x1] }
  0x87   : > { %v7812_v3 = vsel %vm7413_vm5, %v1425_v55, %v10000_v33  ;;  %v10001_v55 = vcombine.low %v7577_v6, %v7589_v21  ;;  %v2264_v6 = vor.u32 %v2263_v63, %v2260_v53  ;;  %v2274_v21 = vor.u32 %v2273_v48, %v7792_v50 }
  0x88   : > { %v2308_v48 = vrot.slane %v2306_v5, 4  ;;  %v2311_v53 = vrot.slane %v2309_v14, 5  ;;  %v7859_v63 = vrot.slane %v2315_v58, 5  ;;  %v2321_v17 = vrot.slane %v2319_v19, 4  ;;  %v5677_v5 = vld [vmem:[%s7071_s26 + $0x60] sm:$0xf] }
  0x89   : > { %6434 = vmatmul.mubr.bf16.gmra.mxu0 %v10001_v55  ;;  %v10004_v33 = vcombine.low %v7244_v18, %v7250_v31  ;;  %v2330_v8 = vshrl.u32 %v5674_v4, 16  ;;  %v2333_v59 = vshll.u32 %v5674_v4, 16  ;;  %v7864_v20 = vrot.slane %v2264_v6, 4  ;;  %v7881_v31 = vld [vmem:[%s7071_s26 + $0x64] sm:$0xf] }
  0x8a   : > { %6437 = vmatprep.mubr.bf16.mxu0 %v10002_v34  ;;  %v7866_v1 = vrot.slane %v2274_v21, 4  ;;  %v7868_v13 = vrot.slane %v2301_v49, 5  ;;  %v2339_v22 = vshll.u32 %v7851_v10, 16  ;;  %v5575_v55 = vcombine.low %v7806_v54, %v7812_v3  ;;  %v7877_v34 = vld [vmem:[%s7071_s26 + $0x5c] sm:$0x1] }
  0x8b   : > { %v5720_v14 = vcombine.low %v2198_v62, %v2208_v35  ;;  %v7874_v58 = vrot.slane %v2288_v25, 4  ;;  %v2343_v18 = vshrl.u32 %v7851_v10, 16  ;;  %v7883_v6 = vrot.slane %v2298_v7, 4 }
  0x8c   : > { %6386 = vmatmul.mubr.bf16.gmra.mxu1 %v10003_v44  ;;  %v2325_v21 = vshll.u32 %v7857_v41, 16  ;;  %v2354_v49 = vshrl.u32 %v5677_v5, 16  ;;  %v2357_v19 = vshll.u32 %v5677_v5, 16  ;;  %v10005_v4 = vcombine.low %v7617_v26, %v7645_v37 }
  0x8d   : > { %6389 = vmatprep.mubr.bf16.mxu1 %v10004_v33  ;;  %v2312_v54 = vor.u32 %v2311_v53, %v2308_v48  ;;  %v2322_v3 = vor.u32 %v2321_v17, %v7859_v63  ;;  %v2332_v62 = vrot.slane %v2330_v8, 4  ;;  %v2335_v35 = vrot.slane %v2333_v59, 5  ;;  %v7921_v8 = vld [vmem:[%s7071_s26 + $0x70] sm:$0xf] }
  0x8e   : > { %v10006_v25 = vcombine.low %v7627_v2, %v7657_v29  ;;  %v7893_v7 = vrot.slane %v2339_v22, 5  ;;  %v2345_v44 = vrot.slane %v2343_v18, 4  ;;  %v2349_v33 = vshll.u32 %v7877_v34, 16 }
  0x8f   : > { %v2363_v26 = vshll.u32 %v7881_v31, 16  ;;  %v2222_v37 = vsel %vm7102_vm2, %v7776_v30, %v7763_v11  ;;  %v2232_v2 = vsel %vm7102_vm2, %v7820_v46, %v7772_v38  ;;  %v2356_v29 = vrot.slane %v2354_v49, 4  ;;  %v5680_v46 = vld [vmem:[%s7071_s26 + $0x6c] sm:$0xf] }
  0x90   : > { %v2359_v48 = vrot.slane %v2357_v19, 5  ;;  %v10007_v53 = vcombine.low %v7286_v9, %v7295_v28  ;;  %v2246_v17 = vsel %vm7102_vm2, %v7822_v16, %v7778_v51  ;;  %v2256_v11 = vsel %vm7102_vm2, %v7845_v47, %v7824_v57  ;;  %v7929_v16 = vld [vmem:[%s7071_s26 + $0x68] sm:$0x1] }
  0x91   : > { %6438 = vmatmul.mubr.bf16.gmra.mxu0 %v10005_v4  ;;  %v7916_v30 = vrot.slane %v2325_v21, 5  ;;  %v2367_v38 = vshrl.u32 %v7881_v31, 16  ;;  %v10008_v9 = vcombine.low %v9989_v24, %v7350_v52  ;;  %v7926_v28 = vrot.slane %v2312_v54, 4  ;;  %v6814_v52 = vld [vmem:[%s7071_s26 + $0xc] sm:$0xff]  }
  0x92   : > { %6441 = vmatprep.mubr.bf16.mxu0 %v10006_v25  ;;  %v2336_v51 = vor.u32 %v2335_v35, %v2332_v62  ;;  %v2378_v59 = vshrl.u32 %v5680_v46, 16  ;;  %v2381_v57 = vshll.u32 %v5680_v46, 16  ;;  %v7931_v47 = vrot.slane %v2322_v3, 4  ;;  %v7942_v62 = vld [vmem:[%s7071_s26 + $0x74] sm:$0x1] }
  0x93   : > { %v2346_v22 = vor.u32 %v2345_v44, %v7893_v7  ;;  %v7934_v5 = vrot.slane %v2349_v33, 5  ;;  %v2387_v18 = vshll.u32 %v7921_v8, 16  ;;  %v2360_v24 = vor.u32 %v2359_v48, %v2356_v29  ;;  %v5683_v25 = vld [vmem:[%s7071_s26 + $0x78] sm:$0xf]  ;;  %v7946_v44 = vld [vmem:[%s7071_s26 + $0x7c] sm:$0xf] }
  0x94   : > { %6390 = vmatmul.mubr.bf16.gmra.mxu1 %v10007_v53  ;;  %v7938_v21 = vrot.slane %v2363_v26, 5  ;;  %v2369_v49 = vrot.slane %v2367_v38, 4  ;;  %v2391_v19 = vshrl.u32 %v7921_v8, 16  ;;  %v5721_v4 = vcombine.low %v2222_v37, %v2232_v2  ;;  %v7953_v26 = vld [vmem:[%s7071_s26 + $0x80] sm:$0x1] }
  0x95   : > { %6393 = vmatprep.mubr.bf16.mxu1 %v10008_v9  ;;  %v5722_v54 = vcombine.low %v2246_v17, %v2256_v11  ;;  %v2380_v3 = vrot.slane %v2378_v59, 4  ;;  %v2383_v35 = vrot.slane %v2381_v57, 5  ;;  %v7948_v33 = vrot.slane %v2336_v51, 4 }
  0x96   : > { %v7950_v53 = vrot.slane %v2387_v18, 5  ;;  %v2393_v29 = vrot.slane %v2391_v19, 4  ;;  %v2402_v48 = vshrl.u32 %v5683_v25, 16  ;;  %v2373_v37 = vshll.u32 %v7929_v16, 16  ;;  %v5686_v19 = vld [vmem:[%s7071_s26 + $0x84] sm:$0xf] }
  0x97   : > { %v2405_v2 = vshll.u32 %v5683_v25, 16  ;;  %v2411_v17 = vshll.u32 %v7946_v44, 16  ;;  %v2415_v11 = vshrl.u32 %v7946_v44, 16  ;;  %v7958_v38 = vrot.slane %v2346_v22, 4  ;;  %v6818_v25 = vld [vmem:[%s7071_s26 + $0x24] sm:$0xff]  }
  0x98   : > { %v7960_v46 = vrot.slane %v2360_v24, 4  ;;  %v2404_v9 = vrot.slane %v2402_v48, 4  ;;  %v10009_v51 = vcombine.low %v9992_v43, %v9991_v40  ;;  %v2270_v22 = vsel %vm7102_vm2, %v7864_v20, %v7792_v50 }
  0x99   : > { %6442 = vmatmul.mubr.bf16.gmra.mxu0 %v5575_v55  ;;  %v2370_v55 = vor.u32 %v2369_v49, %v7938_v21  ;;  %v2407_v59 = vrot.slane %v2405_v2, 5  ;;  %v7966_v57 = vrot.slane %v2411_v17, 5  ;;  %v2417_v18 = vrot.slane %v2415_v11, 4  ;;  %v8015_v17 = vld [vmem:[%s7071_s26 + $0x8c] sm:$0x1] }
  0x9a   : > { %6509 = vmatprep.mubr.bf16.mxu0 %v5720_v14  ;;  %v2384_v14 = vor.u32 %v2383_v35, %v2380_v3  ;;  %v2394_v24 = vor.u32 %v2393_v29, %v7950_v53  ;;  %v2397_v49 = vshll.u32 %v7942_v62, 16  ;;  %v2421_v40 = vshll.u32 %v7953_v26, 16  ;;  %v7989_v3 = vld [vmem:[%s7071_s26 + $0x88] sm:$0xf]  ;;  %v6815_v35 = vld [vmem:[%s7071_s26 + $0x18] sm:$0xff]  }
  0x9b   : > { %v2280_v43 = vsel %vm7102_vm2, %v7866_v1, %v7847_v12  ;;  %v2304_v50 = vsel %vm7102_vm2, %v7883_v6, %v7868_v13  ;;  %v2408_v20 = vor.u32 %v2407_v59, %v2404_v9  ;;  %v6821_v12 = vld [vmem:[%s9949_s1 + $0x1b0] sm:$0xff]   ;;  %v7996_v1 = vrot.slane %v2373_v37, 5  ;;  %v8020_v11 = vld [vmem:[%s9949_s1 + $0x1a8] sm:$0xff]  }
  0x9c   : > { %6394 = vmatmul.mubr.bf16.gmra.mxu1 %v10009_v51  ;;  %v2429_v29 = vshll.u32 %v5686_v19, 16  ;;  %v6820_v13 = vld [vmem:[%s9949_s1 + $0x170] sm:$0xff]   ;;  %v2318_v6 = vsel %vm7102_vm2, %v7926_v28, %v7859_v63  ;;  %v2328_v48 = vsel %vm7102_vm2, %v7931_v47, %v7916_v30  ;;  %v8010_v37 = vrot.slane %v2370_v55, 4 }
  0x9d   : > { %6461 = vmatprep.mubr.bf16.mxu1 %v6814_v52  ;;  %v2294_v52 = vsel %vm7102_vm2, %v7874_v58, %v7818_v60  ;;  %v2418_v60 = vor.u32 %v2417_v18, %v7966_v57  ;;  %v2426_v58 = vshrl.u32 %v5686_v19, 16  ;;  %v8012_v2 = vrot.slane %v2384_v14, 4  ;;  %v5689_v14 = vld [vmem:[%s7071_s26 + $0x90] sm:$0xf]  ;;  %v8043_v59 = vld [vmem:[%s7071_s26 + $0x94] sm:$0xf] }
  0x9e   : > { %v8022_v63 = vrot.slane %v2394_v24, 4  ;;  %v8024_v28 = vrot.slane %v2397_v49, 5  ;;  %v2435_v30 = vshll.u32 %v7989_v3, 16  ;;  %v2439_v47 = vshrl.u32 %v7989_v3, 16  ;;  %10010 = vst [vmem:[#allocation6_spill] sm:$0xff] %v8043_v59 }
  0x9f   : > { %v2352_v55 = vsel %vm7102_vm2, %v7958_v38, %v7934_v5  ;;  %v8037_v9 = vrot.slane %v2408_v20, 4  ;;  %v8039_v51 = vrot.slane %v2421_v40, 5  ;;  %v2431_v18 = vrot.slane %v2429_v29, 5  ;;  %v6824_v5 = vld [vmem:[%s9949_s1 + $0x168] sm:$0xff]  }
  0xa0   : > { %v2453_v38 = vshll.u32 %v5689_v14, 16  ;;  %v2459_v24 = vshll.u32 %v8043_v59, 16  ;;  %v2463_v49 = vshrl.u32 %v8043_v59, 16  ;;  %v5723_v40 = vcombine.low %v2270_v22, %v2280_v43 }
  0xa1   : > { %6510 = vmatmul.mubr.bf16.vlgmr.msra.gmra.mxu0 %v5721_v4  ;;  %v2342_v4 = vsel %vm7102_vm2, %v7948_v33, %v7893_v7  ;;  %v2445_v7 = vshll.u32 %v8015_v17, 16  ;;  %v2450_v33 = vshrl.u32 %v5689_v14, 16  ;;  %v5724_v20 = vcombine.low %v2294_v52, %v2304_v50 }
  0xa2   : > { %6590 = vmatpush3.bf16.msra.mxu0 %v7745_v15  ;;  %6513 = vmatprep.mubr.bf16.mxu0 %v5722_v54  ;;  %v8045_v15 = vrot.slane %v2418_v60, 4  ;;  %v2428_v54 = vrot.slane %v2426_v58, 4  ;;  %v8054_v19 = vrot.slane %v2435_v30, 5  ;;  %v6819_v60 = vld [vmem:[%s7071_s26 + $0x30] sm:$0xff]   ;;  %v6829_v58 = vld [vmem:[%s9949_s1 + $0x1a0] sm:$0xff]   ;;  %v2455_v14 = vrot.slane %v2453_v38, 5 }
  0xa3   : > { %6591 = vmatprep.subr.bf16.mxu0 %v6821_v12  ;;  %v2452_v29 = vrot.slane %v2450_v33, 4  ;;  %v2465_v22 = vrot.slane %v2463_v49, 4  ;;  %v8062_v43 = vcombine.low %v2318_v6, %v2328_v48  ;;  %v8065_v52 = vcombine.low %v2342_v4, %v2352_v55  ;;  %v5692_v30 = vld [vmem:[%s7071_s26 + $0x9c] sm:$0xf]  ;;  %v8087_v4 = vld [vmem:[%s7071_s26 + $0xa4] sm:$0x1] }
  0xa4   : > { %6462 = vmatmul.mubr.bf16.vlgmr.msra.gmra.mxu1 %v6815_v35  ;;  %v2441_v35 = vrot.slane %v2439_v47, 4  ;;  %v2432_v48 = vor.u32 %v2431_v18, %v2428_v54  ;;  %v8084_v47 = vld [vmem:[%s7071_s26 + $0xa0] sm:$0xf]  ;;  %10013 = vst [vmem:[#allocation9_spill] sm:$0xff] %v8087_v4  ;;  %v2474_v55 = vshrl.u32 %v5692_v30, 16  ;;  %v2477_v33 = vshll.u32 %v5692_v30, 16 }
  0xa5   : > { %6542 = vmatpush3.bf16.msra.mxu1 %v7740_v36  ;;  %6465 = vmatprep.mubr.bf16.mxu1 %v6818_v25  ;;  %v8060_v36 = vrot.slane %v2459_v24, 5  ;;  %v2376_v25 = vsel %vm7102_vm2, %v8010_v37, %v7996_v1  ;;  %10012 = vst [vmem:[#allocation8_spill] sm:$0xff] %v8084_v47  ;;  %v6822_v38 = vld [vmem:[%s7071_s26 + $0x3c] sm:$0xff]   ;;  %v2483_v37 = vshll.u32 %v8084_v47, 16  ;;  %v2487_v24 = vshrl.u32 %v8084_v47, 16 }
  0xa6   : > { %6543 = vmatprep.subr.bf16.mxu1 %v6820_v13  ;;  %6592 = vmatpush3.bf16.msra.mxu0 %v6821_v12  ;;  %v8076_v12 = vld [vmem:[%s7071_s26 + $0x98] sm:$0x1]  ;;  %v2442_v1 = vor.u32 %v2441_v35, %v8054_v19  ;;  %v6828_v54 = vld [vmem:[%s9949_s1 + $0x160] sm:$0xff]   ;;  %v2456_v18 = vor.u32 %v2455_v14, %v2452_v29  ;;  %v2476_v30 = vrot.slane %v2474_v55, 4  ;;  %v2479_v49 = vrot.slane %v2477_v33, 5 }
  0xa7   : > { %6593 = vmatprep.subr.bf16.mxu0 %v8020_v11  ;;  %10011 = vst [vmem:[#allocation7_spill] sm:$0xff] %v8076_v12  ;;  %v2469_v35 = vshll.u32 %v8076_v12, 16  ;;  %v2489_v6 = vrot.slane %v2487_v24, 4  ;;  %v2493_v50 = vshll.u32 %v8087_v4, 16  ;;  %v5695_v47 = vld [vmem:[%s7071_s26 + $0xa8] sm:$0xf] }
  0xa8   : > { %v6832_v29 = vld [vmem:[%s9949_s1 + $0x158] sm:$0xff]   ;;  %v8110_v14 = vrot.slane %v2432_v48, 4  ;;  %v2498_v55 = vshrl.u32 %v5695_v47, 16  ;;  %v2501_v33 = vshll.u32 %v5695_v47, 16  ;;  %v8123_v4 = vld [vmem:[%s7071_s26 + $0xb0] sm:$0x1] }
  0xa9   : > { %6514 = vmatmul.mubr.bf16.gmra.mxu0 %v5723_v40  ;;  %6544 = vmatpush3.bf16.msra.mxu1 %v6820_v13  ;;  %v6833_v13 = vld [vmem:[%s9949_s1 + $0x198] sm:$0xff]   ;;  %v2466_v40 = vor.u32 %v2465_v22, %v8060_v36  ;;  %v8112_v22 = vrot.slane %v2445_v7, 5  ;;  %v6823_v48 = vld [vmem:[%s7071_s26 + $0x48] sm:$0xff]   ;;  %v8126_v7 = vrot.slane %v2442_v1, 4  ;;  %v8128_v12 = vrot.slane %v2456_v18, 4 }
  0xaa   : > { %6517 = vmatprep.mubr.bf16.mxu0 %v5724_v20  ;;  %6545 = vmatprep.subr.bf16.mxu1 %v6824_v5  ;;  %v8103_v20 = vrot.slane %v2483_v37, 5  ;;  %v2480_v37 = vor.u32 %v2479_v49, %v2476_v30  ;;  %v8130_v59 = vrot.slane %v2469_v35, 5  ;;  %v6836_v49 = vld [vmem:[%s9949_s1 + $0x150] sm:$0xff]   ;;  %v8147_v18 = vrot.slane %v2501_v33, 5 }
  0xab   : > { %6594 = vmatpush3.bf16.msra.mxu0 %v8020_v11  ;;  %v8115_v11 = vld [vmem:[%s7071_s26 + $0xac] sm:$0xf]  ;;  %v2517_v35 = vshll.u32 %v8123_v4, 16 }
  0xac   : > { %6466 = vmatmul.mubr.bf16.gmra.mxu1 %v6819_v60  ;;  %6595 = vmatprep.subr.bf16.mxu0 %v6829_v58  ;;  %10014 = vst [vmem:[#allocation10_spill] sm:$0xff] %v8115_v11  ;;  %v2400_v60 = vsel %vm7102_vm2, %v8022_v63, %v8024_v28  ;;  %v2490_v24 = vor.u32 %v2489_v6, %v8103_v20  ;;  %v2507_v47 = vshll.u32 %v8115_v11, 16  ;;  %v6826_v63 = vld [vmem:[%s7071_s26 + $0x54] sm:$0xff]   ;;  %v8137_v28 = vrot.slane %v2466_v40, 4 }
  0xad   : > { %6469 = vmatprep.mubr.bf16.mxu1 %v6822_v38  ;;  %6546 = vmatpush3.bf16.msra.mxu1 %v6824_v5  ;;  %v6837_v5 = vld [vmem:[%s9949_s1 + $0x190] sm:$0xff]   ;;  %v8139_v6 = vrot.slane %v2493_v50, 5  ;;  %v8141_v38 = vrot.slane %v2498_v55, 4  ;;  %v2511_v1 = vshrl.u32 %v8115_v11, 16  ;;  %v8156_v40 = vrot.slane %v2480_v37, 4 }
  0xae   : > { %6547 = vmatprep.subr.bf16.mxu1 %v6828_v54  ;;  %v8158_v30 = vrot.slane %v2490_v24, 4  ;;  %v5698_v55 = vld [vmem:[%s7071_s26 + $0xb4] sm:$0xf]  ;;  %v8162_v11 = vld [vmem:[%s7071_s26 + $0xb8] sm:$0xf]  ;;  %v6840_v24 = vld [vmem:[%s9949_s1 + $0x148] sm:$0xff]  }
  0xaf   : > { %6596 = vmatpush3.bf16.msra.mxu0 %v6829_v58  ;;  %v10015_v58 = vsel %vm7102_vm2, %v7960_v46, %v7938_v21  ;;  %10016 = vst [vmem:[#allocation11_spill] sm:$0xff] %v8162_v11  ;;  %v2414_v21 = vsel %vm7102_vm2, %v8037_v9, %v7966_v57  ;;  %v8174_v46 = vrot.slane %v2507_v47, 5  ;;  %v5701_v37 = vld [vmem:[%s7071_s26 + $0xc0] sm:$0xf]  ;;  %v2424_v57 = vsel %vm7102_vm2, %v8045_v15, %v8039_v51  ;;  %v8201_v47 = vld [vmem:[%s7071_s26 + $0xc4] sm:$0xf] }
  0xb0   : > { %6597 = vmatprep.subr.bf16.mxu0 %v6833_v13  ;;  %v5727_v50 = vcombine.low %v10015_v58, %v2376_v25  ;;  %v2522_v25 = vshrl.u32 %v5698_v55, 16  ;;  %v2438_v9 = vsel %vm7102_vm2, %v8110_v14, %v8054_v19  ;;  %10019 = vst [vmem:[#allocation13_spill] sm:$0xff] %v8201_v47  ;;  %v8204_v51 = vld [vmem:[%s7071_s26 + $0xc8] sm:$0x1]  ;;  %v2555_v58 = vshll.u32 %v8201_v47, 16 }
  0xb1   : > { %6518 = vmatmul.mubr.bf16.gmra.mxu0 %v8062_v43  ;;  %6548 = vmatpush3.bf16.msra.mxu1 %v6828_v54  ;;  %v10017_v43 = vsel %vm7102_vm2, %v8012_v2, %v7950_v53  ;;  %v2513_v54 = vrot.slane %v2511_v1, 4  ;;  %v2525_v53 = vshll.u32 %v5698_v55, 16  ;;  %v2531_v2 = vshll.u32 %v8162_v11, 16 }
  0xb2   : > { %6521 = vmatprep.mubr.bf16.mxu0 %v8065_v52  ;;  %v5728_v33 = vcombine.low %v10017_v43, %v2400_v60  ;;  %6549 = vmatprep.subr.bf16.mxu1 %v6832_v29  ;;  %v6841_v52 = vld [vmem:[%s9949_s1 + $0x188] sm:$0xff]   ;;  %v2535_v60 = vshrl.u32 %v8162_v11, 16  ;;  %v2524_v15 = vrot.slane %v2522_v25, 4  ;;  %v10020_v55 = vrot.slane %v7609_v32, 5 }
  0xb3   : > { %6598 = vmatpush3.bf16.msra.mxu0 %v6833_v13  ;;  %v2448_v13 = vsel %vm7102_vm2, %v8126_v7, %v8112_v22  ;;  %v2527_v19 = vrot.slane %v2525_v53, 5  ;;  %v8206_v14 = vrot.slane %v2531_v2, 5  ;;  %v2546_v22 = vshrl.u32 %v5701_v37, 16  ;;  %v6827_v2 = vld [vmem:[%s7071_s26 + $0x60] sm:$0xff]  }
  0xb4   : > { %6470 = vmatmul.mubr.bf16.gmra.mxu1 %v6823_v48  ;;  %6599 = vmatprep.subr.bf16.mxu0 %v6837_v5  ;;  %v8198_v48 = vld [vmem:[%s7071_s26 + $0xbc] sm:$0x1]  ;;  %v2537_v1 = vrot.slane %v2535_v60, 4  ;;  %v2549_v7 = vshll.u32 %v5701_v37, 16  ;;  %v8211_v43 = vrot.slane %v10020_v55, 4  ;;  %v8216_v25 = vrot.slane %v2517_v35, 5 }
  0xb5   : > { %10018 = vst [vmem:[#allocation12_spill] sm:$0xff] %v8198_v48  ;;  %6473 = vmatprep.mubr.bf16.mxu1 %v6826_v63  ;;  %6550 = vmatpush3.bf16.msra.mxu1 %v6832_v29  ;;  %v2504_v63 = vor.u32 %v8147_v18, %v8141_v38  ;;  %v2514_v29 = vor.u32 %v2513_v54, %v8174_v46  ;;  %v2559_v53 = vshrl.u32 %v8201_v47, 16  ;;  %v2541_v60 = vshll.u32 %v8198_v48, 16  ;;  %v6830_v38 = vld [vmem:[%s7071_s26 + $0x6c] sm:$0xff]   ;;  %v8236_v48 = vld [vmem:[%s7071_s26 + $0x18] sm:$0xe] }
  0xb6   : > { %6551 = vmatprep.subr.bf16.mxu1 %v6836_v49  ;;  %v2548_v37 = vrot.slane %v2546_v22, 4  ;;  %v2551_v11 = vrot.slane %v2549_v7, 5  ;;  %v8221_v55 = vrot.slane %v2555_v58, 5  ;;  %v2528_v18 = vor.u32 %v2527_v19, %v2524_v15  ;;  %v6844_v22 = vld [vmem:[%s9949_s1 + $0x140] sm:$0xff]   ;;  %v8233_v58 = vld [vmem:[%s7071_s26 + $0xc] sm:$0xe] }
  0xb7   : > { %6600 = vmatpush3.bf16.msra.mxu0 %v6837_v5  ;;  %v6845_v5 = vld [vmem:[%s9949_s1 + $0x180] sm:$0xff]   ;;  %v2538_v35 = vor.u32 %v2537_v1, %v8206_v14  ;;  %v2561_v54 = vrot.slane %v2559_v53, 4  ;;  %v2565_v47 = vshll.u32 %v8204_v51, 16  ;;  %v5729_v15 = vcombine.low %v2414_v21, %v2424_v57 }
  0xb8   : > { %6601 = vmatprep.subr.bf16.mxu0 %v6841_v52  ;;  %v2552_v7 = vor.u32 %v2551_v11, %v2548_v37  ;;  %v5730_v19 = vcombine.low %v2438_v9, %v2448_v13  ;;  %v8244_v1 = vrot.slane %v2504_v63, 4  ;;  %v8246_v11 = vrot.slane %v2514_v29, 4  ;;  %v6831_v9 = vld [vmem:[%s7071_s26 + $0x78] sm:$0xff]   ;;  %v6834_v37 = vld [vmem:[%s7071_s26 + $0x84] sm:$0xff]  }
  0xb9   : > { %6522 = vmatmul.mubr.bf16.gmra.mxu0 %v5727_v50  ;;  %6552 = vmatpush3.bf16.msra.mxu1 %v6836_v49  ;;  %v8241_v49 = vld [vmem:[%s9949_s1 + $0x238] sm:$0xff]   ;;  %v2562_v50 = vor.u32 %v2561_v54, %v8221_v55  ;;  %v8255_v53 = vrot.slane %v2538_v35, 4  ;;  %v8257_v21 = vrot.slane %v2541_v60, 5  ;;  %v8263_v63 = vrot.slane %v2565_v47, 5  ;;  %v5747_v60 = vld [vmem:[%s7071_s26 + $0x30] sm:$0xe] }
  0xba   : > { %6525 = vmatprep.mubr.bf16.mxu0 %v5728_v33  ;;  %6553 = vmatprep.subr.bf16.mxu1 %v6840_v24  ;;  %v8251_v33 = vld [vmem:[%s9949_s1 + $0x1f8] sm:$0xff]   ;;  %v8261_v13 = vrot.slane %v2552_v7, 4  ;;  %v2960_v29 = vrot.slane %v7683_v42, 5  ;;  %v10021_v35 = vld [vmem:[#allocation2_spill] sm:$0xff]  ;;  %v5763_v47 = vrot.slane %v5747_v60, 9  ;;  %v10024_v60 = vld [vmem:[#allocation3_spill] sm:$0xff] }
  0xbb   : > { %6602 = vmatpush3.bf16.msra.mxu0 %v6841_v52  ;;  %v8253_v52 = vrot.slane %v2528_v18, 4  ;;  %v10022_v7 = vld [vmem:[#allocation5_spill] sm:$0xff]  ;;  %v2981_v18 = vrot.slane %v7766_v0, 5  ;;  %v2496_v0 = vsel %vm7102_vm2, %v8158_v30, %v8139_v6  ;;  %v2995_v30 = vrot.slane %v7857_v41, 5 }
  0xbc   : > { %6474 = vmatmul.mubr.bf16.gmra.mxu1 %v6827_v2  ;;  %6603 = vmatprep.subr.bf16.mxu0 %v6845_v5  ;;  %v2978_v57 = vrot.slane %v10022_v7, 5  ;;  %v10023_v2 = vld [vmem:[#allocation4_spill] sm:$0xff] }
  0xbd   : > { %6477 = vmatprep.mubr.bf16.mxu1 %v6830_v38  ;;  %6554 = vmatpush3.bf16.msra.mxu1 %v6840_v24  ;;  %v8268_v24 = vrot.slane %v2562_v50, 4  ;;  %v2964_v38 = vrot.slane %v7700_v61, 5  ;;  %v2462_v50 = vsel %vm7102_vm2, %v8128_v12, %v8060_v36  ;;  %v2985_v54 = vrot.slane %v10023_v2, 5  ;;  %v5748_v12 = vld [vmem:[%s7071_s26 + $0x3c] sm:$0xe] }
  0xbe   : > { %6555 = vmatprep.subr.bf16.mxu1 %v6844_v22  ;;  %v8290_v7 = vsel %vm7413_vm5, %v5763_v47, %v2978_v57  ;;  %v2980_v36 = vrot.slane %v2978_v57, 4  ;;  %v5764_v2 = vrot.slane %v5748_v12, 9  ;;  %v6835_v47 = vld [vmem:[%s7071_s26 + $0x90] sm:$0xff]   ;;  %v3002_v12 = vrot.slane %v7877_v34, 5 }
  0xbf   : > { %6604 = vmatpush3.bf16.msra.mxu0 %v6845_v5  ;;  %v2472_v5 = vsel %vm7102_vm2, %v8137_v28, %v8130_v59  ;;  %v2486_v59 = vsel %vm7102_vm2, %v8156_v40, %v8103_v20  ;;  %v2987_v28 = vrot.slane %v2985_v54, 4  ;;  %v2992_v20 = vrot.slane %v7816_v39, 5 }
  0xc0   : > { %6685 = vmatprep.subr.bf16.mxu0 %v8241_v49  ;;  %v8304_v57 = vsel %vm7413_vm5, %v2980_v36, %v2981_v18  ;;  %v5732_v18 = vcombine.low %v2486_v59, %v2496_v0  ;;  %v8319_v39 = vsel %vm7413_vm5, %v5764_v2, %v2985_v54  ;;  %v2510_v36 = vsel %vm7102_vm2, %v8244_v1, %v8174_v46  ;;  %v5750_v54 = vld [vmem:[%s7071_s26 + $0x54] sm:$0xe] }
  0xc1   : > { %6526 = vmatmul.mubr.bf16.gmra.mxu0 %v5729_v15  ;;  %6556 = vmatpush3.bf16.msra.mxu1 %v6844_v22  ;;  %v2974_v15 = vrot.slane %v10024_v60, 5  ;;  %v2988_v22 = vrot.slane %v7795_v45, 5  ;;  %v5795_v40 = vcombine.low %v8290_v7, %v8304_v57  ;;  %v5749_v45 = vld [vmem:[%s7071_s26 + $0x48] sm:$0xe]  ;;  %v2520_v46 = vsel %vm7102_vm2, %v8246_v11, %v8216_v25  ;;  %v6855_v7 = vld [vmem:[%s7071_s26 + $0x54] sm:$0xff]  }
  0xc2   : > { %6529 = vmatprep.mubr.bf16.mxu0 %v5730_v19  ;;  %6637 = vmatprep.subr.bf16.mxu1 %v8251_v33  ;;  %v5731_v19 = vcombine.low %v2462_v50, %v2472_v5  ;;  %v2994_v50 = vrot.slane %v2992_v20, 4  ;;  %v6838_v5 = vld [vmem:[%s7071_s26 + $0x9c] sm:$0xff]   ;;  %v3006_v2 = vrot.slane %v7881_v31, 5  ;;  %v2534_v34 = vsel %vm7102_vm2, %v8253_v52, %v8206_v14 }
  0xc3   : > { %v8311_v6 = vsel %vm7413_vm5, %v2987_v28, %v2988_v22  ;;  %v5766_v28 = vrot.slane %v5750_v54, 9  ;;  %v5751_v22 = vld [vmem:[%s7071_s26 + $0x60] sm:$0xe]  ;;  %v3009_v25 = vrot.slane %v7929_v16, 5  ;;  %v2544_v11 = vsel %vm7102_vm2, %v8255_v53, %v8257_v21 }
  0xc4   : > { %6478 = vmatmul.mubr.bf16.gmra.mxu1 %v6831_v9  ;;  %v2999_v9 = vrot.slane %v7851_v10, 5  ;;  %v5796_v41 = vcombine.low %v8319_v39, %v8311_v6  ;;  %v8334_v59 = vsel %vm7413_vm5, %v2994_v50, %v2995_v30  ;;  %v3013_v14 = vrot.slane %v7921_v8, 5  ;;  %v5977_v6 = vld [vmem:[%s7071_s26 + $0x24] sm:$0xe] }
  0xc5   : > { %6481 = vmatprep.mubr.bf16.mxu1 %v6834_v37  ;;  %v5765_v37 = vrot.slane %v5749_v45, 9  ;;  %v3008_v45 = vrot.slane %v3006_v2, 4  ;;  %v5733_v52 = vcombine.low %v2510_v36, %v2520_v46  ;;  %v3016_v8 = vrot.slane %v7942_v62, 5  ;;  %v5753_v36 = vld [vmem:[%s7071_s26 + $0x78] sm:$0xe] }
  0xc6   : > { %v3001_v0 = vrot.slane %v2999_v9, 4  ;;  %v8361_v31 = vsel %vm7413_vm5, %v5766_v28, %v2999_v9  ;;  %v3015_v9 = vrot.slane %v3013_v14, 4  ;;  %v3020_v54 = vrot.slane %v7946_v44, 5 }
  0xc7   : > { %v8330_v10 = vsel %vm7413_vm5, %v5765_v37, %v2992_v20  ;;  %v5767_v20 = vrot.slane %v5751_v22, 9  ;;  %v8373_v53 = vsel %vm7413_vm5, %v3008_v45, %v3009_v25  ;;  %v5734_v37 = vcombine.low %v2534_v34, %v2544_v11 }
  0xc8   : > { %v8389_v46 = vsel %vm7413_vm5, %v3015_v9, %v3016_v8  ;;  %v5769_v62 = vrot.slane %v5753_v36, 9  ;;  %v3027_v28 = vrot.slane %v7989_v3, 5  ;;  %v3022_v44 = vrot.slane %v3020_v54, 4  ;;  %v6846_v8 = vld [vmem:[%s7071_s26 + $0x18] sm:$0xff]   ;;  %v10029_v36 = vld [vmem:[#allocation8_spill] sm:$0xff] }
  0xc9   : > { %6530 = vmatmul.mubr.bf16.gmra.mxu0 %v5731_v19  ;;  %v8352_v19 = vsel %vm7413_vm5, %v3001_v0, %v3002_v12  ;;  %v8368_v16 = vsel %vm7413_vm5, %v5767_v20, %v3006_v2  ;;  %v3023_v0 = vrot.slane %v7953_v26, 5  ;;  %v3030_v26 = vrot.slane %v8015_v17, 5  ;;  %v5754_v20 = vld [vmem:[%s7071_s26 + $0x84] sm:$0xe] }
  0xca   : > { %6533 = vmatprep.mubr.bf16.mxu0 %v5732_v18  ;;  %v5752_v18 = vld [vmem:[%s7071_s26 + $0x6c] sm:$0xe]  ;;  %v2558_v2 = vsel %vm7102_vm2, %v8261_v13, %v8221_v55  ;;  %v8401_v34 = vsel %vm7413_vm5, %v5769_v62, %v3020_v54  ;;  %v2568_v3 = vsel %vm7102_vm2, %v8268_v24, %v8263_v63  ;;  %v5770_v25 = vrot.slane %v5754_v20, 9  ;;  %v10027_v63 = vld [vmem:[#allocation6_spill] sm:$0xff] }
  0xcb   : > { %v5768_v21 = vrot.slane %v5752_v18, 9  ;;  %v8410_v17 = vsel %vm7413_vm5, %v3022_v44, %v3023_v0  ;;  %v3029_v11 = vrot.slane %v3027_v28, 4  ;;  %v10025_v45 = vrot.slane %v7609_v32, 5  ;;  %v5755_v18 = vld [vmem:[%s7071_s26 + $0x90] sm:$0xe]  ;;  %v6858_v62 = vld [vmem:[%s7071_s26 + $0x60] sm:$0xff]  }
  0xcc   : > { %6482 = vmatmul.mubr.bf16.gmra.mxu1 %v6835_v47  ;;  %v6839_v47 = vld [vmem:[%s7071_s26 + $0xa8] sm:$0xff]   ;;  %v10026_v55 = vrot.slane %v8233_v58, 9  ;;  %v3034_v24 = vrot.slane %v10027_v63, 5  ;;  %v8427_v32 = vsel %vm7413_vm5, %v5770_v25, %v3027_v28  ;;  %v3041_v54 = vrot.slane %v10029_v36, 5 }
  0xcd   : > { %6485 = vmatprep.mubr.bf16.mxu1 %v6838_v5  ;;  %v6842_v5 = vld [vmem:[%s7071_s26 + $0xb4] sm:$0xff]   ;;  %v8385_v12 = vsel %vm7413_vm5, %v5768_v21, %v3013_v14  ;;  %v5746_v14 = vld [vmem:[%s7071_s26 + $0x24] sm:$0xe]  ;;  %v10028_v21 = vld [vmem:[#allocation7_spill] sm:$0xff]  ;;  %v8431_v58 = vsel %vm7413_vm5, %v3029_v11, %v3030_v26  ;;  %v5735_v0 = vcombine.low %v2558_v2, %v2568_v3  ;;  %v2961_v28 = vsel %vm7413_vm5, %v8211_v43, %v2960_v29 }
  0xce   : > { %v2958_v13 = vsel %vm7413_vm5, %v10026_v55, %v10025_v45  ;;  %v3037_v9 = vrot.slane %v10028_v21, 5  ;;  %v3036_v44 = vrot.slane %v3034_v24, 4  ;;  %v6843_v45 = vld [vmem:[%s7071_s26 + $0xc0] sm:$0xff]   ;;  %v2966_v26 = vrot.slane %v2964_v38, 4  ;;  %v5756_v2 = vld [vmem:[%s7071_s26 + $0x9c] sm:$0xe] }
  0xcf   : > { %v3043_v3 = vrot.slane %v3041_v54, 4  ;;  %v5772_v11 = vrot.slane %v5756_v2, 9  ;;  %v10031_v55 = vld [vmem:[#allocation10_spill] sm:$0xff]  ;;  %v5757_v63 = vld [vmem:[%s7071_s26 + $0xa8] sm:$0xe]  ;;  %v5792_v21 = vcombine.low %v2958_v13, %v2961_v28  ;;  %v10035_v28 = vrot.slane %v8236_v48, 9 }
  0xd0   : > { %v8452_v25 = vsel %vm7413_vm5, %v3036_v44, %v3037_v9  ;;  %v3048_v42 = vrot.slane %v10031_v55, 5  ;;  %v8575_v43 = vld [vmem:[%s7071_s26 + $0x34] sm:$0xf] }
  0xd1   : > { %6534 = vmatmul.mubr.bf16.gmra.mxu0 %v5733_v52  ;;  %v8465_v9 = vsel %vm7413_vm5, %v5772_v11, %v3041_v54  ;;  %v5758_v54 = vld [vmem:[%s7071_s26 + $0xb4] sm:$0xe]  ;;  %v3882_v39 = vshll.u32 %v8575_v43, 16 }
  0xd2   : > { %6537 = vmatprep.mubr.bf16.mxu0 %v5734_v37  ;;  %v5771_v37 = vrot.slane %v5755_v18, 9  ;;  %v5762_v18 = vrot.slane %v5746_v14, 9  ;;  %v3050_v36 = vrot.slane %v3048_v42, 4  ;;  %v10032_v14 = vrot.slane %v10021_v35, 5 }
  0xd3   : > { %v5774_v55 = vrot.slane %v5758_v54, 9 }
  0xd4   : > { %6486 = vmatmul.mubr.bf16.gmra.mxu1 %v6839_v47  ;;  %v10030_v47 = vld [vmem:[#allocation9_spill] sm:$0xff]  ;;  %v2973_v44 = vrot.slane %v10032_v14, 4  ;;  %v10037_v61 = vmov %v10032_v14  ;;  %v3065_v14 = vrot.slane %v8204_v51, 5  ;;  %v5894_v51 = vld [vmem:[%s7071_s26 + $0x30] sm:$0xf] }
  0xd5   : > { %6489 = vmatprep.mubr.bf16.mxu1 %v6842_v5  ;;  %v3044_v20 = vrot.slane %v10030_v47, 5  ;;  %v8447_v5 = vsel %vm7413_vm5, %v5771_v37, %v3034_v24  ;;  %v3051_v24 = vrot.slane %v8123_v4, 5  ;;  %v5773_v37 = vrot.slane %v5757_v63, 9 }
  0xd6   : > { %v10036_v63 = vrot.slane %v7714_v23, 5  ;;  %v2972_v48 = vsel %vm7413_vm5, %v5762_v18, %v10037_v61  ;;  %v2975_v23 = vsel %vm7413_vm5, %v2973_v44, %v2974_v15  ;;  %v8545_v61 = vld [vmem:[%s7071_s26 + $0x28] sm:$0xf] }
  0xd7   : > { %v8459_v29 = vsel %vm7413_vm5, %v3043_v3, %v3044_v20  ;;  %v10033_v20 = vld [vmem:[#allocation11_spill] sm:$0xff]  ;;  %v8474_v4 = vsel %vm7413_vm5, %v5773_v37, %v3048_v42  ;;  %v8478_v13 = vsel %vm7413_vm5, %v3050_v36, %v3051_v24  ;;  %v2965_v3 = vsel %vm7413_vm5, %v10035_v28, %v2964_v38  ;;  %v5759_v37 = vld [vmem:[%s7071_s26 + $0xc0] sm:$0xe]  ;;  %v10038_v38 = vld [vmem:[#allocation13_spill] sm:$0xff] }
  0xd8   : > { %v3055_v2 = vrot.slane %v10033_v20, 5  ;;  %v2968_v24 = vsel %vm7413_vm5, %v2966_v26, %v10036_v63  ;;  %v3062_v36 = vrot.slane %v10038_v38, 5  ;;  %v5775_v18 = vrot.slane %v5759_v37, 9  ;;  %v6853_v20 = vld [vmem:[%s9949_s1 + $0x230] sm:$0xff]   ;;  %v5891_v63 = vld [vmem:[%s7071_s26 + $0x24] sm:$0xf] }
  0xd9   : > { %6538 = vmatmul.mubr.bf16.gmra.mxu0 %v5735_v0  ;;  %v5793_v15 = vcombine.low %v2965_v3, %v2968_v24  ;;  %v5794_v54 = vcombine.low %v2972_v48, %v2975_v23  ;;  %v6852_v28 = vld [vmem:[%s9949_s1 + $0x1f0] sm:$0xff]   ;;  %v6851_v48 = vld [vmem:[%s7071_s26 + $0x3c] sm:$0xff]   ;;  %v3849_v37 = vshrl.u32 %v5891_v63, 16  ;;  %v6854_v38 = vld [vmem:[%s7071_s26 + $0x48] sm:$0xff]   ;;  %v3858_v23 = vshll.u32 %v8545_v61, 16 }
  0xda   : > { %6605 = vmatprep.mubr.bf16.mxu0 %v6846_v8  ;;  %v10034_v8 = vld [vmem:[#allocation12_spill] sm:$0xff]  ;;  %v3057_v42 = vrot.slane %v3055_v2, 4  ;;  %v8509_v26 = vsel %vm7413_vm5, %v5774_v55, %v3055_v2  ;;  %v3064_v60 = vrot.slane %v3062_v36, 4  ;;  %v8522_v44 = vsel %vm7413_vm5, %v5775_v18, %v3062_v36  ;;  %v5888_v2 = vld [vmem:[%s7071_s26 + $0x18] sm:$0xf]  ;;  %v6857_v55 = vld [vmem:[%s9949_s1 + $0x228] sm:$0xff]  }
  0xdb   : > { %v3058_v0 = vrot.slane %v10034_v8, 5  ;;  %v3828_v24 = vshll.u32 %v5888_v2, 16  ;;  %v6856_v36 = vld [vmem:[%s9949_s1 + $0x1e8] sm:$0xff]   ;;  %v5890_v18 = vld [vmem:[%s7071_s26 + $0x20] sm:$0x1]  ;;  %v3851_v11 = vrot.slane %v3849_v37, 4 }
  0xdc   : > { %6490 = vmatmul.mubr.bf16.gmra.mxu1 %v6843_v45  ;;  %v6847_v45 = vld [vmem:[%s7071_s26 + $0x24] sm:$0xff]   ;;  %v8527_v8 = vsel %vm7413_vm5, %v3064_v60, %v3065_v14  ;;  %v3852_v14 = vshll.u32 %v5891_v63, 16  ;;  %v8565_v63 = vld [vmem:[%s7071_s26 + $0x2c] sm:$0x1]  ;;  %v3873_v37 = vshrl.u32 %v5894_v51, 16 }
  0xdd   : > { %6557 = vmatprep.mubr.bf16.mxu1 %v5792_v21  ;;  %v6850_v21 = vld [vmem:[%s7071_s26 + $0x30] sm:$0xff]   ;;  %v8513_v35 = vsel %vm7413_vm5, %v3057_v42, %v3058_v0  ;;  %v8530_v0 = vld [vmem:[%s7071_s26 + $0x1c] sm:$0xf]  ;;  %v3825_v42 = vshrl.u32 %v5888_v2, 16 }
  0xde   : > { %v4596_v3 = vrot.slane %v8530_v0, 5  ;;  %v3854_v47 = vrot.slane %v3852_v14, 5 }
  0xdf   : > { %v3827_v60 = vrot.slane %v3825_v42, 4  ;;  %v6860_v42 = vld [vmem:[%s9949_s1 + $0x1e0] sm:$0xff]  }
  0xe1   : > { %6606 = vmatmul.mubr.bf16.vlgmr.msra.gmra.mxu0 %v6847_v45  ;;  %v3838_v45 = vshrl.u32 %v8530_v0, 16 }
  0xe2   : > { %6686 = vmatpush3.bf16.msra.mxu0 %v8241_v49  ;;  %6609 = vmatprep.mubr.bf16.mxu0 %v6850_v21  ;;  %v3834_v49 = vshll.u32 %v8530_v0, 16  ;;  %v3862_v21 = vshrl.u32 %v8545_v61, 16 }
  0xe3   : > { %6687 = vmatprep.subr.bf16.mxu0 %v6853_v20 }
  0xe4   : > { %6558 = vmatmul.mubr.bf16.vlgmr.msra.gmra.mxu1 %v5793_v15  ;;  %v5976_v15 = vld [vmem:[%s7071_s26 + $0x18] sm:$0xe]  ;;  %v8560_v2 = vrot.slane %v3834_v49, 5  ;;  %v3844_v49 = vshll.u32 %v5890_v18, 16  ;;  %v3864_v0 = vrot.slane %v3862_v21, 4 }
  0xe5   : > { %6638 = vmatpush3.bf16.msra.mxu1 %v8251_v33  ;;  %6561 = vmatprep.mubr.bf16.mxu1 %v5794_v54  ;;  %v6861_v33 = vld [vmem:[%s9949_s1 + $0x220] sm:$0xff]   ;;  %v3840_v54 = vrot.slane %v3838_v45, 4  ;;  %v8572_v45 = vrot.slane %v3858_v23, 5  ;;  %v6865_v23 = vld [vmem:[%s9949_s1 + $0x218] sm:$0xff]  }
  0xe6   : > { %6639 = vmatprep.subr.bf16.mxu1 %v6852_v28  ;;  %6688 = vmatpush3.bf16.msra.mxu0 %v6853_v20  ;;  %v3830_v20 = vrot.slane %v3828_v24, 5 }
  0xe7   : > { %6689 = vmatprep.subr.bf16.mxu0 %v6857_v55  ;;  %v3841_v21 = vor.u32 %v3840_v54, %v8560_v2  ;;  %v3865_v54 = vor.u32 %v3864_v0, %v8572_v45 }
  0xe9   : > { %6610 = vmatmul.mubr.bf16.gmra.mxu0 %v6851_v48  ;;  %6640 = vmatpush3.bf16.msra.mxu1 %v6852_v28  ;;  %v5992_v48 = vrot.slane %v5976_v15, 9  ;;  %v4599_v28 = vrot.slane %v5890_v18, 5  ;;  %v4598_v18 = vrot.slane %v4596_v3, 4  ;;  %v3868_v15 = vshll.u32 %v8565_v63, 16 }
  0xea   : > { %6613 = vmatprep.mubr.bf16.mxu0 %v6854_v38  ;;  %6641 = vmatprep.subr.bf16.mxu1 %v6856_v36  ;;  %v3876_v38 = vshll.u32 %v5894_v51, 16  ;;  %v4603_v51 = vrot.slane %v8545_v61, 5  ;;  %v3886_v61 = vshrl.u32 %v8575_v43, 16 }
  0xeb   : > { %6690 = vmatpush3.bf16.msra.mxu0 %v6857_v55  ;;  %v3831_v55 = vor.u32 %v3830_v20, %v3827_v60  ;;  %v6864_v60 = vld [vmem:[%s9949_s1 + $0x1d8] sm:$0xff]   ;;  %v8598_v20 = vrot.slane %v3844_v49, 5  ;;  %v6869_v49 = vld [vmem:[%s9949_s1 + $0x210] sm:$0xff]  }
  0xec   : > { %v8570_v24 = vpop.f32.mrf.mxu0  ;;  %6562 = vmatmul.mubr.bf16.gmra.mxu1 %v5795_v40  ;;  %6691 = vmatprep.subr.bf16.mxu0 %v6861_v33  ;;  %v8580_v14 = vpop.f32.mrf.mxu1  ;;  %v3855_v40 = vor.u32 %v3854_v47, %v3851_v11  ;;  %v3875_v47 = vrot.slane %v3873_v37, 4  ;;  %v3878_v11 = vrot.slane %v3876_v38, 5  ;;  %v8625_v37 = vld [vmem:[%s7071_s26 + $0x40] sm:$0xf]  ;;  %v4605_v50 = vrot.slane %v4603_v51, 4 }
  0xed   : > { %10039 = vst [vmem:[#allocation2_spill] sm:$0xff] %v8580_v14  ;;  %6565 = vmatprep.mubr.bf16.mxu1 %v5796_v41  ;;  %6642 = vmatpush3.bf16.msra.mxu1 %v6856_v36  ;;  %v8605_v41 = vsel %vm7413_vm5, %v5992_v48, %v4596_v3  ;;  %v5897_v36 = vld [vmem:[%s7071_s26 + $0x3c] sm:$0xf]  ;;  %v8614_v0 = vrot.slane %v3831_v55, 4  ;;  %v8620_v3 = vsel %vm7413_vm5, %v4598_v18, %v4599_v28  ;;  %v8622_v48 = vrot.slane %v3868_v15, 5  ;;  %v6868_v55 = vld [vmem:[%s9949_s1 + $0x1d0] sm:$0xff]  }
  0xee   : > { %v8591_v57 = vpop.f32.mrf.mxu0  ;;  %6643 = vmatprep.subr.bf16.mxu1 %v6860_v42  ;;  %v8609_v52 = vpop.f32.mrf.mxu1  ;;  %v8632_v22 = vrot.slane %v3855_v40, 4  ;;  %v4606_v28 = vrot.slane %v8565_v63, 5  ;;  %v3866_v18 = vrot.slane %v3865_v54, 4  ;;  %v8636_v15 = vld [vmem:[%s7071_s26 + $0x38] sm:$0x1]  ;;  %v3900_v30 = vshll.u32 %v5897_v36, 16 }
  0xef   : > { %6692 = vmatpush3.bf16.msra.mxu0 %v6861_v33  ;;  %10040 = vst [vmem:[#allocation5_spill] sm:$0xff] %v8609_v52  ;;  %v8616_v33 = vrot.slane %v3841_v21, 4  ;;  %v5993_v21 = vrot.slane %v5977_v6, 9  ;;  %v3879_v1 = vor.u32 %v3878_v11, %v3875_v47  ;;  %v8640_v52 = vrot.slane %v3886_v61, 4  ;;  %v5978_v40 = vld [vmem:[%s7071_s26 + $0x30] sm:$0xe] }
  0xf0   : > { %6693 = vmatprep.subr.bf16.mxu0 %v6865_v23  ;;  %v8627_v38 = vpop.f32.mrf.mxu0  ;;  %v3906_v6 = vshll.u32 %v8625_v37, 16  ;;  %v3910_v63 = vshrl.u32 %v8625_v37, 16  ;;  %v8648_v54 = vpop.f32.mrf.mxu1  ;;  %v10043_v11 = vcombine.low %v8361_v31, %v8352_v19  ;;  %v6859_v61 = vld [vmem:[%s7071_s26 + $0x6c] sm:$0xff]   ;;  %v8681_v19 = vsel %vm7413_vm5, %v4605_v50, %v4606_v28  ;;  %v8699_v28 = vld [vmem:[%s7071_s26 + $0x44] sm:$0x1] }
  0xf1   : > { %6614 = vmatmul.mubr.bf16.gmra.mxu0 %v6855_v7  ;;  %6644 = vmatpush3.bf16.msra.mxu1 %v6860_v42  ;;  %v8638_v7 = vrot.slane %v3882_v39, 5  ;;  %v3897_v42 = vshrl.u32 %v5897_v36, 16  ;;  %10042 = vst [vmem:[#allocation4_spill] sm:$0xff] %v8648_v54  ;;  %v3837_v39 = vsel %vm7102_vm2, %v8614_v0, %v8560_v2  ;;  %v3847_v47 = vsel %vm7102_vm2, %v8616_v33, %v8598_v20  ;;  %v6862_v36 = vld [vmem:[%s7071_s26 + $0x78] sm:$0xff]   ;;  %v8692_v33 = vld [vmem:[%s7071_s26 + $0x4c] sm:$0xf] }
  0xf2   : > { %6617 = vmatprep.mubr.bf16.mxu0 %v6858_v62  ;;  %6645 = vmatprep.subr.bf16.mxu1 %v6864_v60  ;;  %v10041_v62 = vcombine.low %v8330_v10, %v8334_v59  ;;  %v4610_v59 = vrot.slane %v8575_v43, 5  ;;  %v3861_v2 = vsel %vm7102_vm2, %v8632_v22, %v8572_v45  ;;  %v8677_v20 = vsel %vm7413_vm5, %v5993_v21, %v4603_v51  ;;  %v5900_v43 = vld [vmem:[%s7071_s26 + $0x48] sm:$0xf]  ;;  %v8703_v54 = vpop.f32.mrf.mxu1  ;;  %v5979_v14 = vld [vmem:[%s7071_s26 + $0x3c] sm:$0xe] }
  0xf3   : > { %6694 = vmatpush3.bf16.msra.mxu0 %v6865_v23  ;;  %v6873_v23 = vld [vmem:[%s9949_s1 + $0x208] sm:$0xff]   ;;  %v3892_v31 = vshll.u32 %v8636_v15, 16  ;;  %v3871_v22 = vsel %vm7102_vm2, %v3866_v18, %v8622_v48  ;;  %v5994_v45 = vrot.slane %v5978_v40, 9  ;;  %v3899_v0 = vrot.slane %v3897_v42, 4  ;;  %10045 = vst [vmem:[#allocation6_spill] sm:$0xff] %v8703_v54  ;;  %v6876_v42 = vld [vmem:[%s9949_s1 + $0x1c0] sm:$0xff]  }
  0xf4   : > { %6566 = vmatmul.mubr.bf16.gmra.mxu1 %v10041_v62  ;;  %6695 = vmatprep.subr.bf16.mxu0 %v6869_v49  ;;  %v8669_v62 = vpop.f32.mrf.mxu0  ;;  %v3902_v51 = vrot.slane %v3900_v30, 5  ;;  %v8694_v50 = vrot.slane %v3879_v1, 4  ;;  %v3889_v21 = vor.u32 %v8640_v52, %v8638_v7  ;;  %v3912_v10 = vrot.slane %v3910_v63, 4  ;;  %v6877_v30 = vld [vmem:[%s9949_s1 + $0x200] sm:$0xff]  }
  0xf5   : > { %6569 = vmatprep.mubr.bf16.mxu1 %v10043_v11  ;;  %6646 = vmatpush3.bf16.msra.mxu1 %v6864_v60  ;;  %10044 = vst [vmem:[#allocation3_spill] sm:$0xff] %v8669_v62  ;;  %v6872_v60 = vld [vmem:[%s9949_s1 + $0x1c8] sm:$0xff]   ;;  %v8701_v11 = vrot.slane %v3906_v6, 5  ;;  %v4612_v48 = vrot.slane %v4610_v59, 4  ;;  %v3921_v1 = vshrl.u32 %v5900_v43, 16  ;;  %v3924_v18 = vshll.u32 %v5900_v43, 16 }
  0xf6   : > { %6647 = vmatprep.subr.bf16.mxu1 %v6868_v55  ;;  %v8714_v40 = vcombine.low %v3837_v39, %v3847_v47  ;;  %v3934_v63 = vshrl.u32 %v8692_v33, 16  ;;  %v8722_v43 = vrot.slane %v3892_v31, 5  ;;  %v3916_v54 = vshll.u32 %v8699_v28, 16  ;;  %v5903_v39 = vld [vmem:[%s7071_s26 + $0x54] sm:$0xf]  ;;  %v6863_v6 = vld [vmem:[%s7071_s26 + $0x84] sm:$0xff]  }
  0xf7   : > { %6696 = vmatpush3.bf16.msra.mxu0 %v6869_v49  ;;  %v4613_v49 = vrot.slane %v8636_v15, 5  ;;  %v8709_v52 = vpop.f32.mrf.mxu0  ;;  %v3930_v15 = vshll.u32 %v8692_v33, 16  ;;  %v4617_v31 = vrot.slane %v8625_v37, 5  ;;  %v10049_v37 = vcombine.low %v8385_v12, %v8389_v46  ;;  %v6866_v47 = vld [vmem:[%s7071_s26 + $0x90] sm:$0xff]  }
  0xf8   : > { %6697 = vmatprep.subr.bf16.mxu0 %v6873_v23  ;;  %10046 = vst [vmem:[#allocation7_spill] sm:$0xff] %v8709_v52 }
  0xf9   : > { %6618 = vmatmul.mubr.bf16.gmra.mxu0 %v6859_v61  ;;  %6648 = vmatpush3.bf16.msra.mxu1 %v6868_v55  ;;  %v8720_v61 = vcombine.low %v3861_v2, %v3871_v22  ;;  %v3903_v55 = vor.u32 %v3902_v51, %v3899_v0  ;;  %v3913_v2 = vor.u32 %v3912_v10, %v8701_v11  ;;  %v8738_v22 = vld [vmem:[%s7071_s26 + $0x58] sm:$0xf]  ;;  %v8745_v51 = vrot.slane %v3889_v21, 4 }
  0xfa   : > { %6621 = vmatprep.mubr.bf16.mxu0 %v6862_v36  ;;  %6649 = vmatprep.subr.bf16.mxu1 %v6872_v60  ;;  %v8733_v36 = vsel %vm7413_vm5, %v5994_v45, %v4610_v59  ;;  %v10047_v0 = vcombine.low %v8368_v16, %v8373_v53  ;;  %v8749_v59 = vsel %vm7413_vm5, %v4612_v48, %v4613_v49  ;;  %v3923_v45 = vrot.slane %v3921_v1, 4  ;;  %v8756_v16 = vpop.f32.mrf.mxu0  ;;  %v5902_v1 = vld [vmem:[%s7071_s26 + $0x50] sm:$0x1] }
  0xfb   : > { %6698 = vmatpush3.bf16.msra.mxu0 %v6873_v23  ;;  %v8743_v23 = vpop.f32.mrf.mxu1  ;;  %v3926_v10 = vrot.slane %v3924_v18, 5  ;;  %10050 = vst [vmem:[#allocation9_spill] sm:$0xff] %v8756_v16  ;;  %v5995_v53 = vrot.slane %v5979_v14, 9  ;;  %v3936_v21 = vrot.slane %v3934_v63, 4  ;;  %v3904_v48 = vrot.slane %v3903_v55, 4 }
  0xfc   : > { %6570 = vmatmul.mubr.bf16.gmra.mxu1 %v10047_v0  ;;  %10048 = vst [vmem:[#allocation8_spill] sm:$0xff] %v8743_v23  ;;  %6699 = vmatprep.subr.bf16.mxu0 %v6877_v30  ;;  %v8758_v0 = vrot.slane %v3930_v15, 5  ;;  %v3945_v23 = vshrl.u32 %v5903_v39, 16  ;;  %v3918_v49 = vrot.slane %v3916_v54, 5  ;;  %v3948_v18 = vshll.u32 %v5903_v39, 16  ;;  %v8774_v39 = vpop.f32.mrf.mxu0 }
  0xfd   : > { %6573 = vmatprep.mubr.bf16.mxu1 %v10049_v37  ;;  %6650 = vmatpush3.bf16.msra.mxu1 %v6872_v60  ;;  %v3954_v52 = vshll.u32 %v8738_v22, 16  ;;  %v3914_v12 = vrot.slane %v3913_v2, 4  ;;  %v4619_v46 = vrot.slane %v4617_v31, 4  ;;  %v4620_v37 = vrot.slane %v8699_v28, 5  ;;  %v8764_v60 = vpop.f32.mrf.mxu1  ;;  %v5906_v55 = vld [vmem:[%s7071_s26 + $0x60] sm:$0xf] }
  0xfe   : > { %6651 = vmatprep.subr.bf16.mxu1 %v6876_v42  ;;  %v3958_v14 = vshrl.u32 %v8738_v22, 16  ;;  %10051 = vst [vmem:[#allocation10_spill] sm:$0xff] %v8764_v60  ;;  %v3895_v15 = vsel %vm7102_vm2, %v8745_v51, %v8722_v43  ;;  %v3927_v63 = vor.u32 %v3926_v10, %v3923_v45  ;;  %v3937_v28 = vor.u32 %v3936_v21, %v8758_v0  ;;  %v5980_v60 = vld [vmem:[%s7071_s26 + $0x48] sm:$0xe] }
  0xff   : > { %6700 = vmatpush3.bf16.msra.mxu0 %v6877_v30  ;;  %v4624_v30 = vrot.slane %v8692_v33, 5  ;;  %v3940_v2 = vshll.u32 %v5902_v1, 16  ;;  %v3947_v16 = vrot.slane %v3945_v23, 4  ;;  %v3950_v62 = vrot.slane %v3948_v18, 5  ;;  %v8799_v10 = vpop.f32.mrf.mxu1 }
 0x100   : > { %v3909_v43 = vsel %vm7102_vm2, %v3904_v48, %v8701_v11  ;;  %v8783_v33 = vsel %vm7413_vm5, %v5995_v53, %v4617_v31  ;;  %v3919_v51 = vsel %vm7102_vm2, %v3914_v12, %v3918_v49  ;;  %v8791_v23 = vsel %vm7413_vm5, %v4619_v46, %v4620_v37  ;;  %10053 = vst [vmem:[#allocation11_spill] sm:$0xff] %v8799_v10  ;;  %v8802_v49 = vld [vmem:[%s7071_s26 + $0x64] sm:$0xf]  ;;  %v6867_v12 = vld [vmem:[%s7071_s26 + $0x9c] sm:$0xff]   ;;  %v8808_v46 = vpop.f32.mrf.mxu0 }
 0x101   : > { %6622 = vmatmul.mubr.bf16.gmra.mxu0 %v6863_v6  ;;  %6652 = vmatpush3.bf16.msra.mxu1 %v6876_v42  ;;  %v8785_v6 = vrot.slane %v3954_v52, 5  ;;  %v3960_v42 = vrot.slane %v3958_v14, 4  ;;  %v3969_v45 = vshrl.u32 %v5906_v55, 16  ;;  %v3972_v11 = vshll.u32 %v5906_v55, 16  ;;  %v6870_v55 = vld [vmem:[%s7071_s26 + $0xa8] sm:$0xff]  }
 0x102   : > { %6625 = vmatprep.mubr.bf16.mxu0 %v6866_v47  ;;  %v8794_v47 = vld [vmem:[%s7071_s26 + $0x5c] sm:$0x1]  ;;  %v10052_v31 = vcombine.low %v8401_v34, %v8410_v17  ;;  %v3928_v52 = vrot.slane %v3927_v63, 4  ;;  %v5996_v53 = vrot.slane %v5980_v60, 9  ;;  %v4626_v21 = vrot.slane %v4624_v30, 4 }
 0x103   : > { %v4627_v48 = vrot.slane %v5902_v1, 5  ;;  %v10054_v18 = vcombine.low %v8427_v32, %v8431_v58  ;;  %v3938_v37 = vrot.slane %v3937_v28, 4  ;;  %v3942_v14 = vrot.slane %v3940_v2, 5  ;;  %v5981_v63 = vld [vmem:[%s7071_s26 + $0x54] sm:$0xe]  ;;  %v8826_v28 = vpop.f32.mrf.mxu1 }
 0x104   : > { %6574 = vmatmul.mubr.bf16.gmra.mxu1 %v10052_v31  ;;  %v3951_v34 = vor.u32 %v3950_v62, %v3947_v16  ;;  %v4631_v17 = vrot.slane %v8738_v22, 5  ;;  %v3961_v60 = vor.u32 %v3960_v42, %v8785_v6  ;;  %v3964_v1 = vshll.u32 %v8794_v47, 16  ;;  %10056 = vst [vmem:[#allocation12_spill] sm:$0xff] %v8826_v28  ;;  %v5982_v62 = vld [vmem:[%s7071_s26 + $0x60] sm:$0xe] }
 0x105   : > { %6577 = vmatprep.mubr.bf16.mxu1 %v10054_v18  ;;  %v3971_v31 = vrot.slane %v3969_v45, 4  ;;  %v3974_v54 = vrot.slane %v3972_v11, 5  ;;  %v10055_v32 = vsel %vm7102_vm2, %v8694_v50, %v8638_v7  ;;  %v3978_v22 = vshll.u32 %v8802_v49, 16 }
 0x106   : > { %v8820_v58 = vcombine.low %v10055_v32, %v3895_v15  ;;  %v3982_v16 = vshrl.u32 %v8802_v49, 16  ;;  %v8828_v2 = vcombine.low %v3909_v43, %v3919_v51  ;;  %v3933_v42 = vsel %vm7102_vm2, %v3928_v52, %v8758_v0  ;;  %v5909_v15 = vld [vmem:[%s7071_s26 + $0x6c] sm:$0xf]  ;;  %v8846_v32 = vld [vmem:[%s7071_s26 + $0x70] sm:$0xf] }
 0x107   : > { %v8835_v7 = vsel %vm7413_vm5, %v5996_v53, %v4624_v30  ;;  %v8839_v50 = vsel %vm7413_vm5, %v4626_v21, %v4627_v48  ;;  %v8842_v45 = vpop.f32.mrf.mxu0  ;;  %v3952_v43 = vrot.slane %v3951_v34, 4  ;;  %v5997_v51 = vrot.slane %v5981_v63, 9  ;;  %v5908_v53 = vld [vmem:[%s7071_s26 + $0x68] sm:$0x1] }
 0x108   : > { %10057 = vst [vmem:[#allocation13_spill] sm:$0xff] %v8842_v45  ;;  %v4633_v11 = vrot.slane %v4631_v17, 4  ;;  %v4634_v18 = vrot.slane %v8794_v47, 5  ;;  %v3943_v0 = vsel %vm7102_vm2, %v3938_v37, %v3942_v14  ;;  %v3962_v30 = vrot.slane %v3961_v60, 4  ;;  %v5984_v45 = vld [vmem:[%s7071_s26 + $0x78] sm:$0xe] }
 0x109   : > { %6626 = vmatmul.mubr.bf16.gmra.mxu0 %v6867_v12  ;;  %v3966_v52 = vrot.slane %v3964_v1, 5  ;;  %v3975_v21 = vor.u32 %v3974_v54, %v3971_v31  ;;  %v8851_v48 = vrot.slane %v3978_v22, 5  ;;  %v3984_v12 = vrot.slane %v3982_v16, 4  ;;  %v6871_v31 = vld [vmem:[%s7071_s26 + $0xb4] sm:$0xff]  }
 0x10a   : > { %6629 = vmatprep.mubr.bf16.mxu0 %v6870_v55  ;;  %v3993_v34 = vshrl.u32 %v5909_v15, 16  ;;  %v3996_v63 = vshll.u32 %v5909_v15, 16  ;;  %v10058_v47 = vcombine.low %v8447_v5, %v8452_v25  ;;  %v4638_v14 = vrot.slane %v8802_v49, 5  ;;  %v8868_v5 = vpop.f32.mrf.mxu0 }
 0x10b   : > { %v4002_v54 = vshll.u32 %v8846_v32, 16  ;;  %v4006_v60 = vshrl.u32 %v8846_v32, 16  ;;  %v10060_v1 = vcombine.low %v8465_v9, %v8459_v29  ;;  %10061 = vst [vmem:[#allocation15_spill] sm:$0xff] %v8868_v5  ;;  %v8870_v25 = vcombine.low %v3933_v42, %v3943_v0  ;;  %v5912_v29 = vld [vmem:[%s7071_s26 + $0x78] sm:$0xf]  ;;  %v6874_v9 = vld [vmem:[%s7071_s26 + $0xc0] sm:$0xff]  }
 0x10c   : > { %6578 = vmatmul.mubr.bf16.gmra.mxu1 %v10058_v47  ;;  %v8857_v55 = vpop.f32.mrf.mxu1  ;;  %v3957_v22 = vsel %vm7102_vm2, %v3952_v43, %v8785_v6  ;;  %v8877_v49 = vsel %vm7413_vm5, %v5997_v51, %v4631_v17  ;;  %v8881_v16 = vsel %vm7413_vm5, %v4633_v11, %v4634_v18  ;;  %v3967_v15 = vsel %vm7102_vm2, %v3962_v30, %v3966_v52  ;;  %v8894_v43 = vld [vmem:[%s7071_s26 + $0x74] sm:$0x1]  ;;  %v8951_v5 = vld [vmem:[%s7071_s26 + $0x8c] sm:$0x1] }
 0x10d   : > { %10059 = vst [vmem:[#allocation14_spill] sm:$0xff] %v8857_v55  ;;  %6581 = vmatprep.mubr.bf16.mxu1 %v10060_v1  ;;  %v8887_v47 = vrot.slane %v3975_v21, 4  ;;  %v3988_v42 = vshll.u32 %v5908_v53, 16  ;;  %v5998_v0 = vrot.slane %v5982_v62, 9  ;;  %v8890_v1 = vld [vmem:[%s7071_s26 + $0x7c] sm:$0xf]  ;;  %v3985_v6 = vor.u32 %v3984_v12, %v8851_v48  ;;  %v8900_v21 = vpop.f32.mrf.mxu0 }
 0x10e   : > { %v4641_v17 = vrot.slane %v5908_v53, 5  ;;  %v3995_v51 = vrot.slane %v3993_v34, 4  ;;  %v3998_v11 = vrot.slane %v3996_v63, 5  ;;  %v8896_v18 = vpop.f32.mrf.mxu1  ;;  %v4640_v37 = vrot.slane %v4638_v14, 4  ;;  %10063 = vst [vmem:[#allocation17_spill] sm:$0xff] %v8900_v21 }
 0x10f   : > { %10062 = vst [vmem:[#allocation16_spill] sm:$0xff] %v8896_v18  ;;  %v8898_v55 = vrot.slane %v4002_v54, 5  ;;  %v4008_v30 = vrot.slane %v4006_v60, 4  ;;  %v4017_v52 = vshrl.u32 %v5912_v29, 16  ;;  %v5983_v53 = vld [vmem:[%s7071_s26 + $0x6c] sm:$0xe]  ;;  %v8907_v18 = vcombine.low %v3957_v22, %v3967_v15 }
 0x110   : > { %v4020_v12 = vshll.u32 %v5912_v29, 16  ;;  %v4026_v34 = vshll.u32 %v8890_v1, 16  ;;  %v4030_v63 = vshrl.u32 %v8890_v1, 16  ;;  %v8909_v54 = vrot.slane %v3988_v42, 5  ;;  %v5915_v62 = vld [vmem:[%s7071_s26 + $0x84] sm:$0xf]  ;;  %v8930_v42 = vpop.f32.mrf.mxu1 }
 0x111   : > { %6630 = vmatmul.mubr.bf16.gmra.mxu0 %v6871_v31  ;;  %10064 = vst [vmem:[#allocation18_spill] sm:$0xff] %v8907_v18  ;;  %v8913_v60 = vsel %vm7413_vm5, %v5998_v0, %v4638_v14  ;;  %v4012_v31 = vshll.u32 %v8894_v43, 16  ;;  %v8921_v28 = vrot.slane %v3985_v6, 4  ;;  %v4645_v22 = vrot.slane %v8846_v32, 5  ;;  %v8925_v15 = vld [vmem:[%s7071_s26 + $0x88] sm:$0xf] }
 0x112   : > { %6633 = vmatprep.mubr.bf16.mxu0 %v6874_v9  ;;  %v3999_v9 = vor.u32 %v3998_v11, %v3995_v51  ;;  %v10065_v14 = vcombine.low %v8474_v4, %v8478_v13  ;;  %10066 = vst [vmem:[#allocation19_spill] sm:$0xff] %v8930_v42  ;;  %v6875_v0 = vld [vmem:[%s7071_s26 + $0xcc] sm:$0xff]   ;;  %v8935_v10 = vsel %vm7413_vm5, %v4640_v37, %v4641_v17  ;;  %v5999_v6 = vrot.slane %v5983_v53, 9  ;;  %v8938_v11 = vpop.f32.mrf.mxu0  ;;  %v8944_v4 = vld [vmem:[%s7071_s26 + $0x80] sm:$0x1] }
 0x113   : > { %v4009_v29 = vor.u32 %v4008_v30, %v8898_v55  ;;  %v4019_v51 = vrot.slane %v4017_v52, 4  ;;  %10067 = vst [vmem:[#allocation20_spill] sm:$0xff] %v8938_v11  ;;  %v10068_v32 = vcombine.low %v8509_v26, %v8513_v35  ;;  %v4022_v13 = vrot.slane %v4020_v12, 5 }
 0x114   : > { %6582 = vmatmul.mubr.bf16.gmra.mxu1 %v10065_v14  ;;  %v8946_v14 = vrot.slane %v4026_v34, 5  ;;  %v4032_v42 = vrot.slane %v4030_v63, 4  ;;  %v4041_v21 = vshrl.u32 %v5915_v62, 16  ;;  %v4014_v37 = vrot.slane %v4012_v31, 5 }
 0x115   : > { %6585 = vmatprep.mubr.bf16.mxu1 %v10068_v32  ;;  %v4648_v17 = vrot.slane %v8894_v43, 5  ;;  %v4044_v30 = vshll.u32 %v5915_v62, 16  ;;  %v4050_v52 = vshll.u32 %v8925_v15, 16  ;;  %v4000_v53 = vrot.slane %v3999_v9, 4  ;;  %v8954_v32 = vpop.f32.mrf.mxu1 }
 0x116   : > { %v4647_v11 = vrot.slane %v4645_v22, 4  ;;  %v4043_v26 = vrot.slane %v4041_v21, 4  ;;  %v4054_v35 = vshrl.u32 %v8925_v15, 16  ;;  %v4010_v12 = vrot.slane %v4009_v29, 4 }
 0x117   : > { %v4036_v34 = vshll.u32 %v8944_v4, 16  ;;  %v4046_v63 = vrot.slane %v4044_v30, 5  ;;  %v8957_v31 = vrot.slane %v4050_v52, 5  ;;  %v4023_v62 = vor.u32 %v4022_v13, %v4019_v51  ;;  %v5985_v52 = vld [vmem:[%s7071_s26 + $0x84] sm:$0xe] }
 0x118   : > { %v8959_v43 = vpop.f32.mrf.mxu0  ;;  %v4033_v9 = vor.u32 %v4032_v42, %v8946_v14  ;;  %v4652_v21 = vrot.slane %v8890_v1, 5  ;;  %v4056_v18 = vrot.slane %v4054_v35, 4  ;;  %v10069_v29 = vcombine.low %v8605_v41, %v8620_v3 }
 0x119   : > { %6634 = vmatmul.mubr.bf16.gmra.mxu0 %v6875_v0  ;;  %v3991_v30 = vsel %vm7102_vm2, %v8921_v28, %v8909_v54  ;;  %v8975_v51 = vsel %vm7413_vm5, %v5999_v6, %v4645_v22  ;;  %v4060_v42 = vshll.u32 %v8951_v5, 16  ;;  %v4005_v41 = vsel %vm7102_vm2, %v4000_v53, %v8898_v55  ;;  %v5918_v54 = vld [vmem:[%s7071_s26 + $0x90] sm:$0xf] }
 0x11a   : > { %6701 = vmatprep.mubr.bf16.mxu0 %v10069_v29  ;;  %v8978_v1 = vpop.f32.mrf.mxu0  ;;  %v4047_v3 = vor.u32 %v4046_v63, %v4043_v26  ;;  %v4057_v13 = vor.u32 %v4056_v18, %v8957_v31  ;;  %v4659_v28 = vrot.slane %v8925_v15, 5  ;;  %v10071_v22 = vcombine.low %v8522_v44, %v8527_v8 }
 0x11b   : > { %v4015_v6 = vsel %vm7102_vm2, %v4010_v12, %v4014_v37  ;;  %v8996_v55 = vsel %vm7413_vm5, %v4647_v11, %v4648_v17  ;;  %v4038_v53 = vrot.slane %v4036_v34, 5  ;;  %v6000_v18 = vrot.slane %v5984_v45, 9  ;;  %v9005_v12 = vld [vmem:[%s7071_s26 + $0x94] sm:$0xf] }
 0x11c   : > { %v8987_v35 = vpop.f32.mrf.mxu1  ;;  %6586 = vmatmul.mubr.bf16.gmra.mxu1 %v10071_v22  ;;  %v8998_v26 = vpop.f32.mrf.mxu0  ;;  %v4024_v15 = vrot.slane %v4023_v62, 4  ;;  %v4034_v63 = vrot.slane %v4033_v9, 4  ;;  %v4654_v29 = vrot.slane %v4652_v21, 4  ;;  %v4655_v0 = vrot.slane %v8944_v4, 5 }
 0x11d   : > { %10070 = vst [vmem:[#allocation21_spill] sm:$0xff] %v8987_v35  ;;  %6653 = vmatprep.mubr.bf16.mxu1 %v8714_v40  ;;  %v4062_v8 = vrot.slane %v4060_v42, 5  ;;  %v6001_v37 = vrot.slane %v5985_v52, 9  ;;  %v4065_v11 = vshrl.u32 %v5918_v54, 16  ;;  %v4068_v17 = vshll.u32 %v5918_v54, 16 }
 0x11e   : > { %v9002_v44 = vpop.f32.mrf.mxu1  ;;  %v9007_v34 = vpop.f32.mrf.mxu0  ;;  %v4048_v45 = vrot.slane %v4047_v3, 4  ;;  %v4058_v22 = vrot.slane %v4057_v13, 4  ;;  %v4661_v40 = vrot.slane %v4659_v28, 4  ;;  %v4662_v62 = vrot.slane %v8951_v5, 5  ;;  %v9028_v54 = vld [vmem:[%s7071_s26 + $0x98] sm:$0x1] }
 0x11f   : > { %10072 = vst [vmem:[#allocation22_spill] sm:$0xff] %v9002_v44  ;;  %v10074_v4 = vsel %vm7102_vm2, %v8887_v47, %v8851_v48  ;;  %v9019_v52 = vcombine.low %v4005_v41, %v4015_v6  ;;  %v9025_v13 = vsel %vm7413_vm5, %v6000_v18, %v4652_v21  ;;  %v4029_v48 = vsel %vm7102_vm2, %v4024_v15, %v8946_v14  ;;  %v5921_v41 = vld [vmem:[%s7071_s26 + $0x9c] sm:$0xf]  ;;  %v9045_v6 = vld [vmem:[%s7071_s26 + $0xa0] sm:$0xf] }
 0x120   : > { %v9010_v9 = vpop.f32.mrf.mxu1  ;;  %v9017_v42 = vcombine.low %v10074_v4, %v3991_v30  ;;  %v6415_v5 = vpop.f32.mrf.mxu0  ;;  %v4039_v47 = vsel %vm7102_vm2, %v4034_v63, %v4038_v53  ;;  %v9040_v30 = vsel %vm7413_vm5, %v4654_v29, %v4655_v0  ;;  %v4074_v21 = vshll.u32 %v9005_v12, 16  ;;  %v9132_v35 = vld [vmem:[%s7071_s26 + $0xb0] sm:$0x1] }
 0x121   : > { %10073 = vst [vmem:[#allocation23_spill] sm:$0xff] %v9010_v9  ;;  %v10075_v9 = vcombine.low %v8677_v20, %v8681_v19  ;;  %v10077_v20 = vcombine.low %v8733_v36, %v8749_v59  ;;  %v9054_v19 = vsel %vm7413_vm5, %v6001_v37, %v4659_v28  ;;  %v4067_v14 = vrot.slane %v4065_v11, 4  ;;  %v9069_v37 = vld [vmem:[%s7071_s26 + $0x90] sm:$0xe] }
 0x122   : > { %v9047_v18 = vpop.f32.mrf.mxu1  ;;  %v4070_v53 = vrot.slane %v4068_v17, 5  ;;  %v4078_v0 = vshrl.u32 %v9005_v12, 16  ;;  %v1591_v15 = vpop.f32.mrf.mxu0  ;;  %v4053_v63 = vsel %vm7102_vm2, %v4048_v45, %v8957_v31  ;;  %v4063_v29 = vsel %vm7102_vm2, %v4058_v22, %v4062_v8 }
 0x123   : > { %6702 = vmatmul.mubr.bf16.vlgmr.msra.gmra.mxu0 %v10075_v9  ;;  %10076 = vst [vmem:[#allocation24_spill] sm:$0xff] %v9047_v18  ;;  %v9064_v36 = vsel %vm7413_vm5, %v4661_v40, %v4662_v62  ;;  %v4084_v59 = vshll.u32 %v9028_v54, 16  ;;  %v4089_v11 = vshrl.u32 %v5921_v41, 16  ;;  %v4092_v17 = vshll.u32 %v5921_v41, 16 }
 0x124   : > { %6705 = vmatprep.mubr.bf16.mxu0 %v10077_v20  ;;  %v6367_v28 = vpop.f32.mrf.mxu1  ;;  %6654 = vmatmul.mubr.bf16.vlgmr.msra.gmra.mxu1 %v8720_v61  ;;  %v4098_v9 = vshll.u32 %v9045_v6, 16  ;;  %v4102_v31 = vshrl.u32 %v9045_v6, 16  ;;  %v6416_v45 = vpop.f32.mrf.mxu0  ;;  %v9075_v22 = vcombine.low %v4029_v48, %v4039_v47  ;;  %v9079_v40 = vrot.slane %v4074_v21, 5  ;;  %v9093_v61 = vld [vmem:[%s7071_s26 + $0xa4] sm:$0x1] }
 0x125   : > { %v1147_v8 = vadd.f32 %v6367_v28, %v8570_v24  ;;  %6657 = vmatprep.mubr.bf16.mxu1 %v8820_v58  ;;  %v9081_v4 = vcombine.low %v4053_v63, %v4063_v29  ;;  %v4071_v20 = vor.u32 %v4070_v53, %v4067_v14  ;;  %v4080_v24 = vrot.slane %v4078_v0, 4  ;;  %v5924_v28 = vld [vmem:[%s7071_s26 + $0xa8] sm:$0xf]  ;;  %v9098_v14 = vld [vmem:[%s7071_s26 + $0xac] sm:$0xf] }
 0x126   : > { %v1138_v62 = vpop.f32.mrf.mxu1  ;;  %v1594_v48 = vpop.f32.mrf.mxu0  ;;  %v9089_v47 = vrot.slane %v4084_v59, 5  ;;  %v6002_v21 = vrot.slane %v9069_v37, 9  ;;  %v4091_v29 = vrot.slane %v4089_v11, 4  ;;  %v4094_v18 = vrot.slane %v4092_v17, 5 }
 0x127   : > { %v9086_v3 = vadd.f32 %v6415_v5, %v1147_v8  ;;  %v1139_v58 = vadd.f32 %v1138_v62, %v8591_v57  ;;  %v9095_v44 = vrot.slane %v4098_v9, 5  ;;  %v4104_v41 = vrot.slane %v4102_v31, 4  ;;  %v10083_v62 = vld [vmem:[#allocation3_spill] sm:$0xff] }
 0x128   : > { %v6368_v63 = vpop.f32.mrf.mxu1  ;;  %v6419_v5 = vpop.f32.mrf.mxu0  ;;  %v10080_v0 = vcombine.low %v8783_v33, %v8791_v23  ;;  %v4113_v59 = vshrl.u32 %v5924_v28, 16  ;;  %v4116_v37 = vshll.u32 %v5924_v28, 16  ;;  %v10081_v11 = vcombine.low %v8835_v7, %v8839_v50 }
 0x129   : > { %10078 = vst [vmem:[#allocation25_spill] sm:$0xff] %v9086_v3  ;;  %v9100_v53 = vadd.f32 %v1591_v15, %v1139_v58  ;;  %v1150_v57 = vadd.f32 %v6368_v63, %v8627_v38  ;;  %v9109_v17 = vrot.slane %v4071_v20, 4  ;;  %v4081_v15 = vor.u32 %v4080_v24, %v9079_v40  ;;  %v5987_v58 = vld [vmem:[%s7071_s26 + $0x9c] sm:$0xe] }
 0x12a   : > { %v1141_v8 = vpop.f32.mrf.mxu1  ;;  %v4666_v9 = vrot.slane %v9005_v12, 5  ;;  %v4108_v38 = vshll.u32 %v9093_v61, 16  ;;  %v1607_v23 = vpop.f32.mrf.mxu0  ;;  %v4669_v28 = vrot.slane %v9028_v54, 5  ;;  %v4122_v63 = vshll.u32 %v9098_v14, 16 }
 0x12b   : > { %10079 = vst [vmem:[#allocation26_spill] sm:$0xff] %v9100_v53  ;;  %6706 = vmatmul.mubr.bf16.gmra.mxu0 %v10080_v0  ;;  %v9114_v31 = vadd.f32 %v6416_v45, %v1150_v57  ;;  %v1142_v33 = vadd.f32 %v1141_v8, %v10083_v62  ;;  %v4095_v50 = vor.u32 %v4094_v18, %v4091_v29  ;;  %v4673_v12 = vrot.slane %v9045_v6, 5  ;;  %v10084_v57 = vld [vmem:[#allocation7_spill] sm:$0xff]  ;;  %v10085_v6 = vld [vmem:[#allocation9_spill] sm:$0xff] }
 0x12c   : > { %6709 = vmatprep.mubr.bf16.mxu0 %v10081_v11  ;;  %v6371_v7 = vpop.f32.mrf.mxu1  ;;  %6658 = vmatmul.mubr.bf16.gmra.mxu1 %v8828_v2  ;;  %v4105_v20 = vor.u32 %v4104_v41, %v9095_v44  ;;  %v4126_v45 = vshrl.u32 %v9098_v14, 16  ;;  %v6420_v8 = vpop.f32.mrf.mxu0  ;;  %v4115_v54 = vrot.slane %v4113_v59, 4  ;;  %v4118_v11 = vrot.slane %v4116_v37, 5 }
 0x12d   : > { %10082 = vst [vmem:[#allocation27_spill] sm:$0xff] %v9114_v31  ;;  %v9124_v24 = vadd.f32 %v1594_v48, %v1142_v33  ;;  %v1163_v0 = vadd.f32 %v6371_v7, %v10084_v57  ;;  %6661 = vmatprep.mubr.bf16.mxu1 %v8870_v25  ;;  %v4082_v31 = vrot.slane %v4081_v15, 4  ;;  %v4668_v2 = vrot.slane %v4666_v9, 4 }
 0x12e   : > { %v1154_v62 = vpop.f32.mrf.mxu1  ;;  %v4110_v18 = vrot.slane %v4108_v38, 5  ;;  %v6003_v29 = vrot.slane %v5987_v58, 9  ;;  %v1610_v3 = vpop.f32.mrf.mxu0  ;;  %v9134_v48 = vrot.slane %v4122_v63, 5  ;;  %v4128_v33 = vrot.slane %v4126_v45, 4 }
 0x12f   : > { %v9128_v41 = vadd.f32 %v6419_v5, %v1163_v0  ;;  %v1155_v53 = vadd.f32 %v1154_v62, %v10085_v6  ;;  %v4096_v57 = vrot.slane %v4095_v50, 4  ;;  %v4106_v25 = vrot.slane %v4105_v20, 4 }
 0x130   : > { %v6372_v7 = vpop.f32.mrf.mxu1  ;;  %v4675_v59 = vrot.slane %v4673_v12, 4  ;;  %v4676_v37 = vrot.slane %v9093_v61, 5  ;;  %v6423_v38 = vpop.f32.mrf.mxu0  ;;  %v10086_v58 = vcombine.low %v8877_v49, %v8881_v16  ;;  %v9145_v63 = vsel %vm7413_vm5, %v6002_v21, %v4666_v9  ;;  %v5988_v21 = vld [vmem:[%s7071_s26 + $0xa8] sm:$0xe] }
 0x131   : > { %v9137_v15 = vadd.f32 %v1607_v23, %v1155_v53  ;;  %v1166_v5 = vadd.f32 %v6372_v7, %v8774_v39  ;;  %v4119_v50 = vor.u32 %v4118_v11, %v4115_v54  ;;  %v10087_v20 = vcombine.low %v8913_v60, %v8935_v10 }
 0x132   : > { %v1157_v45 = vpop.f32.mrf.mxu1  ;;  %v4077_v39 = vsel %vm7102_vm2, %v9109_v17, %v9079_v40  ;;  %v4087_v49 = vsel %vm7102_vm2, %v4082_v31, %v9089_v47  ;;  %v9159_v16 = vsel %vm7413_vm5, %v4668_v2, %v4669_v28  ;;  %v4132_v61 = vshll.u32 %v9132_v35, 16  ;;  %v1623_v60 = vpop.f32.mrf.mxu0  ;;  %v5927_v17 = vld [vmem:[%s7071_s26 + $0xb4] sm:$0xf]  ;;  %v10088_v47 = vld [vmem:[#allocation18_spill] sm:$0xff]  ;;  %v9188_v2 = vld [vmem:[%s7071_s26 + $0xb8] sm:$0xf] }
 0x133   : > { %6710 = vmatmul.mubr.bf16.gmra.mxu0 %v10086_v58  ;;  %v9163_v53 = vadd.f32 %v6420_v8, %v1166_v5  ;;  %v1158_v10 = vadd.f32 %v1157_v45, %v8808_v46  ;;  %v4129_v9 = vor.u32 %v4128_v33, %v9134_v48  ;;  %v4680_v40 = vrot.slane %v9098_v14, 5  ;;  %v10089_v8 = vld [vmem:[#allocation13_spill] sm:$0xff] }
 0x134   : > { %6713 = vmatprep.mubr.bf16.mxu0 %v10087_v20  ;;  %v6375_v23 = vpop.f32.mrf.mxu1  ;;  %6662 = vmatmul.mubr.bf16.gmra.mxu1 %v10088_v47  ;;  %v4101_v31 = vsel %vm7102_vm2, %v4096_v57, %v9095_v44  ;;  %v4111_v28 = vsel %vm7102_vm2, %v4106_v25, %v4110_v18  ;;  %v9177_v46 = vsel %vm7413_vm5, %v6003_v29, %v4673_v12  ;;  %v6424_v11 = vpop.f32.mrf.mxu0  ;;  %v4120_v62 = vrot.slane %v4119_v50, 4  ;;  %v10090_v57 = vld [vmem:[#allocation15_spill] sm:$0xff]  ;;  %v10094_v47 = vld [vmem:[#allocation20_spill] sm:$0xff] }
 0x135   : > { %v9181_v0 = vsel %vm7413_vm5, %v4675_v59, %v4676_v37  ;;  %v9183_v14 = vadd.f32 %v1610_v3, %v1158_v10  ;;  %v1179_v54 = vadd.f32 %v6375_v23, %v10089_v8  ;;  %6665 = vmatprep.mubr.bf16.mxu1 %v9017_v42  ;;  %v6004_v44 = vrot.slane %v5988_v21, 9 }
 0x136   : > { %v1170_v18 = vpop.f32.mrf.mxu1  ;;  %v4134_v6 = vrot.slane %v4132_v61, 5  ;;  %v4683_v12 = vrot.slane %v9132_v35, 5  ;;  %v4137_v29 = vshrl.u32 %v5927_v17, 16  ;;  %v4140_v33 = vshll.u32 %v5927_v17, 16  ;;  %v1626_v25 = vpop.f32.mrf.mxu0 }
 0x137   : > { %v9191_v7 = vadd.f32 %v6423_v38, %v1179_v54  ;;  %v1171_v3 = vadd.f32 %v1170_v18, %v10090_v57  ;;  %v4130_v59 = vrot.slane %v4129_v9, 4  ;;  %v4682_v37 = vrot.slane %v4680_v40, 4  ;;  %v10091_v38 = vld [vmem:[#allocation17_spill] sm:$0xff] }
 0x138   : > { %v6376_v42 = vpop.f32.mrf.mxu1  ;;  %v9194_v5 = vcombine.low %v4077_v39, %v4087_v49  ;;  %v6034_v58 = vcombine.low %v9145_v63, %v9159_v16  ;;  %v9198_v50 = vcombine.low %v4101_v31, %v4111_v28  ;;  %v4146_v35 = vshll.u32 %v9188_v2, 16  ;;  %v6427_v61 = vpop.f32.mrf.mxu0  ;;  %v5930_v49 = vld [vmem:[%s7071_s26 + $0xc0] sm:$0xf]  ;;  %v9212_v16 = vld [vmem:[%s7071_s26 + $0xc4] sm:$0xf] }
 0x139   : > { %v9201_v45 = vadd.f32 %v1623_v60, %v1171_v3  ;;  %v1182_v20 = vadd.f32 %v6376_v42, %v10091_v38  ;;  %v10092_v21 = vcombine.low %v8975_v51, %v8996_v55  ;;  %v6035_v39 = vcombine.low %v9177_v46, %v9181_v0  ;;  %v10099_v46 = vld [vmem:[#allocation6_spill] sm:$0xff] }
 0x13a   : > { %v4150_v63 = vshrl.u32 %v9188_v2, 16  ;;  %v1173_v10 = vpop.f32.mrf.mxu1  ;;  %v10093_v60 = vcombine.low %v9025_v13, %v9040_v30  ;;  %v4125_v51 = vsel %vm7102_vm2, %v4120_v62, %v9134_v48  ;;  %v9222_v55 = vsel %vm7413_vm5, %v6004_v44, %v4680_v40  ;;  %v1639_v28 = vpop.f32.mrf.mxu0  ;;  %v9234_v30 = vld [vmem:[%s7071_s26 + $0xbc] sm:$0x1]  ;;  %v5989_v48 = vld [vmem:[%s7071_s26 + $0xb4] sm:$0xe] }
 0x13b   : > { %6714 = vmatmul.mubr.bf16.gmra.mxu0 %v10092_v21  ;;  %v4139_v9 = vrot.slane %v4137_v29, 4  ;;  %v4142_v17 = vrot.slane %v4140_v33, 5  ;;  %v9224_v23 = vadd.f32 %v6424_v11, %v1182_v20  ;;  %v1174_v31 = vadd.f32 %v1173_v10, %v10094_v47  ;;  %v9256_v20 = vld [vmem:[%s7071_s26 + $0xc8] sm:$0x1] }
 0x13c   : > { %6717 = vmatprep.mubr.bf16.mxu0 %v10093_v60  ;;  %v4135_v8 = vsel %vm7102_vm2, %v4130_v59, %v4134_v6  ;;  %v9231_v13 = vsel %vm7413_vm5, %v4682_v37, %v4683_v12  ;;  %v6379_v54 = vpop.f32.mrf.mxu1  ;;  %6666 = vmatmul.mubr.bf16.gmra.mxu1 %v9019_v52  ;;  %v9238_v40 = vrot.slane %v4146_v35, 5  ;;  %v4161_v11 = vshrl.u32 %v5930_v49, 16  ;;  %v6428_v29 = vpop.f32.mrf.mxu0 }
 0x13d   : > { %v4164_v62 = vshll.u32 %v5930_v49, 16  ;;  %v4170_v44 = vshll.u32 %v9212_v16, 16  ;;  %v9241_v18 = vadd.f32 %v1626_v25, %v1174_v31  ;;  %v1195_v6 = vadd.f32 %v6379_v54, %v8959_v43  ;;  %6669 = vmatprep.mubr.bf16.mxu1 %v9075_v22 }
 0x13e   : > { %v4152_v12 = vrot.slane %v4150_v63, 4  ;;  %v4174_v33 = vshrl.u32 %v9212_v16, 16  ;;  %v1186_v57 = vpop.f32.mrf.mxu1  ;;  %v4143_v3 = vor.u32 %v4142_v17, %v4139_v9  ;;  %v4156_v52 = vshll.u32 %v9234_v30, 16  ;;  %v1642_v43 = vpop.f32.mrf.mxu0  ;;  %v5933_v9 = vld [vmem:[%s7071_s26 + $0xcc] sm:$0xf] }
 0x13f   : > { %v6005_v59 = vrot.slane %v5989_v48, 9  ;;  %v4687_v37 = vrot.slane %v9188_v2, 5  ;;  %v9248_v42 = vadd.f32 %v6427_v61, %v1195_v6  ;;  %v1187_v25 = vadd.f32 %v1186_v57, %v8978_v1  ;;  %v5990_v48 = vld [vmem:[%s7071_s26 + $0xc0] sm:$0xe] }
 0x140   : > { %v9251_v35 = vcombine.low %v4125_v51, %v4135_v8  ;;  %v6036_v22 = vcombine.low %v9222_v55, %v9231_v13  ;;  %v6380_v38 = vpop.f32.mrf.mxu1  ;;  %v4163_v21 = vrot.slane %v4161_v11, 4  ;;  %v4166_v63 = vrot.slane %v4164_v62, 5  ;;  %v6431_v10 = vpop.f32.mrf.mxu0  ;;  %v9278_v8 = vld [vmem:[%s7071_s26 + $0xd0] sm:$0xf] }
 0x141   : > { %v9258_v49 = vrot.slane %v4170_v44, 5  ;;  %v4176_v2 = vrot.slane %v4174_v33, 4  ;;  %v9260_v61 = vadd.f32 %v1639_v28, %v1187_v25  ;;  %v1198_v1 = vadd.f32 %v6380_v38, %v8998_v26 }
 0x142   : > { %v10095_v60 = vcombine.low %v9054_v19, %v9064_v36  ;;  %v4153_v51 = vor.u32 %v4152_v12, %v9238_v40  ;;  %v4690_v55 = vrot.slane %v9234_v30, 5  ;;  %v1189_v17 = vpop.f32.mrf.mxu1  ;;  %v9269_v47 = vrot.slane %v4143_v3, 4  ;;  %v1655_v13 = vpop.f32.mrf.mxu0 }
 0x143   : > { %v9271_v31 = vrot.slane %v4156_v52, 5  ;;  %v9275_v26 = vsel %vm7413_vm5, %v6005_v59, %v4687_v37  ;;  %v4689_v28 = vrot.slane %v4687_v37, 4  ;;  %v9280_v19 = vadd.f32 %v6428_v29, %v1198_v1  ;;  %v10096_v29 = vld [vmem:[#allocation2_spill] sm:$0xff] }
 0x144   : > { %6718 = vmatmul.mubr.bf16.gmra.mxu0 %v10095_v60  ;;  %v1190_v36 = vadd.f32 %v1189_v17, %v9007_v34  ;;  %v4180_v30 = vshll.u32 %v9256_v20, 16  ;;  %v6383_v54 = vpop.f32.mrf.mxu1  ;;  %6670 = vmatmul.mubr.bf16.gmra.mxu1 %v9081_v4  ;;  %v4167_v11 = vor.u32 %v4166_v63, %v4163_v21  ;;  %v4177_v62 = vor.u32 %v4176_v2, %v9258_v49  ;;  %v6432_v57 = vpop.f32.mrf.mxu0 }
 0x145   : > { %6721 = vmatprep.mubr.bf16.mxu0 %v6034_v58  ;;  %v4694_v58 = vrot.slane %v9212_v16, 5  ;;  %v4185_v44 = vshrl.u32 %v5933_v9, 16  ;;  %v4188_v6 = vshll.u32 %v5933_v9, 16  ;;  %v1211_v33 = vadd.f32 %v6383_v54, %v10096_v29  ;;  %6673 = vmatprep.mubr.bf16.mxu1 %v9194_v5 }
 0x146   : > { %v9288_v12 = vadd.f32 %v1642_v43, %v1190_v36  ;;  %v4194_v34 = vshll.u32 %v9278_v8, 16  ;;  %v4198_v3 = vshrl.u32 %v9278_v8, 16  ;;  %v1202_v16 = vpop.f32.mrf.mxu1  ;;  %v4154_v52 = vrot.slane %v4153_v51, 4  ;;  %v10097_v43 = vld [vmem:[#allocation5_spill] sm:$0xff]  ;;  %v1658_v21 = vpop.f32.mrf.mxu0  ;;  %v10098_v36 = vld [vmem:[#allocation4_spill] sm:$0xff] }
 0x147   : > { %v4691_v4 = vsel %vm7413_vm5, %v4689_v28, %v4690_v55  ;;  %v6006_v59 = vrot.slane %v5990_v48, 9  ;;  %v4697_v37 = vrot.slane %v9256_v20, 5  ;;  %v9297_v25 = vadd.f32 %v6431_v10, %v1211_v33  ;;  %v5935_v20 = vld [vmem:[%s7071_s26 + $0xd4] sm:$0x1] }
 0x148   : > { %v1203_v38 = vadd.f32 %v1202_v16, %v10097_v43  ;;  %v4182_v63 = vrot.slane %v4180_v30, 5  ;;  %v4696_v5 = vrot.slane %v4694_v58, 4  ;;  %v6384_v2 = vpop.f32.mrf.mxu1  ;;  %v4168_v1 = vrot.slane %v4167_v11, 4 }
 0x149   : > { %v4178_v60 = vrot.slane %v4177_v62, 4  ;;  %v4187_v9 = vrot.slane %v4185_v44, 4  ;;  %v4190_v17 = vrot.slane %v4188_v6, 5  ;;  %v1214_v55 = vadd.f32 %v6384_v2, %v10098_v36  ;;  %v6435_v28 = vpop.f32.mrf.mxu0  ;;  %v5991_v6 = vld [vmem:[%s7071_s26 + $0xcc] sm:$0xe] }
 0x14a   : > { %v9300_v51 = vadd.f32 %v1655_v13, %v1203_v38  ;;  %v9307_v10 = vrot.slane %v4194_v34, 5  ;;  %v4200_v30 = vrot.slane %v4198_v3, 4  ;;  %v1205_v48 = vpop.f32.mrf.mxu1  ;;  %v4149_v13 = vsel %vm7102_vm2, %v9269_v47, %v9238_v40 }
 0x14b   : > { %v4159_v54 = vsel %vm7102_vm2, %v4154_v52, %v9271_v31  ;;  %v4701_v11 = vrot.slane %v9278_v8, 5  ;;  %v9317_v62 = vadd.f32 %v6432_v57, %v1214_v55  ;;  %v1206_v0 = vadd.f32 %v1205_v48, %v10099_v46  ;;  %v10100_v57 = vld [vmem:[#allocation8_spill] sm:$0xff] }
 0x14c   : > { %6722 = vmatmul.mubr.bf16.gmra.mxu0 %v6035_v39  ;;  %v1671_v39 = vpop.f32.mrf.mxu0  ;;  %v4695_v44 = vsel %vm7413_vm5, %v6006_v59, %v4694_v58  ;;  %v6387_v29 = vpop.f32.mrf.mxu1  ;;  %6674 = vmatmul.mubr.bf16.gmra.mxu1 %v9198_v50  ;;  %v6037_v40 = vcombine.low %v9275_v26, %v4691_v4  ;;  %v4173_v47 = vsel %vm7102_vm2, %v4168_v1, %v9258_v49  ;;  %v4204_v8 = vshll.u32 %v5935_v20, 16  ;;  %v10103_v48 = vld [vmem:[#allocation12_spill] sm:$0xff] }
 0x14d   : > { %6725 = vmatprep.mubr.bf16.mxu0 %v6036_v22  ;;  %v4698_v22 = vsel %vm7413_vm5, %v4696_v5, %v4697_v37  ;;  %v4191_v31 = vor.u32 %v4190_v17, %v4187_v9  ;;  %v9330_v33 = vadd.f32 %v1658_v21, %v1206_v0  ;;  %v1227_v34 = vadd.f32 %v6387_v29, %v10100_v57  ;;  %v10101_v37 = vld [vmem:[#allocation10_spill] sm:$0xff]  ;;  %v10102_v9 = vld [vmem:[#allocation11_spill] sm:$0xff] }
 0x14e   : > { %v6436_v58 = vpop.f32.mrf.mxu0  ;;  %6677 = vmatprep.mubr.bf16.mxu1 %v9251_v35  ;;  %v4183_v3 = vsel %vm7102_vm2, %v4178_v60, %v4182_v63  ;;  %v4201_v50 = vor.u32 %v4200_v30, %v9307_v10  ;;  %v1218_v16 = vpop.f32.mrf.mxu1  ;;  %v6038_v26 = vcombine.low %v4695_v44, %v4698_v22  ;;  %v6007_v52 = vrot.slane %v5991_v6, 9  ;;  %v10104_v44 = vld [vmem:[#allocation14_spill] sm:$0xff] }
 0x14f   : > { %v4703_v4 = vrot.slane %v4701_v11, 4  ;;  %v4704_v59 = vrot.slane %v5935_v20, 5  ;;  %v9337_v49 = vadd.f32 %v6435_v28, %v1227_v34  ;;  %v1219_v43 = vadd.f32 %v1218_v16, %v10101_v37  ;;  %v10107_v37 = vld [vmem:[#allocation21_spill] sm:$0xff] }
 0x150   : > { %v1674_v38 = vpop.f32.mrf.mxu0  ;;  %v6388_v21 = vpop.f32.mrf.mxu1  ;;  %v5965_v5 = vcombine.low %v4149_v13, %v4159_v54  ;;  %v5966_v2 = vcombine.low %v4173_v47, %v4183_v3  ;;  %v4192_v1 = vrot.slane %v4191_v31, 4  ;;  %v4202_v17 = vrot.slane %v4201_v50, 4  ;;  %v10105_v47 = vld [vmem:[#allocation16_spill] sm:$0xff] }
 0x151   : > { %v9340_v35 = vadd.f32 %v1671_v39, %v1219_v43  ;;  %v1230_v63 = vadd.f32 %v6388_v21, %v10102_v9  ;;  %v4206_v36 = vrot.slane %v4204_v8, 5  ;;  %v4702_v28 = vsel %vm7413_vm5, %v6007_v52, %v4701_v11 }
 0x152   : > { %v6439_v60 = vpop.f32.mrf.mxu0  ;;  %v1221_v55 = vpop.f32.mrf.mxu1  ;;  %v4705_v20 = vsel %vm7413_vm5, %v4703_v4, %v4704_v59  ;;  %v4197_v0 = vsel %vm7102_vm2, %v4192_v1, %v9307_v10  ;;  %v10106_v10 = vld [vmem:[#allocation19_spill] sm:$0xff] }
 0x153   : > { %v9347_v30 = vadd.f32 %v6436_v58, %v1230_v63  ;;  %v1222_v13 = vadd.f32 %v1221_v55, %v10103_v48  ;;  %v4207_v56 = vsel %vm7102_vm2, %v4202_v17, %v4206_v36  ;;  %v6039_v11 = vcombine.low %v4702_v28, %v4705_v20  ;;  %v10109_v17 = vld [vmem:[#allocation23_spill] sm:$0xff]  ;;  %v10110_v20 = vld [vmem:[#allocation24_spill] sm:$0xff] }
 0x154   : > { %6726 = vmatmul.mubr.bf16.gmra.mxu0 %v6037_v40  ;;  %v1687_v54 = vpop.f32.mrf.mxu0  ;;  %v6391_v46 = vpop.f32.mrf.mxu1  ;;  %6678 = vmatmul.mubr.bf16.gmra.mxu1 %v5965_v5  ;;  %v5967_v34 = vcombine.low %v4197_v0, %v4207_v56  ;;  %v10111_v0 = vld [vmem:[#allocation25_spill] sm:$0xff] }
 0x155   : > { %6729 = vmatprep.mubr.bf16.mxu0 %v6038_v26  ;;  %v9353_v39 = vadd.f32 %v1674_v38, %v1222_v13  ;;  %v1243_v22 = vadd.f32 %v6391_v46, %v10104_v44  ;;  %6681 = vmatprep.mubr.bf16.mxu1 %v5966_v2  ;;  %v10108_v2 = vld [vmem:[#allocation22_spill] sm:$0xff] }
 0x156   : > { %v6440_v6 = vpop.f32.mrf.mxu0  ;;  %v1234_v29 = vpop.f32.mrf.mxu1 }
 0x157   : > { %v9358_v40 = vadd.f32 %v6439_v60, %v1243_v22  ;;  %v1235_v31 = vadd.f32 %v1234_v29, %v10105_v47 }
 0x158   : > { %v1690_v8 = vpop.f32.mrf.mxu0  ;;  %v6392_v57 = vpop.f32.mrf.mxu1 }
 0x159   : > { %v9361_v58 = vadd.f32 %v1687_v54, %v1235_v31  ;;  %v1246_v3 = vadd.f32 %v6392_v57, %v10106_v10  ;;  %v10113_v57 = vld [vmem:[#allocation27_spill] sm:$0xff] }
 0x15a   : > { %v6443_v50 = vpop.f32.mrf.mxu0  ;;  %v1237_v16 = vpop.f32.mrf.mxu1 }
 0x15b   : > { %v9364_v26 = vadd.f32 %v6440_v6, %v1246_v3  ;;  %v1238_v27 = vadd.f32 %v1237_v16, %v8954_v32 }
 0x15c   : > { %6730 = vmatmul.mubr.bf16.gmra.mxu0 %v6039_v11  ;;  %v1703_v52 = vpop.f32.mrf.mxu0  ;;  %v6395_v4 = vpop.f32.mrf.mxu1  ;;  %6682 = vmatmul.mubr.bf16.gmra.mxu1 %v5967_v34  ;;  %v10112_v11 = vld [vmem:[#allocation26_spill] sm:$0xff] }
 0x15d   : > { %v9367_v59 = vadd.f32 %v1690_v8, %v1238_v27  ;;  %v1259_v43 = vadd.f32 %v6395_v4, %v10107_v37 }
 0x15e   : > { %v6444_v38 = vpop.f32.mrf.mxu0  ;;  %v1250_v21 = vpop.f32.mrf.mxu1 }
 0x15f   : > { %v9370_v5 = vadd.f32 %v6443_v50, %v1259_v43  ;;  %v1251_v1 = vadd.f32 %v1250_v21, %v10108_v2 }
 0x160   : > { %v1706_v9 = vpop.f32.mrf.mxu0  ;;  %v6396_v63 = vpop.f32.mrf.mxu1 }
 0x161   : > { %v9373_v60 = vadd.f32 %v1703_v52, %v1251_v1  ;;  %v1262_v36 = vadd.f32 %v6396_v63, %v10109_v17 }
 0x162   : > { %v6511_v32 = vpop.f32.mrf.mxu0  ;;  %v1253_v55 = vpop.f32.mrf.mxu1 }
 0x163   : > { %v9376_v28 = vadd.f32 %v6444_v38, %v1262_v36  ;;  %v1254_v48 = vadd.f32 %v1253_v55, %v10110_v20 }
 0x164   : > { %v2732_v13 = vpop.f32.mrf.mxu0  ;;  %v6463_v54 = vpop.f32.mrf.mxu1 }
 0x165   : > { %v9379_v46 = vadd.f32 %v1706_v9, %v1254_v48  ;;  %v2107_v44 = vadd.f32 %v6463_v54, %v10111_v0 }
 0x166   : > { %v6512_v22 = vpop.f32.mrf.mxu0  ;;  %v1978_v6 = vpop.f32.mrf.mxu1 }
 0x167   : > { %v9382_v56 = vadd.f32 %v6511_v32, %v2107_v44  ;;  %v2105_v29 = vadd.f32 %v1978_v6, %v10112_v11 }
 0x168   : > { %v2735_v47 = vpop.f32.mrf.mxu0  ;;  %v6464_v31 = vpop.f32.mrf.mxu1 }
 0x169   : > { %v9385_v8 = vadd.f32 %v2732_v13, %v2105_v29  ;;  %v2108_v34 = vadd.f32 %v6464_v31, %v10113_v57 }
 0x16a   : > { %v6515_v10 = vpop.f32.mrf.mxu0  ;;  %v1981_v3 = vpop.f32.mrf.mxu1 }
 0x16b   : > { %v9388_v50 = vadd.f32 %v6512_v22, %v2108_v34  ;;  %v2106_v16 = vadd.f32 %v1981_v3, %v9124_v24 }
 0x16c   : > { %v2748_v27 = vpop.f32.mrf.mxu0  ;;  %v6467_v52 = vpop.f32.mrf.mxu1 }
 0x16d   : > { %v9391_v4 = vadd.f32 %v2735_v47, %v2106_v16  ;;  %v2111_v37 = vadd.f32 %v6467_v52, %v9128_v41 }
 0x16e   : > { %v6516_v43 = vpop.f32.mrf.mxu0  ;;  %v1994_v38 = vpop.f32.mrf.mxu1 }
 0x16f   : > { %v9394_v21 = vadd.f32 %v6515_v10, %v2111_v37  ;;  %v2109_v2 = vadd.f32 %v1994_v38, %v9137_v15 }
 0x170   : > { %v2751_v1 = vpop.f32.mrf.mxu0  ;;  %v6468_v9 = vpop.f32.mrf.mxu1 }
 0x171   : > { %v9397_v63 = vadd.f32 %v2748_v27, %v2109_v2  ;;  %v2112_v17 = vadd.f32 %v6468_v9, %v9163_v53 }
 0x172   : > { %v6519_v36 = vpop.f32.mrf.mxu0  ;;  %v1997_v24 = vpop.f32.mrf.mxu1 }
 0x173   : > { %v9400_v32 = vadd.f32 %v6516_v43, %v2112_v17  ;;  %v2110_v55 = vadd.f32 %v1997_v24, %v9183_v14 }
 0x174   : > { %v2764_v20 = vpop.f32.mrf.mxu0  ;;  %v6471_v41 = vpop.f32.mrf.mxu1 }
 0x175   : > { %v9403_v48 = vadd.f32 %v2751_v1, %v2110_v55  ;;  %v2115_v13 = vadd.f32 %v6471_v41, %v9191_v7 }
 0x176   : > { %v6520_v54 = vpop.f32.mrf.mxu0  ;;  %v2010_v15 = vpop.f32.mrf.mxu1 }
 0x177   : > { %v9406_v0 = vadd.f32 %v6519_v36, %v2115_v13  ;;  %v2113_v44 = vadd.f32 %v2010_v15, %v9201_v45 }
 0x178   : > { %v2767_v22 = vpop.f32.mrf.mxu0  ;;  %v6472_v53 = vpop.f32.mrf.mxu1 }
 0x179   : > { %v9409_v6 = vadd.f32 %v2764_v20, %v2113_v44  ;;  %v2116_v11 = vadd.f32 %v6472_v53, %v9224_v23 }
 0x17a   : > { %v6523_v29 = vpop.f32.mrf.mxu0  ;;  %v2013_v14 = vpop.f32.mrf.mxu1 }
 0x17b   : > { %v9412_v47 = vadd.f32 %v6520_v54, %v2116_v11  ;;  %v2114_v31 = vadd.f32 %v2013_v14, %v9241_v18 }
 0x17c   : > { %v2780_v57 = vpop.f32.mrf.mxu0  ;;  %v6475_v7 = vpop.f32.mrf.mxu1 }
 0x17d   : > { %v9415_v34 = vadd.f32 %v2767_v22, %v2114_v31  ;;  %v2119_v10 = vadd.f32 %v6475_v7, %v9248_v42 }
 0x17e   : > { %v6524_v3 = vpop.f32.mrf.mxu0  ;;  %v2026_v45 = vpop.f32.mrf.mxu1 }
 0x17f   : > { %v9418_v16 = vadd.f32 %v6523_v29, %v2119_v10  ;;  %v2117_v27 = vadd.f32 %v2026_v45, %v9260_v61 }
 0x180   : > { %v2783_v52 = vpop.f32.mrf.mxu0  ;;  %v6476_v23 = vpop.f32.mrf.mxu1 }
 0x181   : > { %v9421_v37 = vadd.f32 %v2780_v57, %v2117_v27  ;;  %v2120_v43 = vadd.f32 %v6476_v23, %v9280_v19 }
 0x182   : > { %v6527_v38 = vpop.f32.mrf.mxu0  ;;  %v2029_v18 = vpop.f32.mrf.mxu1 }
 0x183   : > { %10114 = vst [vmem:[#allocation3_spill] sm:$0xff] %v9421_v37  ;;  %v9424_v2 = vadd.f32 %v6524_v3, %v2120_v43  ;;  %v2118_v1 = vadd.f32 %v2029_v18, %v9288_v12 }
 0x184   : > { %v2796_v9 = vpop.f32.mrf.mxu0  ;;  %v6479_v42 = vpop.f32.mrf.mxu1 }
 0x185   : > { %10115 = vst [vmem:[#allocation7_spill] sm:$0xff] %v9424_v2  ;;  %v9427_v17 = vadd.f32 %v2783_v52, %v2118_v1  ;;  %v2123_v36 = vadd.f32 %v6479_v42, %v9297_v25 }
 0x186   : > { %v6528_v24 = vpop.f32.mrf.mxu0  ;;  %v2042_v61 = vpop.f32.mrf.mxu1 }
 0x187   : > { %10116 = vst [vmem:[#allocation9_spill] sm:$0xff] %v9427_v17  ;;  %v9430_v55 = vadd.f32 %v6527_v38, %v2123_v36  ;;  %v2121_v20 = vadd.f32 %v2042_v61, %v9300_v51 }
 0x188   : > { %v2799_v41 = vpop.f32.mrf.mxu0  ;;  %v6480_v19 = vpop.f32.mrf.mxu1 }
 0x189   : > { %10117 = vst [vmem:[#allocation18_spill] sm:$0xff] %v9430_v55  ;;  %v9433_v13 = vadd.f32 %v2796_v9, %v2121_v20  ;;  %v2124_v54 = vadd.f32 %v6480_v19, %v9317_v62 }
 0x18a   : > { %v6531_v15 = vpop.f32.mrf.mxu0  ;;  %v2045_v12 = vpop.f32.mrf.mxu1 }
 0x18b   : > { %10118 = vst [vmem:[#allocation13_spill] sm:$0xff] %v9433_v13  ;;  %v9436_v44 = vadd.f32 %v6528_v24, %v2124_v54  ;;  %v2122_v22 = vadd.f32 %v2045_v12, %v9330_v33 }
 0x18c   : > { %v2812_v53 = vpop.f32.mrf.mxu0  ;;  %v6483_v25 = vpop.f32.mrf.mxu1 }
 0x18d   : > { %10119 = vst [vmem:[#allocation15_spill] sm:$0xff] %v9436_v44  ;;  %v9439_v11 = vadd.f32 %v2799_v41, %v2122_v22  ;;  %v2127_v29 = vadd.f32 %v6483_v25, %v9337_v49 }
 0x18e   : > { %v6532_v14 = vpop.f32.mrf.mxu0  ;;  %v2058_v51 = vpop.f32.mrf.mxu1 }
 0x18f   : > { %10120 = vst [vmem:[#allocation17_spill] sm:$0xff] %v9439_v11  ;;  %v9442_v31 = vadd.f32 %v6531_v15, %v2127_v29  ;;  %v2125_v57 = vadd.f32 %v2058_v51, %v9340_v35 }
 0x190   : > { %v2815_v7 = vpop.f32.mrf.mxu0  ;;  %v6484_v62 = vpop.f32.mrf.mxu1 }
 0x191   : > { %10121 = vst [vmem:[#allocation20_spill] sm:$0xff] %v9442_v31  ;;  %v9445_v10 = vadd.f32 %v2812_v53, %v2125_v57  ;;  %v2128_v3 = vadd.f32 %v6484_v62, %v9347_v30 }
 0x192   : > { %v6535_v45 = vpop.f32.mrf.mxu0  ;;  %v2061_v33 = vpop.f32.mrf.mxu1 }
 0x193   : > { %10122 = vst [vmem:[#allocation2_spill] sm:$0xff] %v9445_v10  ;;  %v9448_v27 = vadd.f32 %v6532_v14, %v2128_v3  ;;  %v2126_v52 = vadd.f32 %v2061_v33, %v9353_v39 }
 0x194   : > { %v2828_v23 = vpop.f32.mrf.mxu0  ;;  %v6487_v49 = vpop.f32.mrf.mxu1 }
 0x195   : > { %v9451_v43 = vadd.f32 %v2815_v7, %v2126_v52  ;;  %v2131_v38 = vadd.f32 %v6487_v49, %v9358_v40 }
 0x196   : > { %v6536_v18 = vpop.f32.mrf.mxu0  ;;  %v2074_v35 = vpop.f32.mrf.mxu1 }
 0x197   : > { %10123 = vst [vmem:[#allocation5_spill] sm:$0xff] %v9451_v43  ;;  %v9454_v1 = vadd.f32 %v6535_v45, %v2131_v38  ;;  %v2129_v9 = vadd.f32 %v2074_v35, %v9361_v58 }
 0x198   : > { %v2831_v42 = vpop.f32.mrf.mxu0  ;;  %v6488_v30 = vpop.f32.mrf.mxu1 }
 0x199   : > { %v9457_v36 = vadd.f32 %v2828_v23, %v2129_v9  ;;  %v2132_v24 = vadd.f32 %v6488_v30, %v9364_v26 }
 0x19a   : > { %v6539_v61 = vpop.f32.mrf.mxu0  ;;  %v2077_v39 = vpop.f32.mrf.mxu1 }
 0x19b   : > { %v9460_v20 = vadd.f32 %v6536_v18, %v2132_v24  ;;  %v2130_v41 = vadd.f32 %v2077_v39, %v9367_v59 }
 0x19c   : > { %v2844_v19 = vpop.f32.mrf.mxu0  ;;  %v6491_v40 = vpop.f32.mrf.mxu1 }
 0x19d   : > { %v9463_v54 = vadd.f32 %v2831_v42, %v2130_v41  ;;  %v2135_v15 = vadd.f32 %v6491_v40, %v9370_v5 }
 0x19e   : > { %v6540_v12 = vpop.f32.mrf.mxu0  ;;  %v2090_v58 = vpop.f32.mrf.mxu1 }
 0x19f   : > { %v9466_v22 = vadd.f32 %v6539_v61, %v2135_v15  ;;  %v2133_v53 = vadd.f32 %v2090_v58, %v9373_v60 }
 0x1a0   : > { %v2847_v25 = vpop.f32.mrf.mxu0  ;;  %v6492_v26 = vpop.f32.mrf.mxu1 }
 0x1a1   : > { %v9469_v29 = vadd.f32 %v2844_v19, %v2133_v53  ;;  %v2136_v14 = vadd.f32 %v6492_v26, %v9376_v28 }
 0x1a2   : > { %v9472_v51 = vpop.f32.mrf.mxu0  ;;  %v2093_v59 = vpop.f32.mrf.mxu1 }
 0x1a3   : > { %v9474_v57 = vadd.f32 %v6540_v12, %v2136_v14  ;;  %v2134_v7 = vadd.f32 %v2093_v59, %v9379_v46 }
 0x1a4   : > { %v9477_v5 = vpop.f32.mrf.mxu0  ;;  %v9479_v62 = vpop.f32.mrf.mxu1 }
 0x1a5   : > { %v9481_v3 = vadd.f32 %v2847_v25, %v2134_v7 }
 0x1a6   : > { %v9483_v60 = vpop.f32.mrf.mxu0  ;;  %v9485_v45 = vpop.f32.mrf.mxu1 }
 0x1a8   : > { %v9487_v33 = vpop.f32.mrf.mxu0  ;;  %v9489_v28 = vpop.f32.mrf.mxu1 }
 0x1aa   : > { %v9491_v52 = vpop.f32.mrf.mxu0  ;;  %v9493_v23 = vpop.f32.mrf.mxu1 }
 0x1ac   : > { %v9495_v49 = vpop.f32.mrf.mxu0  ;;  %v9497_v46 = vpop.f32.mrf.mxu1 }
 0x1ae   : > { %v9499_v38 = vpop.f32.mrf.mxu0  ;;  %v9501_v18 = vpop.f32.mrf.mxu1 }
 0x1b0   : > { %v9503_v35 = vpop.f32.mrf.mxu0  ;;  %v9505_v9 = vpop.f32.mrf.mxu1 }
 0x1b2   : > { %v9507_v42 = vpop.f32.mrf.mxu0  ;;  %v9509_v30 = vpop.f32.mrf.mxu1 }
 0x1b4   : > { %v9511_v24 = vpop.f32.mrf.mxu0  ;;  %v9513_v61 = vpop.f32.mrf.mxu1 }
 0x1b6   : > { %v9515_v39 = vpop.f32.mrf.mxu0  ;;  %v9517_v41 = vpop.f32.mrf.mxu1 }
 0x1b8   : > { %v9519_v19 = vpop.f32.mrf.mxu0  ;;  %v9521_v40 = vpop.f32.mrf.mxu1 }
 0x1ba   : > { %v9523_v15 = vpop.f32.mrf.mxu0  ;;  %v9525_v12 = vpop.f32.mrf.mxu1 }
 0x1bc   : > { %v9527_v58 = vpop.f32.mrf.mxu0  ;;  %v9529_v53 = vpop.f32.mrf.mxu1 }
 0x1bd   : > { %10124 = vst [vmem:[#allocation4_spill] sm:$0xff] %v9527_v58 }
 0x1be   : > { %v9531_v25 = vpop.f32.mrf.mxu0  ;;  %v9533_v26 = vpop.f32.mrf.mxu1 }
 0x1bf   : > { %10125 = vst [vmem:[#allocation6_spill] sm:$0xff] %v9531_v25  ;;  %10126 = vst [vmem:[#allocation8_spill] sm:$0xff] %v9533_v26 }
 0x1c0   : > { %v9535_v14 = vpop.f32.mrf.mxu0  ;;  %v9537_v59 = vpop.f32.mrf.mxu1 }
 0x1c1   : > { %10127 = vst [vmem:[#allocation10_spill] sm:$0xff] %v9535_v14  ;;  %10128 = vst [vmem:[#allocation11_spill] sm:$0xff] %v9537_v59 }
 0x1c2   : > { %v9539_v7 = vpop.f32.mrf.mxu0  ;;  %v9541_v43 = vpop.f32.mrf.mxu1 }
 0x1c3   : > { %10129 = vst [vmem:[#allocation12_spill] sm:$0xff] %v9539_v7  ;;  %10130 = vst [vmem:[#allocation14_spill] sm:$0xff] %v9541_v43 }
 0x1c4   : > { %v9543_v10 = vpop.f32.mrf.mxu0  ;;  %v9545_v31 = vpop.f32.mrf.mxu1 }
 0x1c5   : > { %10131 = vst [vmem:[#allocation16_spill] sm:$0xff] %v9543_v10  ;;  %10132 = vst [vmem:[#allocation19_spill] sm:$0xff] %v9545_v31 }
 0x1c6   : > { %v9547_v11 = vpop.f32.mrf.mxu0  ;;  %v9549_v44 = vpop.f32.mrf.mxu1 }
 0x1c7   : > { %10133 = vst [vmem:[#allocation21_spill] sm:$0xff] %v9547_v11  ;;  %10134 = vst [vmem:[#allocation22_spill] sm:$0xff] %v9549_v44 }
 0x1c8   : > { %v9551_v58 = vpop.f32.mrf.mxu0  ;;  %v9553_v25 = vpop.f32.mrf.mxu1 }
 0x1c9   : > { %10135 = vst [vmem:[#allocation23_spill] sm:$0xff] %v9551_v58  ;;  %10136 = vst [vmem:[#allocation24_spill] sm:$0xff] %v9553_v25 }
 0x1ca   : > { %v9555_v13 = vpop.f32.mrf.mxu0  ;;  %v9557_v14 = vpop.f32.mrf.mxu1 }
 0x1cb   : > { %10137 = vst [vmem:[#allocation25_spill] sm:$0xff] %v9555_v13  ;;  %10138 = vst [vmem:[#allocation26_spill] sm:$0xff] %v9557_v14 }
 0x1cc   : > { %v9559_v55 = vpop.f32.mrf.mxu0  ;;  %v9561_v7 = vpop.f32.mrf.mxu1 }
 0x1cd   : > { %10139 = vst [vmem:[#allocation27_spill] sm:$0xff] %v9559_v55  ;;  %10140 = vst [vmem:[#allocation28_spill] sm:$0xff] %v9561_v7 }
 0x1ce   : > { %v6628_v43 = vpop.f32.mrf.mxu0  ;;  %v9563_v10 = vpop.f32.mrf.mxu1 }
 0x1cf   : > { %10141 = vst [vmem:[#allocation29_spill] sm:$0xff] %v9563_v10 }
 0x1d0   : > { %v9565_v31 = vpop.f32.mrf.mxu0  ;;  %v6580_v11 = vpop.f32.mrf.mxu1 }
 0x1d1   : > { %10142 = vst [vmem:[#allocation30_spill] sm:$0xff] %v9565_v31  ;;  %v3380_v44 = vadd.f32 %v6580_v11, %v9448_v27 }
 0x1d2   : > { %v6631_v17 = vpop.f32.mrf.mxu0  ;;  %v9568_v58 = vpop.f32.mrf.mxu1 }
 0x1d3   : > { %10143 = vst [vmem:[#allocation31_spill] sm:$0xff] %v9568_v58  ;;  %v9570_v25 = vadd.f32 %v6628_v43, %v3380_v44 }
 0x1d4   : > { %v3713_v13 = vpop.f32.mrf.mxu0  ;;  %v6583_v59 = vpop.f32.mrf.mxu1 }
 0x1d5   : > { %10144 = vst [vmem:[#allocation32_spill] sm:$0xff] %v9570_v25  ;;  %v3383_v14 = vadd.f32 %v6583_v59, %v9454_v1 }
 0x1d6   : > { %v6632_v55 = vpop.f32.mrf.mxu0  ;;  %v3326_v2 = vpop.f32.mrf.mxu1 }
 0x1d7   : > { %v9573_v7 = vadd.f32 %v6631_v17, %v3383_v14  ;;  %v3381_v10 = vadd.f32 %v3326_v2, %v9457_v36 }
 0x1d8   : > { %v3716_v26 = vpop.f32.mrf.mxu0  ;;  %v6584_v31 = vpop.f32.mrf.mxu1 }
 0x1d9   : > { %v9576_v37 = vadd.f32 %v3713_v13, %v3381_v10  ;;  %v3384_v11 = vadd.f32 %v6584_v31, %v9460_v20  ;;  %v3359_v13 = vadd.f32 %v9479_v62, %v9382_v56  ;;  %v3357_v20 = vadd.f32 %v9485_v45, %v9385_v8 }
 0x1da   : > { %v6635_v27 = vpop.f32.mrf.mxu0  ;;  %v3329_v58 = vpop.f32.mrf.mxu1  ;;  %v3360_v56 = vadd.f32 %v9489_v28, %v9388_v50  ;;  %v3358_v8 = vadd.f32 %v9493_v23, %v9391_v4  ;;  %v9611_v50 = vld [vmem:[%s9950_s2] ss:$0 sm:$0xff]  ;;  %v3361_v4 = vadd.f32 %v9501_v18, %v9397_v63  ;;  %v3364_v23 = vadd.f32 %v9505_v9, %v9400_v32 }
 0x1db   : > { %v9579_v44 = vadd.f32 %v6632_v55, %v3384_v11  ;;  %v3382_v43 = vadd.f32 %v3329_v58, %v9463_v54  ;;  %v3746_v11 = vadd.f32 %v9472_v51, %v3359_v13  ;;  %v3363_v51 = vadd.f32 %v9497_v46, %v9394_v21 }
 0x1dc   : > { %v3729_v25 = vpop.f32.mrf.mxu0  ;;  %v6587_v1 = vpop.f32.mrf.mxu1  ;;  %v3747_v28 = vadd.f32 %v9483_v60, %v3360_v56  ;;  %v3745_v21 = vadd.f32 %v9487_v33, %v3358_v8  ;;  %v3748_v9 = vadd.f32 %v9495_v49, %v3361_v4  ;;  %v3751_v33 = vadd.f32 %v9499_v38, %v3364_v23  ;;  %v10145_v23 = vld [vmem:[#allocation3_spill] sm:$0xff] }
 0x1dd   : > { %v9582_v59 = vadd.f32 %v3716_v26, %v3382_v43  ;;  %v3387_v17 = vadd.f32 %v6587_v1, %v9466_v22  ;;  %v3744_v1 = vadd.f32 %v9477_v5, %v3357_v20  ;;  %v3750_v60 = vadd.f32 %v9491_v52, %v3363_v51 }
 0x1de   : > { %v6636_v14 = vpop.f32.mrf.mxu0  ;;  %v3342_v2 = vpop.f32.mrf.mxu1  ;;  %v3365_v49 = vadd.f32 %v9517_v41, %v9409_v6  ;;  %v3368_v38 = vadd.f32 %v9521_v40, %v9412_v47  ;;  %v3371_v47 = vadd.f32 %v9529_v53, %v9418_v16 }
 0x1df   : > { %v9587_v10 = vadd.f32 %v6635_v27, %v3387_v17  ;;  %v3385_v31 = vadd.f32 %v3342_v2, %v9469_v29 }
 0x1e0   : > { %v3732_v36 = vpop.f32.mrf.mxu0  ;;  %v6588_v55 = vpop.f32.mrf.mxu1  ;;  %v3758_v4 = vadd.f32 %v9523_v15, %v3371_v47 }
 0x1e1   : > { %v9592_v54 = vadd.f32 %v3729_v25, %v3385_v31  ;;  %v3388_v58 = vadd.f32 %v6588_v55, %v9474_v57 }
 0x1e2   : > { %v3345_v22 = vpop.f32.mrf.mxu1 }
 0x1e3   : > { %v6703_v26 = vpop.f32.mrf.mxu0  ;;  %v9598_v62 = vadd.f32 %v6636_v14, %v3388_v58  ;;  %v3386_v29 = vadd.f32 %v3345_v22, %v9481_v3  ;;  %v3367_v22 = vadd.f32 %v9513_v61, %v9406_v0 }
 0x1e4   : > { %v6655_v43 = vpop.f32.mrf.mxu1 }
 0x1e5   : > { %v4869_v27 = vpop.f32.mrf.mxu0  ;;  %v9604_v45 = vadd.f32 %v3732_v36, %v3386_v29  ;;  %v4500_v57 = vadd.f32 %v6655_v43, %v3746_v11  ;;  %v3754_v6 = vadd.f32 %v9507_v42, %v3367_v22  ;;  %v10153_v22 = vld [vmem:[#allocation13_spill] sm:$0xff] }
 0x1e6   : > { %v4371_v3 = vpop.f32.mrf.mxu1 }
 0x1e7   : > { %v6704_v25 = vpop.f32.mrf.mxu0  ;;  %v4998_v17 = vadd.f32 %v6703_v26, %v4500_v57  ;;  %v4498_v5 = vadd.f32 %v4371_v3, %v3744_v1  ;;  %v3362_v26 = vadd.f32 %v9509_v30, %v9403_v48  ;;  %v3366_v48 = vadd.f32 %v9525_v12, %v9415_v34 }
 0x1e8   : > { %v6656_v2 = vpop.f32.mrf.mxu1  ;;  %v3752_v3 = vadd.f32 %v9511_v24, %v3365_v49 }
 0x1e9   : > { %v4872_v14 = vpop.f32.mrf.mxu0  ;;  %v9620_v46 = vadd.f32 %v9611_v50, %v4998_v17  ;;  %v4996_v13 = vadd.f32 %v4869_v27, %v4498_v5  ;;  %v4501_v31 = vadd.f32 %v6656_v2, %v3747_v28  ;;  %v3749_v57 = vadd.f32 %v9503_v35, %v3362_v26  ;;  %v10146_v2 = vld [vmem:[#allocation8_spill] sm:$0xff] }
 0x1ea   : > { %v4374_v55 = vpop.f32.mrf.mxu1  ;;  %v3755_v28 = vadd.f32 %v9515_v39, %v3368_v38  ;;  %v3753_v17 = vadd.f32 %v9519_v19, %v3366_v48  ;;  %v3369_v24 = vadd.f32 %v10146_v2, %v10145_v23  ;;  %v10148_v39 = vld [vmem:[#allocation11_spill] sm:$0xff]  ;;  %v10161_v2 = vld [vmem:[#allocation16_spill] sm:$0xff] }
 0x1eb   : > { %v6707_v36 = vpop.f32.mrf.mxu0  ;;  %v6051_v20 = vmul.f32 -1.442695, %v9620_v46  ;;  %v9625_v58 = vadd.f32 %v9611_v50, %v4996_v13  ;;  %v4999_v63 = vadd.f32 %v6704_v25, %v4501_v31  ;;  %v4499_v18 = vadd.f32 %v4374_v55, %v3745_v21  ;;  %v10147_v21 = vld [vmem:[#allocation7_spill] sm:$0xff] }
 0x1ec   : > { %v6659_v52 = vpop.f32.mrf.mxu1  ;;  %v3372_v13 = vadd.f32 %v10148_v39, %v10147_v21 }
 0x1ed   : > { %v4885_v32 = vpop.f32.mrf.mxu0  ;;  %6878 = vpow2.f32 %v6051_v20  ;;  %v6049_v11 = vmul.f32 -1.442695, %v9625_v58  ;;  %v9635_v56 = vadd.f32 %v9611_v50, %v4999_v63  ;;  %v4997_v29 = vadd.f32 %v4872_v14, %v4499_v18  ;;  %v10149_v18 = vld [vmem:[#allocation9_spill] sm:$0xff] }
 0x1ee   : > { %v4504_v30 = vadd.f32 %v6659_v52, %v3750_v60  ;;  %v4387_v0 = vpop.f32.mrf.mxu1  ;;  %v10154_v52 = vld [vmem:[#allocation22_spill] sm:$0xff] }
 0x1ef   : > { %v6708_v27 = vpop.f32.mrf.mxu0  ;;  %6880 = vpow2.f32 %v6049_v11  ;;  %v6052_v61 = vmul.f32 -1.442695, %v9635_v56  ;;  %v9645_v43 = vadd.f32 %v9611_v50, %v4997_v29  ;;  %v4502_v1 = vadd.f32 %v4387_v0, %v3748_v9  ;;  %v10151_v9 = vld [vmem:[#allocation18_spill] sm:$0xff] }
 0x1f0   : > { %v5002_v41 = vadd.f32 %v6707_v36, %v4504_v30  ;;  %v6660_v40 = vpop.f32.mrf.mxu1  ;;  %v3373_v11 = vadd.f32 %v10154_v52, %v10153_v22  ;;  %v10155_v30 = vld [vmem:[#allocation4_spill] sm:$0xff] }
 0x1f1   : > { %v4888_v8 = vpop.f32.mrf.mxu0  ;;  %6882 = vpow2.f32 %v6052_v61  ;;  %v6050_v34 = vmul.f32 -1.442695, %v9645_v43  ;;  %v5000_v12 = vadd.f32 %v4885_v32, %v4502_v1  ;;  %v4505_v25 = vadd.f32 %v6660_v40, %v3751_v33  ;;  %v10150_v32 = vld [vmem:[#allocation14_spill] sm:$0xff]  ;;  %v10152_v33 = vld [vmem:[#allocation19_spill] sm:$0xff] }
 0x1f2   : > { %v9656_v35 = vadd.f32 %v9611_v50, %v5002_v41  ;;  %v4390_v42 = vpop.f32.mrf.mxu1  ;;  %v3370_v15 = vadd.f32 %v10150_v32, %v10149_v18  ;;  %v3375_v26 = vadd.f32 %v10152_v33, %v10151_v9  ;;  %v3756_v0 = vadd.f32 %v10155_v30, %v3369_v24  ;;  %v10156_v61 = vld [vmem:[#allocation6_spill] sm:$0xff] }
 0x1f3   : > { %v6711_v51 = vpop.f32.mrf.mxu0  ;;  %6884 = vpow2.f32 %v6050_v34  ;;  %v9659_v16 = vadd.f32 %v9611_v50, %v5000_v12  ;;  %v5003_v53 = vadd.f32 %v6708_v27, %v4505_v25  ;;  %v4503_v5 = vadd.f32 %v4390_v42, %v3749_v57  ;;  %v10158_v57 = vld [vmem:[#allocation24_spill] sm:$0xff]  ;;  %v10164_v18 = vld [vmem:[#allocation26_spill] sm:$0xff] }
 0x1f4   : > { %v6055_v19 = vmul.f32 -1.442695, %v9656_v35  ;;  %v6663_v31 = vpop.f32.mrf.mxu1  ;;  %v3759_v1 = vadd.f32 %v10156_v61, %v3372_v13  ;;  %v9694_v24 = vadd.f32 %v10161_v2, %v3373_v11  ;;  %v10165_v11 = vld [vmem:[#allocation20_spill] sm:$0xff] }
 0x1f5   : > { %v4901_v14 = vpop.f32.mrf.mxu0  ;;  %v6053_v36 = vmul.f32 -1.442695, %v9659_v16  ;;  %v9669_v60 = vadd.f32 %v9611_v50, %v5003_v53  ;;  %v5001_v55 = vadd.f32 %v4888_v8, %v4503_v5  ;;  %v4508_v20 = vadd.f32 %v6663_v31, %v3754_v6  ;;  %v10157_v8 = vld [vmem:[#allocation15_spill] sm:$0xff]  ;;  %v10160_v5 = vld [vmem:[#allocation12_spill] sm:$0xff] }
 0x1f6   : > { %6886 = vpow2.f32 %v6055_v19  ;;  %v4403_v29 = vpop.f32.mrf.mxu1  ;;  %v3376_v6 = vadd.f32 %v10158_v57, %v10157_v8  ;;  %v9691_v23 = vadd.f32 %v10160_v5, %v3375_v26 }
 0x1f7   : > { %v6712_v63 = vpop.f32.mrf.mxu0  ;;  %6888 = vpow2.f32 %v6053_v36  ;;  %v6056_v27 = vmul.f32 -1.442695, %v9669_v60  ;;  %v9679_v49 = vadd.f32 %v9611_v50, %v5001_v55  ;;  %v5006_v38 = vadd.f32 %v6711_v51, %v4508_v20  ;;  %v10159_v51 = vld [vmem:[#allocation10_spill] sm:$0xff]  ;;  %v10163_v20 = vld [vmem:[#allocation17_spill] sm:$0xff] }
 0x1f8   : > { %v4506_v47 = vadd.f32 %v4403_v29, %v3752_v3  ;;  %v6664_v41 = vpop.f32.mrf.mxu1  ;;  %v3757_v53 = vadd.f32 %v10159_v51, %v3370_v15  ;;  %v3374_v32 = vadd.f32 %v10164_v18, %v10163_v20  ;;  %v10166_v29 = vld [vmem:[#allocation28_spill] sm:$0xff] }
 0x1f9   : > { %v4904_v48 = vpop.f32.mrf.mxu0  ;;  %6890 = vpow2.f32 %v6056_v27  ;;  %v6054_v40 = vmul.f32 -1.442695, %v9679_v49  ;;  %v9687_v34 = vadd.f32 %v9611_v50, %v5006_v38  ;;  %v4509_v12 = vadd.f32 %v6664_v41, %v3755_v28  ;;  %v10162_v28 = vld [vmem:[#allocation21_spill] sm:$0xff]  ;;  %v10167_v41 = vld [vmem:[#allocation23_spill] sm:$0xff] }
 0x1fa   : > { %v6879_v42 = vpop.eup %6878  ;;  %v5004_v21 = vadd.f32 %v4901_v14, %v4506_v47  ;;  %v4406_v3 = vpop.f32.mrf.mxu1  ;;  %v9698_v55 = vadd.f32 %v10162_v28, %v3376_v6  ;;  %v3379_v27 = vadd.f32 %v10166_v29, %v10165_v11  ;;  %v10171_v29 = vld [vmem:[#allocation5_spill] sm:$0xff] }
 0x1fb   : > { %v6715_v25 = vpop.f32.mrf.mxu0  ;;  %v5165_v39 = vadd.f32 1.0, %v6879_v42  ;;  %6892 = vpow2.f32 %v6054_v40  ;;  %v6059_v13 = vmul.f32 -1.442695, %v9687_v34  ;;  %v5007_v19 = vadd.f32 %v6712_v63, %v4509_v12 }
 0x1fc   : > { %v6881_v36 = vpop.eup %6880  ;;  %v9703_v15 = vadd.f32 %v9611_v50, %v5004_v21  ;;  %v4507_v9 = vadd.f32 %v4406_v3, %v3753_v17  ;;  %v6667_v33 = vpop.f32.mrf.mxu1  ;;  %v9713_v40 = vadd.f32 %v10167_v41, %v3374_v32  ;;  %v10169_v32 = vld [vmem:[#allocation2_spill] sm:$0xff] }
 0x1fd   : > { %v4917_v31 = vpop.f32.mrf.mxu0  ;;  %6894 = vrcp.f32 %v5165_v39  ;;  %v5163_v14 = vadd.f32 1.0, %v6881_v36  ;;  %v9706_v26 = vadd.f32 %v9611_v50, %v5007_v19  ;;  %v4512_v22 = vadd.f32 %v6667_v33, %v3758_v4 }
 0x1fe   : > { %v6883_v52 = vpop.eup %6882  ;;  %6896 = vpow2.f32 %v6059_v13  ;;  %v6057_v38 = vmul.f32 -1.442695, %v9703_v15  ;;  %v5005_v30 = vadd.f32 %v4904_v48, %v4507_v9  ;;  %v4419_v61 = vpop.f32.mrf.mxu1  ;;  %v10170_v9 = vld [vmem:[#allocation29_spill] sm:$0xff] }
 0x1ff   : > { %v6716_v63 = vpop.f32.mrf.mxu0  ;;  %6898 = vrcp.f32 %v5163_v14  ;;  %v5166_v8 = vadd.f32 1.0, %v6883_v52  ;;  %v6060_v17 = vmul.f32 -1.442695, %v9706_v26  ;;  %v5010_v57 = vadd.f32 %v6715_v25, %v4512_v22  ;;  %v10168_v25 = vld [vmem:[#allocation25_spill] sm:$0xff] }
 0x200   : > { %v6885_v47 = vpop.eup %6884  ;;  %6900 = vpow2.f32 %v6057_v38  ;;  %v9716_v4 = vadd.f32 %v9611_v50, %v5005_v30  ;;  %v4510_v12 = vadd.f32 %v4419_v61, %v3756_v0  ;;  %v6668_v42 = vpop.f32.mrf.mxu1  ;;  %v9722_v21 = vadd.f32 %v10168_v25, %v3379_v27  ;;  %v10172_v27 = vld [vmem:[#allocation31_spill] sm:$0xff] }
 0x201   : > { %v4920_v6 = vpop.f32.mrf.mxu0  ;;  %6902 = vrcp.f32 %v5166_v8  ;;  %v5164_v51 = vadd.f32 1.0, %v6885_v47  ;;  %v9719_v48 = vadd.f32 %v9611_v50, %v5010_v57  ;;  %v4513_v5 = vadd.f32 %v6668_v42, %v3759_v1 }
 0x202   : > { %6904 = vpow2.f32 %v6060_v17  ;;  %v6058_v3 = vmul.f32 -1.442695, %v9716_v4  ;;  %v5008_v39 = vadd.f32 %v4917_v31, %v4510_v12  ;;  %v4422_v13 = vpop.f32.mrf.mxu1  ;;  %v3377_v1 = vadd.f32 %v10170_v9, %v10169_v32  ;;  %v10173_v12 = vld [vmem:[#allocation27_spill] sm:$0xff] }
 0x203   : > { %v6887_v19 = vpop.eup %6886  ;;  %6906 = vrcp.f32 %v5164_v51  ;;  %v6063_v0 = vmul.f32 -1.442695, %v9719_v48  ;;  %v5011_v36 = vadd.f32 %v6716_v63, %v4513_v5  ;;  %v4511_v28 = vadd.f32 %v4422_v13, %v3757_v53 }
 0x204   : > { %v6719_v2 = vpop.f32.mrf.mxu0  ;;  %v6889_v18 = vpop.eup %6888  ;;  %v5169_v33 = vadd.f32 1.0, %v6887_v19  ;;  %6908 = vpow2.f32 %v6058_v3  ;;  %v9730_v14 = vadd.f32 %v9611_v50, %v5008_v39  ;;  %v3378_v38 = vadd.f32 %v10172_v27, %v10171_v29 }
 0x205   : > { %v6671_v31 = vpop.f32.mrf.mxu1  ;;  %v5167_v22 = vadd.f32 1.0, %v6889_v18  ;;  %6910 = vpow2.f32 %v6063_v0  ;;  %v9733_v52 = vadd.f32 %v9611_v50, %v5011_v36  ;;  %v5009_v63 = vadd.f32 %v4920_v6, %v4511_v28  ;;  %v10174_v0 = vld [vmem:[#allocation30_spill] sm:$0xff]  ;;  %v5293_v28 = vld [vmem:[%s9744_s5 + $0x10] sm:$0xff] }
 0x206   : > { %v4933_v20 = vpop.f32.mrf.mxu0  ;;  %v6891_v11 = vpop.eup %6890  ;;  %6912 = vrcp.f32 %v5169_v33  ;;  %v6061_v30 = vmul.f32 -1.442695, %v9730_v14  ;;  %v4516_v61 = vadd.f32 %v6671_v31, %v9691_v23  ;;  %v9751_v42 = vadd.f32 %v10173_v12, %v3377_v1 }
 0x207   : > { %v4435_v8 = vpop.f32.mrf.mxu1  ;;  %6914 = vrcp.f32 %v5167_v22  ;;  %v5170_v17 = vadd.f32 1.0, %v6891_v11  ;;  %v6064_v57 = vmul.f32 -1.442695, %v9733_v52  ;;  %v9748_v6 = vadd.f32 %v9611_v50, %v5009_v63  ;;  %v5291_v22 = vld [vmem:[%s9744_s5] sm:$0xff] }
 0x208   : > { %v6720_v53 = vpop.f32.mrf.mxu0  ;;  %v6893_v41 = vpop.eup %6892  ;;  %6916 = vpow2.f32 %v6061_v30  ;;  %v5014_v23 = vadd.f32 %v6719_v2, %v4516_v61  ;;  %v4514_v51 = vadd.f32 %v4435_v8, %v9694_v24  ;;  %v9757_v36 = vadd.f32 %v10174_v0, %v3378_v38  ;;  %v5294_v8 = vld [vmem:[%s9744_s5 + $0x18] sm:$0xff] }
 0x209   : > { %v6672_v5 = vpop.f32.mrf.mxu1  ;;  %6918 = vrcp.f32 %v5170_v17  ;;  %v5168_v25 = vadd.f32 1.0, %v6893_v41  ;;  %v6062_v3 = vmul.f32 -1.442695, %v9748_v6 }
 0x20a   : > { %v4936_v47 = vpop.f32.mrf.mxu0  ;;  %v4517_v39 = vadd.f32 %v6672_v5, %v9698_v55  ;;  %v6895_v19 = vpop.eup %6894  ;;  %6920 = vpow2.f32 %v6064_v57  ;;  %v9761_v2 = vadd.f32 %v9611_v50, %v5014_v23  ;;  %v5012_v24 = vadd.f32 %v4933_v20, %v4514_v51 }
 0x20b   : > { %v4438_v18 = vpop.f32.mrf.mxu1  ;;  %v6897_v32 = vpop.eup %6896  ;;  %v5261_v9 = vmul.f32 %v6895_v19, %v9620_v46  ;;  %6922 = vrcp.f32 %v5168_v25 }
 0x20c   : > { %v6723_v13 = vpop.f32.mrf.mxu0  ;;  %v5015_v1 = vadd.f32 %v6720_v53, %v4517_v39  ;;  %v4515_v55 = vadd.f32 %v4438_v18, %v9713_v40  ;;  %v6899_v31 = vpop.eup %6898  ;;  %v5173_v63 = vadd.f32 1.0, %v6897_v32  ;;  %6924 = vpow2.f32 %v6062_v3  ;;  %v5292_v3 = vld [vmem:[%s9744_s5 + $0x8] sm:$0xff] }
 0x20d   : > { %v6067_v20 = vmul.f32 -1.442695, %v9761_v2  ;;  %v9775_v46 = vadd.f32 %v9611_v50, %v5012_v24  ;;  %v6675_v53 = vpop.f32.mrf.mxu1  ;;  %v6901_v40 = vpop.eup %6900  ;;  %v5325_v11 = vadd.f32 %v5293_v28, %v5261_v9  ;;  %v5259_v29 = vmul.f32 %v6899_v31, %v9625_v58 }
 0x20e   : > { %v4949_v33 = vpop.f32.mrf.mxu0  ;;  %v9779_v27 = vadd.f32 %v9611_v50, %v5015_v1  ;;  %v5013_v38 = vadd.f32 %v4936_v47, %v4515_v55  ;;  %v6903_v61 = vpop.eup %6902  ;;  %6926 = vrcp.f32 %v5173_v63  ;;  %v5171_v17 = vadd.f32 1.0, %v6901_v40 }
 0x20f   : > { %v6065_v57 = vmul.f32 -1.442695, %v9775_v46  ;;  %v4520_v41 = vadd.f32 %v6675_v53, %v9722_v21  ;;  %v4451_v12 = vpop.f32.mrf.mxu1  ;;  %v6905_v23 = vpop.eup %6904  ;;  %5357 = vst [vmem:[%s9770_s8 + $0x10] sm:$0xff] %v5325_v11  ;;  %v5323_v51 = vadd.f32 %v5291_v22, %v5259_v29  ;;  %v5262_v58 = vmul.f32 %v6903_v61, %v9635_v56  ;;  %v5295_v29 = vld [vmem:[%s9744_s5 + $0x20] sm:$0xff]  ;;  %v10175_v61 = vld [vmem:[#allocation32_spill] sm:$0xff] }
 0x210   : > { %v6724_v30 = vpop.f32.mrf.mxu0  ;;  %6928 = vpow2.f32 %v6067_v20  ;;  %v6068_v47 = vmul.f32 -1.442695, %v9779_v27  ;;  %v6907_v25 = vpop.eup %6906  ;;  %v5174_v39 = vadd.f32 1.0, %v6905_v23  ;;  %v9789_v19 = vadd.f32 %v9611_v50, %v5013_v38 }
 0x211   : > { %6930 = vrcp.f32 %v5171_v17  ;;  %v5018_v0 = vadd.f32 %v6723_v13, %v4520_v41  ;;  %v6676_v21 = vpop.f32.mrf.mxu1  ;;  %v6909_v28 = vpop.eup %6908  ;;  %5355 = vst [vmem:[%s9770_s8] sm:$0xff] %v5323_v51  ;;  %v5326_v24 = vadd.f32 %v5294_v8, %v5262_v58  ;;  %v5260_v56 = vmul.f32 %v6907_v25, %v9645_v43  ;;  %v5297_v43 = vld [vmem:[%s9744_s5 + $0x30] sm:$0xff]  ;;  %v5298_v58 = vld [vmem:[%s9744_s5 + $0x38] sm:$0xff] }
 0x212   : > { %v4952_v5 = vpop.f32.mrf.mxu0  ;;  %6932 = vpow2.f32 %v6065_v57  ;;  %v4518_v18 = vadd.f32 %v4451_v12, %v9751_v42  ;;  %v6911_v9 = vpop.eup %6910  ;;  %v5172_v1 = vadd.f32 1.0, %v6909_v28  ;;  %v6066_v55 = vmul.f32 -1.442695, %v9789_v19 }
 0x213   : > { %6934 = vrcp.f32 %v5174_v39  ;;  %v9798_v13 = vadd.f32 %v9611_v50, %v5018_v0  ;;  %v4454_v31 = vpop.f32.mrf.mxu1  ;;  %v6913_v22 = vpop.eup %6912  ;;  %5358 = vst [vmem:[%s9770_s8 + $0x18] sm:$0xff] %v5326_v24  ;;  %v5324_v63 = vadd.f32 %v5292_v3, %v5260_v56  ;;  %v5177_v20 = vadd.f32 1.0, %v6911_v9 }
 0x214   : > { %v9794_v32 = vpop.f32.mrf.mxu0  ;;  %6936 = vpow2.f32 %v6068_v47  ;;  %v5016_v42 = vadd.f32 %v4949_v33, %v4518_v18  ;;  %v6915_v40 = vpop.eup %6914  ;;  %v5265_v11 = vmul.f32 %v6913_v22, %v9656_v35  ;;  %v4521_v8 = vadd.f32 %v6676_v21, %v10175_v61 }
 0x215   : > { %6938 = vrcp.f32 %v5172_v1  ;;  %v6071_v38 = vmul.f32 -1.442695, %v9798_v13  ;;  %v6679_v17 = vpop.f32.mrf.mxu1  ;;  %v6917_v57 = vpop.eup %6916  ;;  %5356 = vst [vmem:[%s9770_s8 + $0x8] sm:$0xff] %v5324_v63  ;;  %v5263_v41 = vmul.f32 %v6915_v40, %v9659_v16  ;;  %v4519_v12 = vadd.f32 %v4454_v31, %v9757_v36  ;;  %v5296_v36 = vld [vmem:[%s9744_s5 + $0x28] sm:$0xff]  ;;  %v5301_v40 = vld [vmem:[%s9744_s5 + $0x50] sm:$0xff] }
 0x216   : > { %v9802_v53 = vpop.f32.mrf.mxu0  ;;  %6940 = vrcp.f32 %v5177_v20  ;;  %v9811_v33 = vadd.f32 %v9611_v50, %v5016_v42  ;;  %v6919_v23 = vpop.eup %6918  ;;  %v5329_v51 = vadd.f32 %v5297_v43, %v5265_v11  ;;  %v5175_v47 = vadd.f32 1.0, %v6917_v57 }
 0x217   : > { %6942 = vpow2.f32 %v6066_v55  ;;  %v5019_v25 = vadd.f32 %v6724_v30, %v4521_v8  ;;  %v4467_v3 = vpop.f32.mrf.mxu1  ;;  %v6921_v39 = vpop.eup %6920  ;;  %v5327_v0 = vadd.f32 %v5295_v29, %v5263_v41  ;;  %v5266_v16 = vmul.f32 %v6919_v23, %v9669_v60 }
 0x218   : > { %v6728_v35 = vpop.f32.mrf.mxu0  ;;  %6944 = vpow2.f32 %v6071_v38  ;;  %v6069_v21 = vmul.f32 -1.442695, %v9811_v33  ;;  %v6923_v28 = vpop.eup %6922  ;;  %5361 = vst [vmem:[%s9770_s8 + $0x30] sm:$0xff] %v5329_v51  ;;  %v5178_v24 = vadd.f32 1.0, %v6921_v39  ;;  %v5017_v18 = vadd.f32 %v4952_v5, %v4519_v12  ;;  %v5299_v12 = vld [vmem:[%s9744_s5 + $0x40] sm:$0xff] }
 0x219   : > { %6946 = vrcp.f32 %v5175_v47  ;;  %v9820_v56 = vadd.f32 %v9611_v50, %v5019_v25  ;;  %v6680_v30 = vpop.f32.mrf.mxu1  ;;  %v6925_v1 = vpop.eup %6924  ;;  %5359 = vst [vmem:[%s9770_s8 + $0x20] sm:$0xff] %v5327_v0  ;;  %v5330_v55 = vadd.f32 %v5298_v58, %v5266_v16  ;;  %v5264_v60 = vmul.f32 %v6923_v28, %v9679_v49  ;;  %v5302_v25 = vld [vmem:[%s9744_s5 + $0x58] sm:$0xff] }
 0x21a   : > { %v4968_v9 = vpop.f32.mrf.mxu0  ;;  %6948 = vpow2.f32 %v6069_v21  ;;  %v4524_v31 = vadd.f32 %v6679_v17, %v9573_v7  ;;  %v5176_v22 = vadd.f32 1.0, %v6925_v1  ;;  %v9827_v43 = vadd.f32 %v9611_v50, %v5017_v18  ;;  %v5300_v18 = vld [vmem:[%s9744_s5 + $0x48] sm:$0xff] }
 0x21b   : > { %6950 = vrcp.f32 %v5178_v24  ;;  %v6072_v63 = vmul.f32 -1.442695, %v9820_v56  ;;  %v4470_v20 = vpop.f32.mrf.mxu1  ;;  %v6927_v5 = vpop.eup %6926  ;;  %5362 = vst [vmem:[%s9770_s8 + $0x38] sm:$0xff] %v5330_v55  ;;  %v5328_v42 = vadd.f32 %v5296_v36, %v5264_v60  ;;  %v4522_v49 = vadd.f32 %v4467_v3, %v9576_v37 }
 0x21c   : > { %v5022_v11 = vadd.f32 %v9794_v32, %v4524_v31  ;;  %v4525_v7 = vadd.f32 %v6680_v30, %v9579_v44  ;;  %v5269_v38 = vmul.f32 %v6927_v5, %v9687_v34  ;;  %6952 = vrcp.f32 %v5176_v22  ;;  %v6731_v57 = vpop.f32.mrf.mxu0  ;;  %v5305_v22 = vld [vmem:[%s9744_s5 + $0x70] sm:$0xff] }
 0x21d   : > { %v6929_v29 = vpop.eup %6928  ;;  %v6070_v61 = vmul.f32 -1.442695, %v9827_v43  ;;  %v4523_v8 = vadd.f32 %v4470_v20, %v9582_v59  ;;  %v6683_v17 = vpop.f32.mrf.mxu1  ;;  %5360 = vst [vmem:[%s9770_s8 + $0x28] sm:$0xff] %v5328_v42  ;;  %6954 = vpow2.f32 %v6072_v63  ;;  %v5020_v44 = vadd.f32 %v9802_v53, %v4522_v49 }
 0x21e   : > { %v6931_v41 = vpop.eup %6930  ;;  %v5181_v23 = vadd.f32 1.0, %v6929_v29  ;;  %v9840_v37 = vadd.f32 %v9611_v50, %v5022_v11  ;;  %v5333_v32 = vadd.f32 %v5301_v40, %v5269_v38  ;;  %v5023_v59 = vadd.f32 %v6728_v35, %v4525_v7  ;;  %v4981_v28 = vpop.f32.mrf.mxu0 }
 0x21f   : > { %v6933_v34 = vpop.eup %6932  ;;  %v5267_v51 = vmul.f32 %v6931_v41, %v9703_v15  ;;  %6956 = vpow2.f32 %v6070_v61  ;;  %v4483_v58 = vpop.f32.mrf.mxu1  ;;  %v9847_v0 = vadd.f32 %v9611_v50, %v5020_v44  ;;  %v5021_v21 = vadd.f32 %v4968_v9, %v4523_v8 }
 0x220   : > { %v6935_v47 = vpop.eup %6934  ;;  %6958 = vrcp.f32 %v5181_v23  ;;  %v5179_v3 = vadd.f32 1.0, %v6933_v34  ;;  %v6075_v39 = vmul.f32 -1.442695, %v9840_v37  ;;  %5365 = vst [vmem:[%s9770_s8 + $0x50] sm:$0xff] %v5333_v32  ;;  %v9852_v35 = vadd.f32 %v9611_v50, %v5023_v59  ;;  %v6732_v49 = vpop.f32.mrf.mxu0  ;;  %v5306_v23 = vld [vmem:[%s9744_s5 + $0x78] sm:$0xff] }
 0x221   : > { %v6937_v16 = vpop.eup %6936  ;;  %v5331_v53 = vadd.f32 %v5299_v12, %v5267_v51  ;;  %v5270_v15 = vmul.f32 %v6935_v47, %v9706_v26  ;;  %v6684_v36 = vpop.f32.mrf.mxu1  ;;  %v6073_v1 = vmul.f32 -1.442695, %v9847_v0  ;;  %v4528_v55 = vadd.f32 %v6683_v17, %v9587_v10 }
 0x222   : > { %v6939_v24 = vpop.eup %6938  ;;  %6960 = vrcp.f32 %v5179_v3  ;;  %v5182_v30 = vadd.f32 1.0, %v6937_v16  ;;  %v6076_v9 = vmul.f32 -1.442695, %v9852_v35  ;;  %v9863_v5 = vadd.f32 %v9611_v50, %v5021_v21 }
 0x223   : > { %v6941_v60 = vpop.eup %6940  ;;  %5363 = vst [vmem:[%s9770_s8 + $0x40] sm:$0xff] %v5331_v53  ;;  %v5334_v31 = vadd.f32 %v5302_v25, %v5270_v15  ;;  %v5268_v26 = vmul.f32 %v6939_v24, %v9716_v4  ;;  %6962 = vpow2.f32 %v6075_v39  ;;  %v5026_v42 = vadd.f32 %v6731_v57, %v4528_v55  ;;  %v4486_v7 = vpop.f32.mrf.mxu1  ;;  %v5304_v25 = vld [vmem:[%s9744_s5 + $0x68] sm:$0xff] }
 0x224   : > { %v6943_v63 = vpop.eup %6942  ;;  %v5273_v20 = vmul.f32 %v6941_v60, %v9719_v48  ;;  %6964 = vrcp.f32 %v5182_v30  ;;  %v4526_v4 = vadd.f32 %v4483_v58, %v9592_v54  ;;  %v5303_v48 = vld [vmem:[%s9744_s5 + $0x60] sm:$0xff]  ;;  %v6074_v8 = vmul.f32 -1.442695, %v9863_v5  ;;  %v4984_v58 = vpop.f32.mrf.mxu0  ;;  %v5309_v30 = vld [vmem:[%s9744_s5 + $0x90] sm:$0xff] }
 0x225   : > { %v6945_v10 = vpop.eup %6944  ;;  %5366 = vst [vmem:[%s9770_s8 + $0x58] sm:$0xff] %v5334_v31  ;;  %v5332_v40 = vadd.f32 %v5300_v18, %v5268_v26  ;;  %v5180_v11 = vadd.f32 1.0, %v6943_v63  ;;  %6966 = vpow2.f32 %v6073_v1  ;;  %v9872_v41 = vadd.f32 %v9611_v50, %v5026_v42  ;;  %v5307_v26 = vld [vmem:[%s9744_s5 + $0x80] sm:$0xff] }
 0x226   : > { %v6947_v29 = vpop.eup %6946  ;;  %v5337_v38 = vadd.f32 %v5305_v22, %v5273_v20  ;;  %v5185_v61 = vadd.f32 1.0, %v6945_v10  ;;  %6968 = vpow2.f32 %v6076_v9  ;;  %v5024_v54 = vadd.f32 %v4981_v28, %v4526_v4  ;;  %v5310_v20 = vld [vmem:[%s9744_s5 + $0x98] sm:$0xff] }
 0x227   : > { %v6949_v17 = vpop.eup %6948  ;;  %5364 = vst [vmem:[%s9770_s8 + $0x48] sm:$0xff] %v5332_v40  ;;  %v5271_v57 = vmul.f32 %v6947_v29, %v9730_v14  ;;  %6970 = vrcp.f32 %v5180_v11  ;;  %v4529_v34 = vadd.f32 %v6684_v36, %v9598_v62  ;;  %v4527_v32 = vadd.f32 %v4486_v7, %v9604_v45  ;;  %v5308_v7 = vld [vmem:[%s9744_s5 + $0x88] sm:$0xff] }
 0x228   : > { %v6951_v12 = vpop.eup %6950  ;;  %5369 = vst [vmem:[%s9770_s8 + $0x70] sm:$0xff] %v5337_v38  ;;  %6972 = vrcp.f32 %v5185_v61  ;;  %v5183_v44 = vadd.f32 1.0, %v6949_v17  ;;  %v6079_v14 = vmul.f32 -1.442695, %v9872_v41  ;;  %v9882_v3 = vadd.f32 %v9611_v50, %v5024_v54  ;;  %v5313_v61 = vld [vmem:[%s9744_s5 + $0xb0] sm:$0xff]  ;;  %v5311_v54 = vld [vmem:[%s9744_s5 + $0xa0] sm:$0xff] }
 0x229   : > { %v5335_v51 = vadd.f32 %v5303_v48, %v5271_v57  ;;  %v5274_v59 = vmul.f32 %v6951_v12, %v9733_v52  ;;  %6974 = vpow2.f32 %v6074_v8  ;;  %v6953_v47 = vpop.eup %6952  ;;  %v5027_v39 = vadd.f32 %v6732_v49, %v4529_v34 }
 0x22a   : > { %6976 = vrcp.f32 %v5183_v44  ;;  %v5025_v16 = vadd.f32 %v4984_v58, %v4527_v32  ;;  %v6955_v62 = vpop.eup %6954  ;;  %v5272_v53 = vmul.f32 %v6953_v47, %v9748_v6  ;;  %v6077_v21 = vmul.f32 -1.442695, %v9882_v3  ;;  %v5312_v58 = vld [vmem:[%s9744_s5 + $0xa8] sm:$0xff] }
 0x22b   : > { %5367 = vst [vmem:[%s9770_s8 + $0x60] sm:$0xff] %v5335_v51  ;;  %v5338_v45 = vadd.f32 %v5306_v23, %v5274_v59  ;;  %6978 = vpow2.f32 %v6079_v14  ;;  %v5186_v15 = vadd.f32 1.0, %v6955_v62  ;;  %v9888_v28 = vadd.f32 %v9611_v50, %v5027_v39  ;;  %v5314_v59 = vld [vmem:[%s9744_s5 + $0xb8] sm:$0xff] }
 0x22c   : > { %v6957_v52 = vpop.eup %6956  ;;  %v9891_v36 = vadd.f32 %v9611_v50, %v5025_v16  ;;  %v5336_v18 = vadd.f32 %v5304_v25, %v5272_v53 }
 0x22d   : > { %v6959_v24 = vpop.eup %6958  ;;  %5370 = vst [vmem:[%s9770_s8 + $0x78] sm:$0xff] %v5338_v45  ;;  %v5184_v1 = vadd.f32 1.0, %v6957_v52  ;;  %6980 = vrcp.f32 %v5186_v15  ;;  %v6080_v55 = vmul.f32 -1.442695, %v9888_v28  ;;  %v5317_v15 = vld [vmem:[%s9744_s5 + $0xd0] sm:$0xff] }
 0x22e   : > { %v5277_v6 = vmul.f32 %v6959_v24, %v9761_v2  ;;  %v6078_v60 = vmul.f32 -1.442695, %v9891_v36  ;;  %5368 = vst [vmem:[%s9770_s8 + $0x68] sm:$0xff] %v5336_v18  ;;  %v5315_v24 = vld [vmem:[%s9744_s5 + $0xc0] sm:$0xff] }
 0x22f   : > { %v6961_v31 = vpop.eup %6960  ;;  %6982 = vrcp.f32 %v5184_v1 }
 0x230   : > { %v6963_v50 = vpop.eup %6962  ;;  %v5341_v22 = vadd.f32 %v5309_v30, %v5277_v6  ;;  %v5275_v9 = vmul.f32 %v6961_v31, %v9775_v46  ;;  %6984 = vpow2.f32 %v6077_v21  ;;  %v5318_v6 = vld [vmem:[%s9744_s5 + $0xd8] sm:$0xff] }
 0x231   : > { %v6965_v63 = vpop.eup %6964  ;;  %v5189_v2 = vadd.f32 1.0, %v6963_v50  ;;  %6986 = vpow2.f32 %v6080_v55 }
 0x232   : > { %v6967_v42 = vpop.eup %6966  ;;  %5373 = vst [vmem:[%s9770_s8 + $0x90] sm:$0xff] %v5341_v22  ;;  %v5339_v10 = vadd.f32 %v5307_v26, %v5275_v9  ;;  %v5278_v40 = vmul.f32 %v6965_v63, %v9779_v27  ;;  %6988 = vpow2.f32 %v6078_v60  ;;  %v5316_v26 = vld [vmem:[%s9744_s5 + $0xc8] sm:$0xff]  ;;  %v5321_v9 = vld [vmem:[%s9744_s5 + $0xf0] sm:$0xff] }
 0x233   : > { %v6969_v11 = vpop.eup %6968  ;;  %6990 = vrcp.f32 %v5189_v2  ;;  %v5187_v4 = vadd.f32 1.0, %v6967_v42  ;;  %v5319_v2 = vld [vmem:[%s9744_s5 + $0xe0] sm:$0xff] }
 0x234   : > { %v6971_v49 = vpop.eup %6970  ;;  %5371 = vst [vmem:[%s9770_s8 + $0x80] sm:$0xff] %v5339_v10  ;;  %v5342_v46 = vadd.f32 %v5310_v20, %v5278_v40  ;;  %v5190_v29 = vadd.f32 1.0, %v6969_v11  ;;  %v5322_v40 = vld [vmem:[%s9744_s5 + $0xf8] sm:$0xff] }
 0x235   : > { %v6973_v38 = vpop.eup %6972  ;;  %v5276_v48 = vmul.f32 %v6971_v49, %v9789_v19  ;;  %6992 = vrcp.f32 %v5187_v4  ;;  %v5320_v4 = vld [vmem:[%s9744_s5 + $0xe8] sm:$0xff] }
 0x236   : > { %v6975_v8 = vpop.eup %6974  ;;  %5374 = vst [vmem:[%s9770_s8 + $0x98] sm:$0xff] %v5342_v46  ;;  %v5281_v27 = vmul.f32 %v6973_v38, %v9798_v13  ;;  %6994 = vrcp.f32 %v5190_v29 }
 0x237   : > { %v6977_v17 = vpop.eup %6976  ;;  %v5340_v57 = vadd.f32 %v5308_v7, %v5276_v48  ;;  %v5188_v12 = vadd.f32 1.0, %v6975_v8 }
 0x238   : > { %v6979_v23 = vpop.eup %6978  ;;  %v5345_v44 = vadd.f32 %v5313_v61, %v5281_v27  ;;  %v5279_v34 = vmul.f32 %v6977_v17, %v9811_v33 }
 0x239   : > { %5372 = vst [vmem:[%s9770_s8 + $0x88] sm:$0xff] %v5340_v57  ;;  %6996 = vrcp.f32 %v5188_v12  ;;  %v5193_v19 = vadd.f32 1.0, %v6979_v23 }
 0x23a   : > { %5377 = vst [vmem:[%s9770_s8 + $0xb0] sm:$0xff] %v5345_v44  ;;  %v5343_v32 = vadd.f32 %v5311_v54, %v5279_v34  ;;  %v6981_v51 = vpop.eup %6980 }
 0x23b   : > { %6998 = vrcp.f32 %v5193_v19  ;;  %v5282_v14 = vmul.f32 %v6981_v51, %v9820_v56 }
 0x23c   : > { %v6983_v13 = vpop.eup %6982  ;;  %5375 = vst [vmem:[%s9770_s8 + $0xa0] sm:$0xff] %v5343_v32 }
 0x23d   : > { %v6985_v47 = vpop.eup %6984  ;;  %v5280_v25 = vmul.f32 %v6983_v13, %v9827_v43  ;;  %v5346_v39 = vadd.f32 %v5314_v59, %v5282_v14 }
 0x23e   : > { %v6987_v33 = vpop.eup %6986  ;;  %v5191_v16 = vadd.f32 1.0, %v6985_v47 }
 0x23f   : > { %v6989_v62 = vpop.eup %6988  ;;  %v5344_v45 = vadd.f32 %v5312_v58, %v5280_v25  ;;  %v5194_v53 = vadd.f32 1.0, %v6987_v33  ;;  %5378 = vst [vmem:[%s9770_s8 + $0xb8] sm:$0xff] %v5346_v39 }
 0x240   : > { %v6991_v52 = vpop.eup %6990  ;;  %7000 = vrcp.f32 %v5191_v16  ;;  %v5192_v21 = vadd.f32 1.0, %v6989_v62 }
 0x241   : > { %5376 = vst [vmem:[%s9770_s8 + $0xa8] sm:$0xff] %v5344_v45  ;;  %v5285_v56 = vmul.f32 %v6991_v52, %v9840_v37  ;;  %7002 = vrcp.f32 %v5194_v53 }
 0x242   : > { %v6993_v43 = vpop.eup %6992  ;;  %7004 = vrcp.f32 %v5192_v21 }
 0x243   : > { %v6995_v18 = vpop.eup %6994  ;;  %v5349_v30 = vadd.f32 %v5317_v15, %v5285_v56  ;;  %v5283_v1 = vmul.f32 %v6993_v43, %v9847_v0 }
 0x244   : > { %v5286_v55 = vmul.f32 %v6995_v18, %v9852_v35 }
 0x245   : > { %5381 = vst [vmem:[%s9770_s8 + $0xd0] sm:$0xff] %v5349_v30  ;;  %v5347_v60 = vadd.f32 %v5315_v24, %v5283_v1 }
 0x246   : > { %v6997_v31 = vpop.eup %6996  ;;  %v5350_v37 = vadd.f32 %v5318_v6, %v5286_v55 }
 0x247   : > { %5379 = vst [vmem:[%s9770_s8 + $0xc0] sm:$0xff] %v5347_v60  ;;  %v5284_v50 = vmul.f32 %v6997_v31, %v9863_v5 }
 0x248   : > { %v6999_v22 = vpop.eup %6998  ;;  %5382 = vst [vmem:[%s9770_s8 + $0xd8] sm:$0xff] %v5350_v37 }
 0x249   : > { %v5348_v63 = vadd.f32 %v5316_v26, %v5284_v50  ;;  %v5289_v0 = vmul.f32 %v6999_v22, %v9872_v41 }
 0x24b   : > { %5380 = vst [vmem:[%s9770_s8 + $0xc8] sm:$0xff] %v5348_v63  ;;  %v5353_v35 = vadd.f32 %v5321_v9, %v5289_v0 }
 0x24d   : > { %v7001_v20 = vpop.eup %7000  ;;  %5385 = vst [vmem:[%s9770_s8 + $0xf0] sm:$0xff] %v5353_v35 }
 0x24e   : > { %v7003_v42 = vpop.eup %7002  ;;  %v5287_v10 = vmul.f32 %v7001_v20, %v9882_v3 }
 0x24f   : > { %v7005_v5 = vpop.eup %7004  ;;  %v5290_v11 = vmul.f32 %v7003_v42, %v9888_v28 }
 0x250   : > { %v5351_v49 = vadd.f32 %v5319_v2, %v5287_v10  ;;  %v5288_v46 = vmul.f32 %v7005_v5, %v9891_v36 }
 0x251   : > { %v5354_v7 = vadd.f32 %v5322_v40, %v5290_v11 }
 0x252   : > { %5383 = vst [vmem:[%s9770_s8 + $0xe0] sm:$0xff] %v5351_v49  ;;  %v5352_v41 = vadd.f32 %v5320_v4, %v5288_v46 }
 0x253   : > { %5386 = vst [vmem:[%s9770_s8 + $0xf8] sm:$0xff] %v5354_v7 }
 0x254   : > { %5384 = vst [vmem:[%s9770_s8 + $0xe8] sm:$0xff] %v5352_v41 }
 0x255 PF: > { %s14_s15 = sadd.s32 1, %s7021_s15  }
 0x256   : > { %p11_p4 = scmp.ge.s32.totalorder %s14_s15, 4  }
 0x258   :  { %13 = sbr.rel (!%p11_p4) target bundleno = 1 (0x1), region = 79 }

</bundles_post_ra>
